<compile_context>
chip_gen: v5e
topology: v5e:2x2
jax: 0.10.0
libtpu: 0.0.40
codegen_flags: <defaults>
</compile_context>

<pallas_src>
import functools

import jax
import jax.numpy as jnp
from jax.experimental import pallas as pl
from jax.experimental.pallas import tpu as pltpu


def head_kernel(cs_ref, prevw_ref, mem_ref, wf_ref, bf_ref, out_ref,
                key_scr, row_scr):
    bb, _ = cs_ref.shape          # batch tile
    _, n, m = mem_ref.shape       # memory_units, memory_unit_size

    cs = cs_ref[...]              # (bb, C)
    prev_w = prevw_ref[...]       # (bb, N)
    mem = mem_ref[...]            # (bb, N, M)

    # --- all five linear heads in ONE MXU pass: [key | strength gate shift sharpen]
    fused = jnp.dot(cs, wf_ref[...], preferred_element_type=jnp.float32) + bf_ref[...]
    key = fused[:, :m]                                        # (bb, M)
    beta = jnp.logaddexp(fused[:, m:m + 1], 0.0)              # softplus, (bb, 1)
    g = jax.nn.sigmoid(fused[:, m + 1:m + 2])                 # (bb, 1)
    s = jax.nn.softmax(fused[:, m + 2:m + 5], axis=1)         # (bb, 3)
    gamma = 1.0 + jnp.logaddexp(fused[:, m + 5:m + 6], 0.0)   # (bb, 1)

    # --- content addressing: softmax_N(beta * cosine_sim(key, memory)) ---
    # dots[b, n] = sum_m key[b, m] * mem[b, n, m]; the batch dim cannot be fused
    # into a single 2-D matmul, so run one small MXU dot per batch row
    # (== einsum('bm,bnm->bn')), keeping the VPU/XLU slots free.
    key_scr[...] = key
    for b in range(bb):                                       # static unroll, bb == 8
        k_b = key_scr[pl.ds(b, 1), :]                         # (1, M)
        row_scr[pl.ds(b, 1), :] = jax.lax.dot_general(
            k_b, mem_ref[b], (((1,), (1,)), ((), ())),        # NT: contract on M
            preferred_element_type=jnp.float32)               # (1, N)
    dots = row_scr[...]                                       # (bb, N)

    # rsqrt multiplies (EUP) instead of sqrt + divide; clamp on squared norms.
    inv_key = jax.lax.rsqrt(
        jnp.maximum(jnp.sum(key * key, axis=1, keepdims=True), 1e-16))   # (bb, 1)
    inv_mem = jax.lax.rsqrt(
        jnp.maximum(jnp.sum(mem * mem, axis=2), 1e-16))                  # (bb, N)
    sim = dots * inv_key * inv_mem
    content_w = jax.nn.softmax(beta * sim, axis=1)                       # (bb, N)

    # --- location addressing: interpolate, circular shift, sharpen ---
    interp = g * content_w + (1.0 - g) * prev_w                          # (bb, N)
    # shifted[i] = s0 * w[(i-1)%N] + s1 * w[i] + s2 * w[(i+1)%N]
    w_m1 = pltpu.roll(interp, 1, axis=1)        # == jnp.roll(interp, +1): w[(i-1)%N]
    w_p1 = pltpu.roll(interp, n - 1, axis=1)    # == jnp.roll(interp, -1): w[(i+1)%N]
    shifted = s[:, 0:1] * w_m1 + s[:, 1:2] * interp + s[:, 2:3] * w_p1   # (bb, N)

    # shifted ** gamma; tiny clamp guards log(0) for fully-underflowed rows.
    sharp = jnp.exp(gamma * jnp.log(jnp.maximum(shifted, 1e-30)))
    cur_w = sharp / (jnp.sum(sharp, axis=1, keepdims=True) + 1e-16)      # (bb, N)

    # --- packed output: lanes [0, N) = weights, lanes [N, N+M) = read data ---
    out_ref[:, :n] = cur_w
    # memory read: data[b, m] = sum_n cur_w[b, n] * mem[b, n, m], per-row on MXU
    row_scr[...] = cur_w
    for b in range(bb):
        w_b = row_scr[pl.ds(b, 1), :]                                    # (1, N)
        out_ref[pl.ds(b, 1), pl.ds(n, m)] = jnp.dot(
            w_b, mem_ref[b], preferred_element_type=jnp.float32)         # (1, M)


@functools.partial(jax.jit, static_argnames=("batch_block",))
def head_forward(controller_state, prev_weights, memory, params, *, batch_block=8):
    B, C = controller_state.shape
    _, N, M = memory.shape
    assert B % batch_block == 0, "batch must be a multiple of the batch tile (8)"

    # Fuse key_fc + the four small heads into one (C, M+6) weight at trace time.
    # write_data_fc is intentionally NOT passed (read mode): no wasted DMA.
    w_fused = jnp.concatenate([params["key_w"].T, params["small_w"].T], axis=1)
    b_fused = jnp.concatenate([params["key_b"], params["small_b"]])[None, :]

    grid = (B // batch_block,)
    packed = pl.pallas_call(
        head_kernel,
        out_shape=jax.ShapeDtypeStruct((B, N + M), jnp.float32),
        grid=grid,
        in_specs=[
            pl.BlockSpec((batch_block, C), lambda i: (i, 0)),
            pl.BlockSpec((batch_block, N), lambda i: (i, 0)),
            pl.BlockSpec((batch_block, N, M), lambda i: (i, 0, 0)),
            pl.BlockSpec((C, M + 6), lambda i: (0, 0)),
            pl.BlockSpec((1, M + 6), lambda i: (0, 0)),
        ],
        out_specs=pl.BlockSpec((batch_block, N + M), lambda i: (i, 0)),
        scratch_shapes=[
            pltpu.VMEM((batch_block, M), jnp.float32),   # key rows
            pltpu.VMEM((batch_block, N), jnp.float32),   # dots / cur_w rows
        ],
        compiler_params=pltpu.CompilerParams(
            dimension_semantics=("parallel",)),
    )(controller_state, prev_weights, memory, w_fused, b_fused)

    return packed[:, :N], packed[:, N:]


def init_params(rng, controller_size, key_size):
    def xavier(k, out_dim, in_dim, gain):
        limit = gain * (6.0 / (in_dim + out_dim)) ** 0.5
        return jax.random.uniform(k, (out_dim, in_dim), jnp.float32, -limit, limit)

    ks = jax.random.split(rng, 12)
    # key_fc keeps the default nn.Linear weight init (uniform +-1/sqrt(fan_in))
    lim = 1.0 / (controller_size ** 0.5)
    key_w = jax.random.uniform(ks[0], (key_size, controller_size), jnp.float32, -lim, lim)
    key_b = 0.01 * jax.random.normal(ks[1], (key_size,), jnp.float32)

    strength_w = xavier(ks[2], 1, controller_size, 1.4)
    gate_w = xavier(ks[3], 1, controller_size, 1.4)
    shift_w = xavier(ks[4], 3, controller_size, 1.4)
    sharpen_w = xavier(ks[5], 1, controller_size, 1.4)
    small_w = jnp.concatenate([strength_w, gate_w, shift_w, sharpen_w], axis=0)  # (6, C)
    small_b = 0.01 * jax.random.normal(ks[6], (6,), jnp.float32)

    # write_data_fc exists in the module but is unused in read mode (not DMA'd).
    write_w = xavier(ks[7], key_size, controller_size, 1.4)
    write_b = 0.01 * jax.random.normal(ks[8], (key_size,), jnp.float32)

    return {"key_w": key_w, "key_b": key_b,
            "small_w": small_w, "small_b": small_b,
            "write_w": write_w, "write_b": write_b}


def head_forward_ref(cs, prev_w, mem, params):
    """Pure-JAX reference mirroring the PyTorch forward (read mode)."""
    key = cs @ params["key_w"].T + params["key_b"]
    small = cs @ params["small_w"].T + params["small_b"]
    beta = jnp.logaddexp(small[:, 0:1], 0.0)
    g = jax.nn.sigmoid(small[:, 1:2])
    s = jax.nn.softmax(small[:, 2:5], axis=1)
    gamma = 1.0 + jnp.logaddexp(small[:, 5:6], 0.0)
    dots = jnp.einsum("bm,bnm->bn", key, mem)
    denom = jnp.maximum(jnp.linalg.norm(key, axis=1, keepdims=True)
                        * jnp.linalg.norm(mem, axis=2), 1e-8)
    cw = jax.nn.softmax(beta * dots / denom, axis=1)
    interp = g * cw + (1.0 - g) * prev_w
    shifted = (s[:, 0:1] * jnp.roll(interp, 1, axis=1)
               + s[:, 1:2] * interp
               + s[:, 2:3] * jnp.roll(interp, -1, axis=1))
    sharp = shifted ** gamma
    cur_w = sharp / (jnp.sum(sharp, axis=1, keepdims=True) + 1e-16)
    data = jnp.einsum("bn,bnm->bm", cur_w, mem)
    return cur_w, data


if __name__ == "__main__":
    # batch, controller_size, memory_units, memory_unit_size (key_size)
    # N = 128 / B = 16 keep the shift and stores (8, 128)-aligned and batch the
    # MXU rows, per the performance review; everything is still tiny (< 1 MiB).
    B, C, N, M = 16, 64, 128, 32

    root = jax.random.PRNGKey(0)
    k_param, k_cs, k_pw, k_mem = jax.random.split(root, 4)

    params = init_params(k_param, C, M)
    controller_state = jax.random.normal(k_cs, (B, C), jnp.float32)
    prev_weights = jax.nn.softmax(jax.random.normal(k_pw, (B, N), jnp.float32), axis=1)
    memory = jax.random.normal(k_mem, (B, N, M), jnp.float32)

    cur_w, data = head_forward(controller_state, prev_weights, memory, params)
    cur_w, data = jax.block_until_ready((cur_w, data))

    ref_w, ref_d = head_forward_ref(controller_state, prev_weights, memory, params)
    assert jnp.allclose(cur_w, ref_w, atol=1e-5, rtol=1e-4), \
        float(jnp.max(jnp.abs(cur_w - ref_w)))
    assert jnp.allclose(data, ref_d, atol=1e-5, rtol=1e-4), \
        float(jnp.max(jnp.abs(data - ref_d)))
    assert jnp.allclose(jnp.sum(cur_w, axis=1), 1.0, atol=1e-5)

    print("KERNEL_OK")
</pallas_src>

<mosaic_0001>
module attributes {stable_mosaic.version = 11 : i64} {
  func.func @head_kernel(%arg0: i32, %arg1: memref<8x64xf32, #tpu.memory_space<vmem>>, %arg2: memref<8x128xf32, #tpu.memory_space<vmem>>, %arg3: memref<8x128x32xf32, #tpu.memory_space<vmem>>, %arg4: memref<64x38xf32, #tpu.memory_space<vmem>>, %arg5: memref<1x38xf32, #tpu.memory_space<vmem>>, %arg6: memref<8x160xf32, #tpu.memory_space<vmem>>, %arg7: memref<8x32xf32, #tpu.memory_space<vmem>>, %arg8: memref<8x128xf32, #tpu.memory_space<vmem>>) attributes {dimension_semantics = [#tpu.dimension_semantics<parallel>], iteration_bounds = array<i64: 2>, scalar_prefetch = 0 : i64, scratch_operands = 2 : i64, tpu.core_type = #tpu.core_type<tc>, window_params = [{transform_indices = @transform_0, window_bounds = array<i64: 8, 64>}, {transform_indices = @transform_1, window_bounds = array<i64: 8, 128>}, {transform_indices = @transform_2, window_bounds = array<i64: 8, 128, 32>}, {pipeline_mode = #tpu.pipeline_mode<synchronous>, transform_indices = @transform_3, window_bounds = array<i64: 64, 38>}, {pipeline_mode = #tpu.pipeline_mode<synchronous>, transform_indices = @transform_4, window_bounds = array<i64: 1, 38>}, {transform_indices = @transform_5, window_bounds = array<i64: 8, 160>}]} {
    %c0 = arith.constant 0 : index
    %c0_0 = arith.constant 0 : index
    %0 = vector.load %arg1[%c0, %c0_0] : memref<8x64xf32, #tpu.memory_space<vmem>>, vector<8x64xf32>
    %c0_1 = arith.constant 0 : index
    %c0_2 = arith.constant 0 : index
    %1 = vector.load %arg2[%c0_1, %c0_2] : memref<8x128xf32, #tpu.memory_space<vmem>>, vector<8x128xf32>
    %c0_3 = arith.constant 0 : index
    %c0_4 = arith.constant 0 : index
    %c0_5 = arith.constant 0 : index
    %2 = vector.load %arg3[%c0_3, %c0_4, %c0_5] : memref<8x128x32xf32, #tpu.memory_space<vmem>>, vector<8x128x32xf32>
    %c0_6 = arith.constant 0 : index
    %c0_7 = arith.constant 0 : index
    %3 = vector.load %arg4[%c0_6, %c0_7] : memref<64x38xf32, #tpu.memory_space<vmem>>, vector<64x38xf32>
    %cst = arith.constant dense<0.000000e+00> : vector<8x38xf32>
    %4 = tpu.matmul %0, %3, %cst {dimension_numbers = #tpu.dot_dimension_numbers<[1], [0], [0], [1], [0, 0, 1, 1], [], []>} : vector<8x64xf32>, vector<64x38xf32>, vector<8x38xf32> -> vector<8x38xf32>
    %c0_8 = arith.constant 0 : index
    %c0_9 = arith.constant 0 : index
    %5 = vector.load %arg5[%c0_8, %c0_9] : memref<1x38xf32, #tpu.memory_space<vmem>>, vector<1x38xf32>
    %6 = vector.broadcast %5 : vector<1x38xf32> to vector<8x38xf32>
    %7 = arith.addf %4, %6 : vector<8x38xf32>
    %8 = vector.extract_strided_slice %7 {offsets = [0, 0], sizes = [8, 32], strides = [1, 1]} : vector<8x38xf32> to vector<8x32xf32>
    %9 = vector.extract_strided_slice %7 {offsets = [0, 32], sizes = [8, 1], strides = [1, 1]} : vector<8x38xf32> to vector<8x1xf32>
    %cst_10 = arith.constant 0.000000e+00 : f32
    %10 = vector.broadcast %cst_10 : f32 to vector<8x1xf32>
    %11 = arith.maximumf %9, %10 : vector<8x1xf32>
    %12 = vector.broadcast %cst_10 : f32 to vector<8x1xf32>
    %13 = arith.subf %9, %12 : vector<8x1xf32>
    %14 = arith.cmpf one, %13, %13 : vector<8x1xf32>
    %15 = vector.broadcast %cst_10 : f32 to vector<8x1xf32>
    %16 = arith.addf %9, %15 : vector<8x1xf32>
    %17 = math.absf %13 : vector<8x1xf32>
    %cst_11 = arith.constant 0.000000e+00 : f32
    %18 = vector.broadcast %cst_11 : f32 to vector<8x1xf32>
    %19 = arith.subf %18, %17 : vector<8x1xf32>
    %20 = math.exp %19 : vector<8x1xf32>
    %21 = math.log1p %20 : vector<8x1xf32>
    %22 = arith.addf %11, %21 : vector<8x1xf32>
    %23 = arith.select %14, %16, %22 : vector<8x1xi1>, vector<8x1xf32>
    %24 = vector.extract_strided_slice %7 {offsets = [0, 33], sizes = [8, 1], strides = [1, 1]} : vector<8x38xf32> to vector<8x1xf32>
    %25 = arith.negf %24 : vector<8x1xf32>
    %26 = math.exp %25 : vector<8x1xf32>
    %cst_12 = arith.constant 1.000000e+00 : f32
    %27 = vector.broadcast %cst_12 : f32 to vector<8x1xf32>
    %28 = arith.addf %27, %26 : vector<8x1xf32>
    %29 = arith.divf %27, %28 : vector<8x1xf32>
    %30 = vector.extract_strided_slice %7 {offsets = [0, 34], sizes = [8, 3], strides = [1, 1]} : vector<8x38xf32> to vector<8x3xf32>
    %cst_13 = arith.constant dense<0xFF800000> : vector<8xf32>
    %31 = vector.multi_reduction <maximumf>, %30, %cst_13 [1] : vector<8x3xf32> to vector<8xf32>
    %cst_14 = arith.constant 0xFF800000 : f32
    %32 = vector.broadcast %cst_14 : f32 to vector<8xf32>
    %33 = arith.maximumf %32, %31 : vector<8xf32>
    %34 = vector.shape_cast %33 : vector<8xf32> to vector<8x1xf32>
    %35 = vector.broadcast %34 : vector<8x1xf32> to vector<8x3xf32>
    %36 = arith.subf %30, %35 : vector<8x3xf32>
    %37 = math.exp %36 : vector<8x3xf32>
    %cst_15 = arith.constant dense<0.000000e+00> : vector<8xf32>
    %38 = vector.multi_reduction <add>, %37, %cst_15 [1] : vector<8x3xf32> to vector<8xf32>
    %39 = vector.shape_cast %38 : vector<8xf32> to vector<8x1xf32>
    %40 = vector.broadcast %39 : vector<8x1xf32> to vector<8x3xf32>
    %41 = arith.divf %37, %40 : vector<8x3xf32>
    %42 = vector.extract_strided_slice %7 {offsets = [0, 37], sizes = [8, 1], strides = [1, 1]} : vector<8x38xf32> to vector<8x1xf32>
    %cst_16 = arith.constant 0.000000e+00 : f32
    %43 = vector.broadcast %cst_16 : f32 to vector<8x1xf32>
    %44 = arith.maximumf %42, %43 : vector<8x1xf32>
    %45 = vector.broadcast %cst_16 : f32 to vector<8x1xf32>
    %46 = arith.subf %42, %45 : vector<8x1xf32>
    %47 = arith.cmpf one, %46, %46 : vector<8x1xf32>
    %48 = vector.broadcast %cst_16 : f32 to vector<8x1xf32>
    %49 = arith.addf %42, %48 : vector<8x1xf32>
    %50 = math.absf %46 : vector<8x1xf32>
    %cst_17 = arith.constant 0.000000e+00 : f32
    %51 = vector.broadcast %cst_17 : f32 to vector<8x1xf32>
    %52 = arith.subf %51, %50 : vector<8x1xf32>
    %53 = math.exp %52 : vector<8x1xf32>
    %54 = math.log1p %53 : vector<8x1xf32>
    %55 = arith.addf %44, %54 : vector<8x1xf32>
    %56 = arith.select %47, %49, %55 : vector<8x1xi1>, vector<8x1xf32>
    %cst_18 = arith.constant 1.000000e+00 : f32
    %57 = vector.broadcast %cst_18 : f32 to vector<8x1xf32>
    %58 = arith.addf %57, %56 : vector<8x1xf32>
    %c0_19 = arith.constant 0 : index
    %c0_20 = arith.constant 0 : index
    %59 = vector.load %arg7[%c0_19, %c0_20] : memref<8x32xf32, #tpu.memory_space<vmem>>, vector<8x32xf32>
    tpu.vector_store %arg7[%c0_19, %c0_20], %8 {strides = array<i32>} : memref<8x32xf32, #tpu.memory_space<vmem>>, vector<8x32xf32>,
    %c0_21 = arith.constant 0 : index
    %c0_22 = arith.constant 0 : index
    %60 = vector.load %arg7[%c0_21, %c0_22] : memref<8x32xf32, #tpu.memory_space<vmem>>, vector<1x32xf32>
    %c0_23 = arith.constant 0 : index
    %c0_24 = arith.constant 0 : index
    %c0_25 = arith.constant 0 : index
    %61 = vector.load %arg3[%c0_23, %c0_24, %c0_25] : memref<8x128x32xf32, #tpu.memory_space<vmem>>, vector<1x128x32xf32>
    %62 = vector.shape_cast %61 : vector<1x128x32xf32> to vector<128x32xf32>
    %cst_26 = arith.constant dense<0.000000e+00> : vector<1x128xf32>
    %63 = tpu.matmul %60, %62, %cst_26 {dimension_numbers = #tpu.dot_dimension_numbers<[1], [1], [0], [0], [0, 0, 1, 0], [], []>} : vector<1x32xf32>, vector<128x32xf32>, vector<1x128xf32> -> vector<1x128xf32>
    %c0_27 = arith.constant 0 : index
    %c0_28 = arith.constant 0 : index
    %64 = vector.load %arg8[%c0_27, %c0_28] : memref<8x128xf32, #tpu.memory_space<vmem>>, vector<1x128xf32>
    tpu.vector_store %arg8[%c0_27, %c0_28], %63 {strides = array<i32>} : memref<8x128xf32, #tpu.memory_space<vmem>>, vector<1x128xf32>,
    %c1 = arith.constant 1 : index
    %c0_29 = arith.constant 0 : index
    %65 = vector.load %arg7[%c1, %c0_29] : memref<8x32xf32, #tpu.memory_space<vmem>>, vector<1x32xf32>
    %c1_30 = arith.constant 1 : index
    %c0_31 = arith.constant 0 : index
    %c0_32 = arith.constant 0 : index
    %66 = vector.load %arg3[%c1_30, %c0_31, %c0_32] : memref<8x128x32xf32, #tpu.memory_space<vmem>>, vector<1x128x32xf32>
    %67 = vector.shape_cast %66 : vector<1x128x32xf32> to vector<128x32xf32>
    %cst_33 = arith.constant dense<0.000000e+00> : vector<1x128xf32>
    %68 = tpu.matmul %65, %67, %cst_33 {dimension_numbers = #tpu.dot_dimension_numbers<[1], [1], [0], [0], [0, 0, 1, 0], [], []>} : vector<1x32xf32>, vector<128x32xf32>, vector<1x128xf32> -> vector<1x128xf32>
    %c1_34 = arith.constant 1 : index
    %c0_35 = arith.constant 0 : index
    %69 = vector.load %arg8[%c1_34, %c0_35] : memref<8x128xf32, #tpu.memory_space<vmem>>, vector<1x128xf32>
    tpu.vector_store %arg8[%c1_34, %c0_35], %68 {strides = array<i32>} : memref<8x128xf32, #tpu.memory_space<vmem>>, vector<1x128xf32>,
    %c2 = arith.constant 2 : index
    %c0_36 = arith.constant 0 : index
    %70 = vector.load %arg7[%c2, %c0_36] : memref<8x32xf32, #tpu.memory_space<vmem>>, vector<1x32xf32>
    %c2_37 = arith.constant 2 : index
    %c0_38 = arith.constant 0 : index
    %c0_39 = arith.constant 0 : index
    %71 = vector.load %arg3[%c2_37, %c0_38, %c0_39] : memref<8x128x32xf32, #tpu.memory_space<vmem>>, vector<1x128x32xf32>
    %72 = vector.shape_cast %71 : vector<1x128x32xf32> to vector<128x32xf32>
    %cst_40 = arith.constant dense<0.000000e+00> : vector<1x128xf32>
    %73 = tpu.matmul %70, %72, %cst_40 {dimension_numbers = #tpu.dot_dimension_numbers<[1], [1], [0], [0], [0, 0, 1, 0], [], []>} : vector<1x32xf32>, vector<128x32xf32>, vector<1x128xf32> -> vector<1x128xf32>
    %c2_41 = arith.constant 2 : index
    %c0_42 = arith.constant 0 : index
    %74 = vector.load %arg8[%c2_41, %c0_42] : memref<8x128xf32, #tpu.memory_space<vmem>>, vector<1x128xf32>
    tpu.vector_store %arg8[%c2_41, %c0_42], %73 {strides = array<i32>} : memref<8x128xf32, #tpu.memory_space<vmem>>, vector<1x128xf32>,
    %c3 = arith.constant 3 : index
    %c0_43 = arith.constant 0 : index
    %75 = vector.load %arg7[%c3, %c0_43] : memref<8x32xf32, #tpu.memory_space<vmem>>, vector<1x32xf32>
    %c3_44 = arith.constant 3 : index
    %c0_45 = arith.constant 0 : index
    %c0_46 = arith.constant 0 : index
    %76 = vector.load %arg3[%c3_44, %c0_45, %c0_46] : memref<8x128x32xf32, #tpu.memory_space<vmem>>, vector<1x128x32xf32>
    %77 = vector.shape_cast %76 : vector<1x128x32xf32> to vector<128x32xf32>
    %cst_47 = arith.constant dense<0.000000e+00> : vector<1x128xf32>
    %78 = tpu.matmul %75, %77, %cst_47 {dimension_numbers = #tpu.dot_dimension_numbers<[1], [1], [0], [0], [0, 0, 1, 0], [], []>} : vector<1x32xf32>, vector<128x32xf32>, vector<1x128xf32> -> vector<1x128xf32>
    %c3_48 = arith.constant 3 : index
    %c0_49 = arith.constant 0 : index
    %79 = vector.load %arg8[%c3_48, %c0_49] : memref<8x128xf32, #tpu.memory_space<vmem>>, vector<1x128xf32>
    tpu.vector_store %arg8[%c3_48, %c0_49], %78 {strides = array<i32>} : memref<8x128xf32, #tpu.memory_space<vmem>>, vector<1x128xf32>,
    %c4 = arith.constant 4 : index
    %c0_50 = arith.constant 0 : index
    %80 = vector.load %arg7[%c4, %c0_50] : memref<8x32xf32, #tpu.memory_space<vmem>>, vector<1x32xf32>
    %c4_51 = arith.constant 4 : index
    %c0_52 = arith.constant 0 : index
    %c0_53 = arith.constant 0 : index
    %81 = vector.load %arg3[%c4_51, %c0_52, %c0_53] : memref<8x128x32xf32, #tpu.memory_space<vmem>>, vector<1x128x32xf32>
    %82 = vector.shape_cast %81 : vector<1x128x32xf32> to vector<128x32xf32>
    %cst_54 = arith.constant dense<0.000000e+00> : vector<1x128xf32>
    %83 = tpu.matmul %80, %82, %cst_54 {dimension_numbers = #tpu.dot_dimension_numbers<[1], [1], [0], [0], [0, 0, 1, 0], [], []>} : vector<1x32xf32>, vector<128x32xf32>, vector<1x128xf32> -> vector<1x128xf32>
    %c4_55 = arith.constant 4 : index
    %c0_56 = arith.constant 0 : index
    %84 = vector.load %arg8[%c4_55, %c0_56] : memref<8x128xf32, #tpu.memory_space<vmem>>, vector<1x128xf32>
    tpu.vector_store %arg8[%c4_55, %c0_56], %83 {strides = array<i32>} : memref<8x128xf32, #tpu.memory_space<vmem>>, vector<1x128xf32>,
    %c5 = arith.constant 5 : index
    %c0_57 = arith.constant 0 : index
    %85 = vector.load %arg7[%c5, %c0_57] : memref<8x32xf32, #tpu.memory_space<vmem>>, vector<1x32xf32>
    %c5_58 = arith.constant 5 : index
    %c0_59 = arith.constant 0 : index
    %c0_60 = arith.constant 0 : index
    %86 = vector.load %arg3[%c5_58, %c0_59, %c0_60] : memref<8x128x32xf32, #tpu.memory_space<vmem>>, vector<1x128x32xf32>
    %87 = vector.shape_cast %86 : vector<1x128x32xf32> to vector<128x32xf32>
    %cst_61 = arith.constant dense<0.000000e+00> : vector<1x128xf32>
    %88 = tpu.matmul %85, %87, %cst_61 {dimension_numbers = #tpu.dot_dimension_numbers<[1], [1], [0], [0], [0, 0, 1, 0], [], []>} : vector<1x32xf32>, vector<128x32xf32>, vector<1x128xf32> -> vector<1x128xf32>
    %c5_62 = arith.constant 5 : index
    %c0_63 = arith.constant 0 : index
    %89 = vector.load %arg8[%c5_62, %c0_63] : memref<8x128xf32, #tpu.memory_space<vmem>>, vector<1x128xf32>
    tpu.vector_store %arg8[%c5_62, %c0_63], %88 {strides = array<i32>} : memref<8x128xf32, #tpu.memory_space<vmem>>, vector<1x128xf32>,
    %c6 = arith.constant 6 : index
    %c0_64 = arith.constant 0 : index
    %90 = vector.load %arg7[%c6, %c0_64] : memref<8x32xf32, #tpu.memory_space<vmem>>, vector<1x32xf32>
    %c6_65 = arith.constant 6 : index
    %c0_66 = arith.constant 0 : index
    %c0_67 = arith.constant 0 : index
    %91 = vector.load %arg3[%c6_65, %c0_66, %c0_67] : memref<8x128x32xf32, #tpu.memory_space<vmem>>, vector<1x128x32xf32>
    %92 = vector.shape_cast %91 : vector<1x128x32xf32> to vector<128x32xf32>
    %cst_68 = arith.constant dense<0.000000e+00> : vector<1x128xf32>
    %93 = tpu.matmul %90, %92, %cst_68 {dimension_numbers = #tpu.dot_dimension_numbers<[1], [1], [0], [0], [0, 0, 1, 0], [], []>} : vector<1x32xf32>, vector<128x32xf32>, vector<1x128xf32> -> vector<1x128xf32>
    %c6_69 = arith.constant 6 : index
    %c0_70 = arith.constant 0 : index
    %94 = vector.load %arg8[%c6_69, %c0_70] : memref<8x128xf32, #tpu.memory_space<vmem>>, vector<1x128xf32>
    tpu.vector_store %arg8[%c6_69, %c0_70], %93 {strides = array<i32>} : memref<8x128xf32, #tpu.memory_space<vmem>>, vector<1x128xf32>,
    %c7 = arith.constant 7 : index
    %c0_71 = arith.constant 0 : index
    %95 = vector.load %arg7[%c7, %c0_71] : memref<8x32xf32, #tpu.memory_space<vmem>>, vector<1x32xf32>
    %c7_72 = arith.constant 7 : index
    %c0_73 = arith.constant 0 : index
    %c0_74 = arith.constant 0 : index
    %96 = vector.load %arg3[%c7_72, %c0_73, %c0_74] : memref<8x128x32xf32, #tpu.memory_space<vmem>>, vector<1x128x32xf32>
    %97 = vector.shape_cast %96 : vector<1x128x32xf32> to vector<128x32xf32>
    %cst_75 = arith.constant dense<0.000000e+00> : vector<1x128xf32>
    %98 = tpu.matmul %95, %97, %cst_75 {dimension_numbers = #tpu.dot_dimension_numbers<[1], [1], [0], [0], [0, 0, 1, 0], [], []>} : vector<1x32xf32>, vector<128x32xf32>, vector<1x128xf32> -> vector<1x128xf32>
    %c7_76 = arith.constant 7 : index
    %c0_77 = arith.constant 0 : index
    %99 = vector.load %arg8[%c7_76, %c0_77] : memref<8x128xf32, #tpu.memory_space<vmem>>, vector<1x128xf32>
    tpu.vector_store %arg8[%c7_76, %c0_77], %98 {strides = array<i32>} : memref<8x128xf32, #tpu.memory_space<vmem>>, vector<1x128xf32>,
    %c0_78 = arith.constant 0 : index
    %c0_79 = arith.constant 0 : index
    %100 = vector.load %arg8[%c0_78, %c0_79] : memref<8x128xf32, #tpu.memory_space<vmem>>, vector<8x128xf32>
    %101 = arith.mulf %8, %8 : vector<8x32xf32>
    %cst_80 = arith.constant dense<0.000000e+00> : vector<8xf32>
    %102 = vector.multi_reduction <add>, %101, %cst_80 [1] : vector<8x32xf32> to vector<8xf32>
    %103 = vector.shape_cast %102 : vector<8xf32> to vector<8x1xf32>
    %cst_81 = arith.constant 1.000000e-16 : f32
    %104 = vector.broadcast %cst_81 : f32 to vector<8x1xf32>
    %105 = arith.maximumf %103, %104 : vector<8x1xf32>
    %106 = math.rsqrt %105 : vector<8x1xf32>
    %107 = arith.mulf %2, %2 : vector<8x128x32xf32>
    %cst_82 = arith.constant dense<0.000000e+00> : vector<8x128xf32>
    %108 = vector.multi_reduction <add>, %107, %cst_82 [2] : vector<8x128x32xf32> to vector<8x128xf32>
    %cst_83 = arith.constant 1.000000e-16 : f32
    %109 = vector.broadcast %cst_83 : f32 to vector<8x128xf32>
    %110 = arith.maximumf %108, %109 : vector<8x128xf32>
    %111 = math.rsqrt %110 : vector<8x128xf32>
    %112 = vector.broadcast %106 : vector<8x1xf32> to vector<8x128xf32>
    %113 = arith.mulf %100, %112 : vector<8x128xf32>
    %114 = arith.mulf %113, %111 : vector<8x128xf32>
    %115 = vector.broadcast %23 : vector<8x1xf32> to vector<8x128xf32>
    %116 = arith.mulf %115, %114 : vector<8x128xf32>
    %cst_84 = arith.constant dense<0xFF800000> : vector<8xf32>
    %117 = vector.multi_reduction <maximumf>, %116, %cst_84 [1] : vector<8x128xf32> to vector<8xf32>
    %cst_85 = arith.constant 0xFF800000 : f32
    %118 = vector.broadcast %cst_85 : f32 to vector<8xf32>
    %119 = arith.maximumf %118, %117 : vector<8xf32>
    %120 = vector.shape_cast %119 : vector<8xf32> to vector<8x1xf32>
    %121 = vector.broadcast %120 : vector<8x1xf32> to vector<8x128xf32>
    %122 = arith.subf %116, %121 : vector<8x128xf32>
    %123 = math.exp %122 : vector<8x128xf32>
    %cst_86 = arith.constant dense<0.000000e+00> : vector<8xf32>
    %124 = vector.multi_reduction <add>, %123, %cst_86 [1] : vector<8x128xf32> to vector<8xf32>
    %125 = vector.shape_cast %124 : vector<8xf32> to vector<8x1xf32>
    %126 = vector.broadcast %125 : vector<8x1xf32> to vector<8x128xf32>
    %127 = arith.divf %123, %126 : vector<8x128xf32>
    %128 = vector.broadcast %29 : vector<8x1xf32> to vector<8x128xf32>
    %129 = arith.mulf %128, %127 : vector<8x128xf32>
    %cst_87 = arith.constant 1.000000e+00 : f32
    %130 = vector.broadcast %cst_87 : f32 to vector<8x1xf32>
    %131 = arith.subf %130, %29 : vector<8x1xf32>
    %132 = vector.broadcast %131 : vector<8x1xf32> to vector<8x128xf32>
    %133 = arith.mulf %132, %1 : vector<8x128xf32>
    %134 = arith.addf %129, %133 : vector<8x128xf32>
    %c1_i32 = arith.constant 1 : i32
    %135 = tpu.dynamic_rotate %134 by %c1_i32 dim 1 : vector<8x128xf32>, i32 -> vector<8x128xf32>
    %c127_i32 = arith.constant 127 : i32
    %136 = tpu.dynamic_rotate %134 by %c127_i32 dim 1 : vector<8x128xf32>, i32 -> vector<8x128xf32>
    %137 = vector.extract_strided_slice %41 {offsets = [0, 0], sizes = [8, 1], strides = [1, 1]} : vector<8x3xf32> to vector<8x1xf32>
    %138 = vector.broadcast %137 : vector<8x1xf32> to vector<8x128xf32>
    %139 = arith.mulf %138, %135 : vector<8x128xf32>
    %140 = vector.extract_strided_slice %41 {offsets = [0, 1], sizes = [8, 1], strides = [1, 1]} : vector<8x3xf32> to vector<8x1xf32>
    %141 = vector.broadcast %140 : vector<8x1xf32> to vector<8x128xf32>
    %142 = arith.mulf %141, %134 : vector<8x128xf32>
    %143 = arith.addf %139, %142 : vector<8x128xf32>
    %144 = vector.extract_strided_slice %41 {offsets = [0, 2], sizes = [8, 1], strides = [1, 1]} : vector<8x3xf32> to vector<8x1xf32>
    %145 = vector.broadcast %144 : vector<8x1xf32> to vector<8x128xf32>
    %146 = arith.mulf %145, %136 : vector<8x128xf32>
    %147 = arith.addf %143, %146 : vector<8x128xf32>
    %cst_88 = arith.constant 1.000000e-30 : f32
    %148 = vector.broadcast %cst_88 : f32 to vector<8x128xf32>
    %149 = arith.maximumf %147, %148 : vector<8x128xf32>
    %150 = math.log %149 : vector<8x128xf32>
    %151 = vector.broadcast %58 : vector<8x1xf32> to vector<8x128xf32>
    %152 = arith.mulf %151, %150 : vector<8x128xf32>
    %153 = math.exp %152 : vector<8x128xf32>
    %cst_89 = arith.constant dense<0.000000e+00> : vector<8xf32>
    %154 = vector.multi_reduction <add>, %153, %cst_89 [1] : vector<8x128xf32> to vector<8xf32>
    %155 = vector.shape_cast %154 : vector<8xf32> to vector<8x1xf32>
    %cst_90 = arith.constant 1.000000e-16 : f32
    %156 = vector.broadcast %cst_90 : f32 to vector<8x1xf32>
    %157 = arith.addf %155, %156 : vector<8x1xf32>
    %158 = vector.broadcast %157 : vector<8x1xf32> to vector<8x128xf32>
    %159 = arith.divf %153, %158 : vector<8x128xf32>
    %c0_91 = arith.constant 0 : index
    %c0_92 = arith.constant 0 : index
    %160 = vector.load %arg6[%c0_91, %c0_92] : memref<8x160xf32, #tpu.memory_space<vmem>>, vector<8x128xf32>
    tpu.vector_store %arg6[%c0_91, %c0_92], %159 {strides = array<i32>} : memref<8x160xf32, #tpu.memory_space<vmem>>, vector<8x128xf32>,
    %c0_93 = arith.constant 0 : index
    %c0_94 = arith.constant 0 : index
    %161 = vector.load %arg8[%c0_93, %c0_94] : memref<8x128xf32, #tpu.memory_space<vmem>>, vector<8x128xf32>
    tpu.vector_store %arg8[%c0_93, %c0_94], %159 {strides = array<i32>} : memref<8x128xf32, #tpu.memory_space<vmem>>, vector<8x128xf32>,
    %c0_95 = arith.constant 0 : index
    %c0_96 = arith.constant 0 : index
    %162 = vector.load %arg8[%c0_95, %c0_96] : memref<8x128xf32, #tpu.memory_space<vmem>>, vector<1x128xf32>
    %c0_97 = arith.constant 0 : index
    %c0_98 = arith.constant 0 : index
    %c0_99 = arith.constant 0 : index
    %163 = vector.load %arg3[%c0_97, %c0_98, %c0_99] : memref<8x128x32xf32, #tpu.memory_space<vmem>>, vector<1x128x32xf32>
    %164 = vector.shape_cast %163 : vector<1x128x32xf32> to vector<128x32xf32>
    %cst_100 = arith.constant dense<0.000000e+00> : vector<1x32xf32>
    %165 = tpu.matmul %162, %164, %cst_100 {dimension_numbers = #tpu.dot_dimension_numbers<[1], [0], [0], [1], [0, 0, 1, 1], [], []>} : vector<1x128xf32>, vector<128x32xf32>, vector<1x32xf32> -> vector<1x32xf32>
    %c0_101 = arith.constant 0 : index
    %c128 = arith.constant 128 : index
    %166 = vector.load %arg6[%c0_101, %c128] : memref<8x160xf32, #tpu.memory_space<vmem>>, vector<1x32xf32>
    tpu.vector_store %arg6[%c0_101, %c128], %165 {strides = array<i32>} : memref<8x160xf32, #tpu.memory_space<vmem>>, vector<1x32xf32>,
    %c1_102 = arith.constant 1 : index
    %c0_103 = arith.constant 0 : index
    %167 = vector.load %arg8[%c1_102, %c0_103] : memref<8x128xf32, #tpu.memory_space<vmem>>, vector<1x128xf32>
    %c1_104 = arith.constant 1 : index
    %c0_105 = arith.constant 0 : index
    %c0_106 = arith.constant 0 : index
    %168 = vector.load %arg3[%c1_104, %c0_105, %c0_106] : memref<8x128x32xf32, #tpu.memory_space<vmem>>, vector<1x128x32xf32>
    %169 = vector.shape_cast %168 : vector<1x128x32xf32> to vector<128x32xf32>
    %cst_107 = arith.constant dense<0.000000e+00> : vector<1x32xf32>
    %170 = tpu.matmul %167, %169, %cst_107 {dimension_numbers = #tpu.dot_dimension_numbers<[1], [0], [0], [1], [0, 0, 1, 1], [], []>} : vector<1x128xf32>, vector<128x32xf32>, vector<1x32xf32> -> vector<1x32xf32>
    %c1_108 = arith.constant 1 : index
    %c128_109 = arith.constant 128 : index
    %171 = vector.load %arg6[%c1_108, %c128_109] : memref<8x160xf32, #tpu.memory_space<vmem>>, vector<1x32xf32>
    tpu.vector_store %arg6[%c1_108, %c128_109], %170 {strides = array<i32>} : memref<8x160xf32, #tpu.memory_space<vmem>>, vector<1x32xf32>,
    %c2_110 = arith.constant 2 : index
    %c0_111 = arith.constant 0 : index
    %172 = vector.load %arg8[%c2_110, %c0_111] : memref<8x128xf32, #tpu.memory_space<vmem>>, vector<1x128xf32>
    %c2_112 = arith.constant 2 : index
    %c0_113 = arith.constant 0 : index
    %c0_114 = arith.constant 0 : index
    %173 = vector.load %arg3[%c2_112, %c0_113, %c0_114] : memref<8x128x32xf32, #tpu.memory_space<vmem>>, vector<1x128x32xf32>
    %174 = vector.shape_cast %173 : vector<1x128x32xf32> to vector<128x32xf32>
    %cst_115 = arith.constant dense<0.000000e+00> : vector<1x32xf32>
    %175 = tpu.matmul %172, %174, %cst_115 {dimension_numbers = #tpu.dot_dimension_numbers<[1], [0], [0], [1], [0, 0, 1, 1], [], []>} : vector<1x128xf32>, vector<128x32xf32>, vector<1x32xf32> -> vector<1x32xf32>
    %c2_116 = arith.constant 2 : index
    %c128_117 = arith.constant 128 : index
    %176 = vector.load %arg6[%c2_116, %c128_117] : memref<8x160xf32, #tpu.memory_space<vmem>>, vector<1x32xf32>
    tpu.vector_store %arg6[%c2_116, %c128_117], %175 {strides = array<i32>} : memref<8x160xf32, #tpu.memory_space<vmem>>, vector<1x32xf32>,
    %c3_118 = arith.constant 3 : index
    %c0_119 = arith.constant 0 : index
    %177 = vector.load %arg8[%c3_118, %c0_119] : memref<8x128xf32, #tpu.memory_space<vmem>>, vector<1x128xf32>
    %c3_120 = arith.constant 3 : index
    %c0_121 = arith.constant 0 : index
    %c0_122 = arith.constant 0 : index
    %178 = vector.load %arg3[%c3_120, %c0_121, %c0_122] : memref<8x128x32xf32, #tpu.memory_space<vmem>>, vector<1x128x32xf32>
    %179 = vector.shape_cast %178 : vector<1x128x32xf32> to vector<128x32xf32>
    %cst_123 = arith.constant dense<0.000000e+00> : vector<1x32xf32>
    %180 = tpu.matmul %177, %179, %cst_123 {dimension_numbers = #tpu.dot_dimension_numbers<[1], [0], [0], [1], [0, 0, 1, 1], [], []>} : vector<1x128xf32>, vector<128x32xf32>, vector<1x32xf32> -> vector<1x32xf32>
    %c3_124 = arith.constant 3 : index
    %c128_125 = arith.constant 128 : index
    %181 = vector.load %arg6[%c3_124, %c128_125] : memref<8x160xf32, #tpu.memory_space<vmem>>, vector<1x32xf32>
    tpu.vector_store %arg6[%c3_124, %c128_125], %180 {strides = array<i32>} : memref<8x160xf32, #tpu.memory_space<vmem>>, vector<1x32xf32>,
    %c4_126 = arith.constant 4 : index
    %c0_127 = arith.constant 0 : index
    %182 = vector.load %arg8[%c4_126, %c0_127] : memref<8x128xf32, #tpu.memory_space<vmem>>, vector<1x128xf32>
    %c4_128 = arith.constant 4 : index
    %c0_129 = arith.constant 0 : index
    %c0_130 = arith.constant 0 : index
    %183 = vector.load %arg3[%c4_128, %c0_129, %c0_130] : memref<8x128x32xf32, #tpu.memory_space<vmem>>, vector<1x128x32xf32>
    %184 = vector.shape_cast %183 : vector<1x128x32xf32> to vector<128x32xf32>
    %cst_131 = arith.constant dense<0.000000e+00> : vector<1x32xf32>
    %185 = tpu.matmul %182, %184, %cst_131 {dimension_numbers = #tpu.dot_dimension_numbers<[1], [0], [0], [1], [0, 0, 1, 1], [], []>} : vector<1x128xf32>, vector<128x32xf32>, vector<1x32xf32> -> vector<1x32xf32>
    %c4_132 = arith.constant 4 : index
    %c128_133 = arith.constant 128 : index
    %186 = vector.load %arg6[%c4_132, %c128_133] : memref<8x160xf32, #tpu.memory_space<vmem>>, vector<1x32xf32>
    tpu.vector_store %arg6[%c4_132, %c128_133], %185 {strides = array<i32>} : memref<8x160xf32, #tpu.memory_space<vmem>>, vector<1x32xf32>,
    %c5_134 = arith.constant 5 : index
    %c0_135 = arith.constant 0 : index
    %187 = vector.load %arg8[%c5_134, %c0_135] : memref<8x128xf32, #tpu.memory_space<vmem>>, vector<1x128xf32>
    %c5_136 = arith.constant 5 : index
    %c0_137 = arith.constant 0 : index
    %c0_138 = arith.constant 0 : index
    %188 = vector.load %arg3[%c5_136, %c0_137, %c0_138] : memref<8x128x32xf32, #tpu.memory_space<vmem>>, vector<1x128x32xf32>
    %189 = vector.shape_cast %188 : vector<1x128x32xf32> to vector<128x32xf32>
    %cst_139 = arith.constant dense<0.000000e+00> : vector<1x32xf32>
    %190 = tpu.matmul %187, %189, %cst_139 {dimension_numbers = #tpu.dot_dimension_numbers<[1], [0], [0], [1], [0, 0, 1, 1], [], []>} : vector<1x128xf32>, vector<128x32xf32>, vector<1x32xf32> -> vector<1x32xf32>
    %c5_140 = arith.constant 5 : index
    %c128_141 = arith.constant 128 : index
    %191 = vector.load %arg6[%c5_140, %c128_141] : memref<8x160xf32, #tpu.memory_space<vmem>>, vector<1x32xf32>
    tpu.vector_store %arg6[%c5_140, %c128_141], %190 {strides = array<i32>} : memref<8x160xf32, #tpu.memory_space<vmem>>, vector<1x32xf32>,
    %c6_142 = arith.constant 6 : index
    %c0_143 = arith.constant 0 : index
    %192 = vector.load %arg8[%c6_142, %c0_143] : memref<8x128xf32, #tpu.memory_space<vmem>>, vector<1x128xf32>
    %c6_144 = arith.constant 6 : index
    %c0_145 = arith.constant 0 : index
    %c0_146 = arith.constant 0 : index
    %193 = vector.load %arg3[%c6_144, %c0_145, %c0_146] : memref<8x128x32xf32, #tpu.memory_space<vmem>>, vector<1x128x32xf32>
    %194 = vector.shape_cast %193 : vector<1x128x32xf32> to vector<128x32xf32>
    %cst_147 = arith.constant dense<0.000000e+00> : vector<1x32xf32>
    %195 = tpu.matmul %192, %194, %cst_147 {dimension_numbers = #tpu.dot_dimension_numbers<[1], [0], [0], [1], [0, 0, 1, 1], [], []>} : vector<1x128xf32>, vector<128x32xf32>, vector<1x32xf32> -> vector<1x32xf32>
    %c6_148 = arith.constant 6 : index
    %c128_149 = arith.constant 128 : index
    %196 = vector.load %arg6[%c6_148, %c128_149] : memref<8x160xf32, #tpu.memory_space<vmem>>, vector<1x32xf32>
    tpu.vector_store %arg6[%c6_148, %c128_149], %195 {strides = array<i32>} : memref<8x160xf32, #tpu.memory_space<vmem>>, vector<1x32xf32>,
    %c7_150 = arith.constant 7 : index
    %c0_151 = arith.constant 0 : index
    %197 = vector.load %arg8[%c7_150, %c0_151] : memref<8x128xf32, #tpu.memory_space<vmem>>, vector<1x128xf32>
    %c7_152 = arith.constant 7 : index
    %c0_153 = arith.constant 0 : index
    %c0_154 = arith.constant 0 : index
    %198 = vector.load %arg3[%c7_152, %c0_153, %c0_154] : memref<8x128x32xf32, #tpu.memory_space<vmem>>, vector<1x128x32xf32>
    %199 = vector.shape_cast %198 : vector<1x128x32xf32> to vector<128x32xf32>
    %cst_155 = arith.constant dense<0.000000e+00> : vector<1x32xf32>
    %200 = tpu.matmul %197, %199, %cst_155 {dimension_numbers = #tpu.dot_dimension_numbers<[1], [0], [0], [1], [0, 0, 1, 1], [], []>} : vector<1x128xf32>, vector<128x32xf32>, vector<1x32xf32> -> vector<1x32xf32>
    %c7_156 = arith.constant 7 : index
    %c128_157 = arith.constant 128 : index
    %201 = vector.load %arg6[%c7_156, %c128_157] : memref<8x160xf32, #tpu.memory_space<vmem>>, vector<1x32xf32>
    tpu.vector_store %arg6[%c7_156, %c128_157], %200 {strides = array<i32>} : memref<8x160xf32, #tpu.memory_space<vmem>>, vector<1x32xf32>,
    return
  }
  func.func @transform_0(%arg0: i32) -> (i32, i32) {
    %c0_i32 = arith.constant 0 : i32
    %c0_i32_0 = arith.constant 0 : i32
    return %arg0, %c0_i32 : i32, i32
  }
  func.func @transform_1(%arg0: i32) -> (i32, i32) {
    %c0_i32 = arith.constant 0 : i32
    %c0_i32_0 = arith.constant 0 : i32
    return %arg0, %c0_i32 : i32, i32
  }
  func.func @transform_2(%arg0: i32) -> (i32, i32, i32) {
    %c0_i32 = arith.constant 0 : i32
    %c0_i32_0 = arith.constant 0 : i32
    %c0_i32_1 = arith.constant 0 : i32
    return %arg0, %c0_i32, %c0_i32_0 : i32, i32, i32
  }
  func.func @transform_3(%arg0: i32) -> (i32, i32) {
    %c0_i32 = arith.constant 0 : i32
    %c0_i32_0 = arith.constant 0 : i32
    %c0_i32_1 = arith.constant 0 : i32
    return %c0_i32, %c0_i32_0 : i32, i32
  }
  func.func @transform_4(%arg0: i32) -> (i32, i32) {
    %c0_i32 = arith.constant 0 : i32
    %c0_i32_0 = arith.constant 0 : i32
    %c0_i32_1 = arith.constant 0 : i32
    return %c0_i32, %c0_i32_0 : i32, i32
  }
  func.func @transform_5(%arg0: i32) -> (i32, i32) {
    %c0_i32 = arith.constant 0 : i32
    %c0_i32_0 = arith.constant 0 : i32
    return %arg0, %c0_i32 : i32, i32
  }
}

</mosaic_0001>

<bundles_post_ra>
// kernel: head_forward.1
= control target key start
LH: loop header
LB: loop body
LE: loop exit
PB: predicated region body
PF: predicated region fallthrough
CT: control target
= control target key end

     0   :  { %s4791_s18 = smov 0   ;;  %s9044_s0 = inlined_call_operand.vmem [shape: f32[16,64], index: 0, kind: input, shape index: {}]   ;;  %s9045_s1 = inlined_call_operand.vmem [shape: f32[16,128], index: 1, kind: input, shape index: {}]   ;;  %s9046_s2 = inlined_call_operand.vmem [shape: f32[16,128,32], index: 2, kind: input, shape index: {}]   ;;  %s9047_s3 = inlined_call_operand.vmem [shape: f32[64,38], index: 3, kind: input, shape index: {}]   ;;  %s9048_s4 = inlined_call_operand.vmem [shape: f32[1,38], index: 4, kind: input, shape index: {}]   ;;  %s9049_s5 = inlined_call_operand.vmem [shape: f32[16,160], index: 5, kind: output, shape index: {}]  }
   0x1 LB: > { %s4059_s19 = sadd.s32 4294967295, %s4750_s18   ;;  %p4063_p0 = scmp.ge.s32.totalorder %s4750_s18, 1  ;;  %s4750_s18 = sphi %s4791_s18, %s15_s18  }
   0x2   : > { %p207_p1 = scmp.lt.s32.totalorder %s4750_s18, 3 }
   0x4   : > { %p208_p2 = pnand %p4063_p0, %p207_p1 }
   0x6   : > { %211 = sbr.rel (%p208_p2) target bundleno = 1317 (0x525), region = 40 }
   0xb   : > { %v401_v0 = vld [vmem:[%s9047_s3 + $0x38] sm:$0xff]  ;;  %v400_v1 = vld [vmem:[%s9047_s3 + $0x30] sm:$0xff]  ;;  %s4066_s24 = sshll.u32 %s4059_s19, 3  ;;  %p244_p3 = scmp.lt.s32.totalorder %s4059_s19, 1  ;;  %v399_v2 = vld [vmem:[%s9047_s3 + $0x28] sm:$0xff]  ;;  %vm9053_vm0 = vcmask 261120  }
   0xc   : > { %418 = vmatpush.msra.mxu0 %v401_v0  ;;  %p253_p4 = scmp.lt.s32.totalorder %s4066_s24, 15  ;;  %v398_v3 = vld [vmem:[%s9047_s3 + $0x20] sm:$0xff]  ;;  %v397_v4 = vld [vmem:[%s9047_s3 + $0x18] sm:$0xff]  ;;  %v396_v8 = vld [vmem:[%s9047_s3 + $0x10] sm:$0xff]  ;;  %vm406_vm1 = vcmask 523264   ;;  %vm467_vm2 = vcmask 302352  }
   0xd   : > { %s9406_s19 = smov (!%p244_p3, %s4059_s19), 1  ;;  %v395_v12 = vld [vmem:[%s9047_s3 + $0x8] sm:$0xff]  ;;  %v394_v22 = vld [vmem:[%s9047_s3] sm:$0xff]  ;;  %vm9050_vm13 = vcmask 130112   ;;  %s4759_s28 = smov 1  }
   0xe   : > { %419 = vmatpush.msra.mxu0 %v400_v1  ;;  %s9408_s24 = smov (!%p253_p4, %s4066_s24), 15  ;;  %s4064_s10 = sshll.u32 %s9406_s19, 3 }
   0xf   : > { %s4435_s29 = sshll.u32 %s9408_s24, 7  ;;  %s247_s17 = scalar_lea.vmem %s9044_s0, %s4064_s10 }
  0x10   : > { %420 = vmatpush.msra.mxu0 %v399_v2  ;;  %s4819_s9 = scalar_lea.vmem %s9046_s2, %s4435_s29  ;;  %v264_v24 = vld [vmem:[%s247_s17] sm:$0xff]  ;;  %s4752_s24 = smov 94  }
  0x11   : > { %v4822_v5 = vld [vmem:[%s4819_s9 + $0x80] sm:$0xff]  ;;  %v4844_v13 = vld [vmem:[%s4819_s9 + $0x10] sm:$0xff]  ;;  %v4855_v17 = vld [vmem:[%s4819_s9 + $0x8] sm:$0xff]  ;;  %s251_s27 = scalar_lea.vmem %s9045_s1, %s4064_s10  ;;  %s4760_s29 = smov 127  }
  0x12   : > { %421 = vmatpush.msra.mxu0 %v398_v3  ;;  %v4825_v6 = vld [vmem:[%s4819_s9] sm:$0xff]  ;;  %v1251_v9 = vmul.f32 %v4822_v5, %v4822_v5  ;;  %v516_v19 = vld [vmem:[%s4819_s9 + $0x78] sm:$0xff]  ;;  %v1237_v23 = vmul.f32 %v4844_v13, %v4844_v13  ;;  %v1236_v25 = vmul.f32 %v4855_v17, %v4855_v17  ;;  %v515_v28 = vld [vmem:[%s4819_s9 + $0x70] sm:$0xff]  ;;  %s4436_s30 = sshll.u32 %s9406_s19, 4 }
  0x13   : > { %v4828_v7 = vld [vmem:[%s4819_s9 + $0x100] sm:$0xff]  ;;  %v1235_v10 = vmul.f32 %v4825_v6, %v4825_v6  ;;  %v4105_v20 = vld [vmem:[%s4819_s9 + $0xf8] sm:$0xff]  ;;  %4073 = vmatpush.xpose.msk.msra.mxu1 %vm9053_vm0, %v516_v19  ;;  %v4104_v29 = vld [vmem:[%s4819_s9 + $0xf0] sm:$0xff]  ;;  %s9005_s7 = scalar_lea.vmem %s9049_s5, %s4436_s30 }
  0x14   : > { %v1267_v11 = vmul.f32 %v4828_v7, %v4828_v7  ;;  %422 = vmatpush.msra.mxu0 %v397_v4  ;;  %v1411_v14 = vsel %vm9053_vm0, %v1251_v9, 0.0  ;;  %v330_v18 = vld [vmem:[%s4819_s9 + $0x200] sm:$0xff]  ;;  %v4138_v21 = vld [vmem:[%s4819_s9 + $0x178] sm:$0xff]  ;;  %4106 = vmatpush.xpose.msk.msra.mxu2 %vm9053_vm0, %v4105_v20  ;;  %v4137_v30 = vld [vmem:[%s4819_s9 + $0x170] sm:$0xff]  ;;  %v1369_v31 = vsel %vm9053_vm0, %v1237_v23, 0.0  ;;  %v1366_v32 = vsel %vm9053_vm0, %v1236_v25, 0.0 }
  0x15   : > { %v1363_v15 = vsel %vm9053_vm0, %v1235_v10, 0.0  ;;  %1412 = vadd.xlane.f32.xlu1 %v1411_v14  ;;  %v1299_v26 = vmul.f32 %v330_v18, %v330_v18  ;;  %4139 = vmatpush.xpose.msk.msra.mxu3 %vm9053_vm0, %v4138_v21  ;;  %v4171_v27 = vld [vmem:[%s4819_s9 + $0x1f8] sm:$0xff]  ;;  %v4879_v34 = vld [vmem:[%s4819_s9 + $0x108] sm:$0xff]  ;;  %v4170_v37 = vld [vmem:[%s4819_s9 + $0x1f0] sm:$0xff] }
  0x16   : > { %v1459_v16 = vsel %vm9053_vm0, %v1267_v11, 0.0  ;;  %423 = vmatpush.msra.mxu0 %v396_v8  ;;  %1364 = vadd.xlane.f32.xlu2 %v1363_v15  ;;  %v4882_v35 = vld [vmem:[%s4819_s9 + $0x88] sm:$0xff]  ;;  %v1268_v41 = vmul.f32 %v4879_v34, %v4879_v34  ;;  %v513_v45 = vld [vmem:[%s4819_s9 + $0x60] sm:$0xff]  ;;  %v4913_v51 = vld [vmem:[%s4819_s9 + $0x98] sm:$0xff] }
  0x17   : > { %1460 = vadd.xlane.f32.xlu0 %v1459_v16  ;;  %v1555_v33 = vsel %vm9053_vm0, %v1299_v26, 0.0  ;;  %4074 = vmatpush.xpose.msk.msra.mxu1 %vm9053_vm0, %v515_v28  ;;  %v4887_v36 = vld [vmem:[%s4819_s9 + $0xa8] sm:$0xff]  ;;  %v1252_v42 = vmul.f32 %v4882_v35, %v4882_v35  ;;  %v4102_v46 = vld [vmem:[%s4819_s9 + $0xe0] sm:$0xff]  ;;  %v4916_v52 = vld [vmem:[%s4819_s9 + $0x90] sm:$0xff]  ;;  %v1254_v58 = vmul.f32 %v4913_v51, %v4913_v51 }
  0x18   : > { %424 = vmatpush.msra.mxu0 %v395_v12  ;;  %4107 = vmatpush.xpose.msk.msra.mxu2 %vm9053_vm0, %v4104_v29  ;;  %v514_v38 = vld [vmem:[%s4819_s9 + $0x68] sm:$0xff]  ;;  %v1256_v43 = vmul.f32 %v4887_v36, %v4887_v36  ;;  %v4135_v47 = vld [vmem:[%s4819_s9 + $0x160] sm:$0xff]  ;;  %v1462_v48 = vsel %vm9053_vm0, %v1268_v41, 0.0  ;;  %v4921_v53 = vld [vmem:[%s4819_s9 + $0x210] sm:$0xff]  ;;  %v1253_v59 = vmul.f32 %v4916_v52, %v4916_v52 }
  0x19   : > { %4140 = vmatpush.xpose.msk.msra.mxu3 %vm9053_vm0, %v4137_v30  ;;  %v4103_v39 = vld [vmem:[%s4819_s9 + $0xe8] sm:$0xff]  ;;  %v1414_v49 = vsel %vm9053_vm0, %v1252_v42, 0.0  ;;  %v4168_v54 = vld [vmem:[%s4819_s9 + $0x1e0] sm:$0xff]  ;;  %v512_v55 = vld [vmem:[%s4819_s9 + $0x58] sm:$0xff]  ;;  %v1301_v60 = vmul.f32 %v4921_v53, %v4921_v53  ;;  %v1420_v1 = vsel %vm9053_vm0, %v1254_v58, 0.0 }
  0x1a   : > { %425 = vmatpush.msra.mxu0 %v394_v22  ;;  %v4136_v40 = vld [vmem:[%s4819_s9 + $0x168] sm:$0xff]  ;;  %v1426_v50 = vsel %vm9053_vm0, %v1256_v43, 0.0  ;;  %v4101_v56 = vld [vmem:[%s4819_s9 + $0xd8] sm:$0xff]  ;;  %v511_v62 = vld [vmem:[%s4819_s9 + $0x50] sm:$0xff]  ;;  %v1417_v2 = vsel %vm9053_vm0, %v1253_v59, 0.0 }
  0x1b   : > { %4071 = vmatmul.msk.f32.vlgmr.msra.gmra.mxu0 %vm406_vm1, %v264_v24  ;;  %4075 = vmatpush.xpose.msk.msra.mxu1 %vm9053_vm0, %v514_v38  ;;  %v4169_v44 = vld [vmem:[%s4819_s9 + $0x1e8] sm:$0xff]  ;;  %v4134_v57 = vld [vmem:[%s4819_s9 + $0x158] sm:$0xff]  ;;  %v4100_v63 = vld [vmem:[%s4819_s9 + $0xd0] sm:$0xff]  ;;  %v1561_v3 = vsel %vm9053_vm0, %v1301_v60, 0.0 }
  0x1c   : > { %4172 = vmatpush.xpose.msk.msrb.mxu0 %vm9053_vm0, %v4171_v27  ;;  %4108 = vmatpush.xpose.msk.msra.mxu2 %vm9053_vm0, %v4103_v39  ;;  %v4167_v61 = vld [vmem:[%s4819_s9 + $0x1d8] sm:$0xff]  ;;  %v4133_v0 = vld [vmem:[%s4819_s9 + $0x150] sm:$0xff]  ;;  %v4947_v4 = vld [vmem:[%s4819_s9 + $0x180] sm:$0xff] }
  0x1d   : > { %1370 = vadd.xlane.f32.xlu1 %v1369_v31  ;;  %4141 = vmatpush.xpose.msk.msra.mxu3 %vm9053_vm0, %v4136_v40  ;;  %v4950_v8 = vld [vmem:[%s4819_s9 + $0x18] sm:$0xff]  ;;  %v272_v9 = vld [vmem:[%s4819_s9 + $0x30] sm:$0xff]  ;;  %v510_v11 = vld [vmem:[%s4819_s9 + $0x48] sm:$0xff]  ;;  %v1283_v15 = vmul.f32 %v4947_v4, %v4947_v4 }
  0x1e   : > { %1367 = vadd.xlane.f32.xlu2 %v1366_v32  ;;  %v4166_v10 = vld [vmem:[%s4819_s9 + $0x1d0] sm:$0xff]  ;;  %v4099_v12 = vld [vmem:[%s4819_s9 + $0xc8] sm:$0xff]  ;;  %v1238_v16 = vmul.f32 %v4950_v8, %v4950_v8  ;;  %v1241_v18 = vmul.f32 %v272_v9, %v272_v9  ;;  %v4971_v20 = vld [vmem:[%s4819_s9 + $0x40] sm:$0xff] }
  0x1f   : > { %1556 = vadd.xlane.f32.xlu0 %v1555_v33  ;;  %4076 = vmatpush.xpose.msk.msra.mxu1 %vm9053_vm0, %v513_v45  ;;  %v4132_v14 = vld [vmem:[%s4819_s9 + $0x148] sm:$0xff]  ;;  %v4974_v21 = vld [vmem:[%s4819_s9 + $0xc0] sm:$0xff]  ;;  %v1507_v23 = vsel %vm9053_vm0, %v1283_v15, 0.0  ;;  %v4982_v27 = vld [vmem:[%s4819_s9 + $0x110] sm:$0xff] }
  0x20   : > { %4173 = vmatpush.xpose.msk.msrb.mxu0 %vm9053_vm0, %v4170_v37  ;;  %4109 = vmatpush.xpose.msk.msra.mxu2 %vm9053_vm0, %v4102_v46  ;;  %v4165_v19 = vld [vmem:[%s4819_s9 + $0x1c8] sm:$0xff]  ;;  %v4131_v22 = vld [vmem:[%s4819_s9 + $0x140] sm:$0xff]  ;;  %v1372_v24 = vsel %vm9053_vm0, %v1238_v16, 0.0  ;;  %v1381_v25 = vsel %vm9053_vm0, %v1241_v18, 0.0  ;;  %v4993_v30 = vld [vmem:[%s4819_s9 + $0x38] sm:$0xff]  ;;  %v1269_v33 = vmul.f32 %v4982_v27, %v4982_v27 }
  0x21   : > { %4142 = vmatpush.xpose.msk.msra.mxu3 %vm9053_vm0, %v4135_v47  ;;  %v270_v26 = vld [vmem:[%s4819_s9 + $0x20] sm:$0xff]  ;;  %v4996_v31 = vld [vmem:[%s4819_s9 + $0x138] sm:$0xff]  ;;  %v5009_v40 = vld [vmem:[%s4819_s9 + $0xb0] sm:$0xff] }
  0x22   : > { %v318_v28 = vld [vmem:[%s4819_s9 + $0x1a0] sm:$0xff]  ;;  %v1239_v32 = vmul.f32 %v270_v26, %v270_v26  ;;  %v4097_v38 = vld [vmem:[%s4819_s9 + $0xb8] sm:$0xff]  ;;  %v5012_v41 = vld [vmem:[%s4819_s9 + $0x130] sm:$0xff]  ;;  %v1465_v43 = vsel %vm9053_vm0, %v1269_v33, 0.0 }
  0x23   : > { %4077 = vmatpush.xpose.msk.msra.mxu1 %vm9053_vm0, %v512_v55  ;;  %v4164_v29 = vld [vmem:[%s4819_s9 + $0x1c0] sm:$0xff]  ;;  %v1287_v37 = vmul.f32 %v318_v28, %v318_v28  ;;  %v4163_v39 = vld [vmem:[%s4819_s9 + $0x1b8] sm:$0xff]  ;;  %v5019_v46 = vld [vmem:[%s4819_s9 + $0x188] sm:$0xff] }
  0x24   : > { %4174 = vmatpush.xpose.msk.msrb.mxu0 %vm9053_vm0, %v4169_v44  ;;  %4110 = vmatpush.xpose.msk.msra.mxu2 %vm9053_vm0, %v4101_v56  ;;  %v1375_v42 = vsel %vm9053_vm0, %v1239_v32, 0.0  ;;  %v301_v45 = vld [vmem:[%s4819_s9 + $0x118] sm:$0xff]  ;;  %v5024_v47 = vld [vmem:[%s4819_s9 + $0x300] sm:$0xff]  ;;  %v1284_v55 = vmul.f32 %v5019_v46, %v5019_v46  ;;  %v4268_v32 = vld [vmem:[%s4819_s9 + $0x368] sm:$0xff] }
  0x25   : > { %1463 = vadd.xlane.f32.xlu1 %v1462_v48  ;;  %4143 = vmatpush.xpose.msk.msra.mxu3 %vm9053_vm0, %v4134_v57  ;;  %v1519_v44 = vsel %vm9053_vm0, %v1287_v37, 0.0  ;;  %v5031_v48 = vld [vmem:[%s4819_s9 + $0x1b0] sm:$0xff]  ;;  %v1331_v56 = vmul.f32 %v5024_v47, %v5024_v47  ;;  %v5052_v57 = vld [vmem:[%s4819_s9 + $0x1a8] sm:$0xff]  ;;  %v5107_v18 = vld [vmem:[%s4819_s9 + $0x280] sm:$0xff]  ;;  %v1257_v37 = vmul.f32 %v5009_v40, %v5009_v40 }
  0x26   : > { %1415 = vadd.xlane.f32.xlu2 %v1414_v49  ;;  %v5034_v49 = vld [vmem:[%s4819_s9 + $0x28] sm:$0xff]  ;;  %v1510_v59 = vsel %vm9053_vm0, %v1284_v55, 0.0 }
  0x27   : > { %1427 = vadd.xlane.f32.xlu0 %v1426_v50  ;;  %4078 = vmatpush.xpose.msk.msra.mxu1 %vm9053_vm0, %v511_v62  ;;  %v5037_v50 = vld [vmem:[%s4819_s9 + $0x128] sm:$0xff]  ;;  %v1651_v60 = vsel %vm9053_vm0, %v1331_v56, 0.0  ;;  %v286_v62 = vld [vmem:[%s4819_s9 + $0xa0] sm:$0xff] }
  0x28   : > { %4175 = vmatpush.xpose.msk.msrb.mxu0 %vm9053_vm0, %v4168_v54  ;;  %4111 = vmatpush.xpose.msk.msra.mxu2 %vm9053_vm0, %v4100_v63  ;;  %v1270_v54 = vmul.f32 %v301_v45, %v301_v45  ;;  %v302_v63 = vld [vmem:[%s4819_s9 + $0x120] sm:$0xff]  ;;  %v4301_v33 = vld [vmem:[%s4819_s9 + $0x3e8] sm:$0xff] }
  0x29   : > { %4144 = vmatpush.xpose.msk.msra.mxu3 %vm9053_vm0, %v4133_v0  ;;  %v1255_v0 = vmul.f32 %v286_v62, %v286_v62  ;;  %v5174_v55 = vld [vmem:[%s4819_s9 + $0x288] sm:$0xff] }
  0x2a   : > { %v1468_v58 = vsel %vm9053_vm0, %v1270_v54, 0.0  ;;  %v5170_v54 = vld [vmem:[%s4819_s9 + $0x218] sm:$0xff]  ;;  %v5177_v56 = vld [vmem:[%s4819_s9 + $0x228] sm:$0xff] }
  0x2b   : > { %4079 = vmatpush.xpose.msk.msra.mxu1 %vm9053_vm0, %v510_v11  ;;  %v5087_v11 = vld [vmem:[%s4819_s9 + $0x220] sm:$0xff] }
  0x2c   : > { %4176 = vmatpush.xpose.msk.msrb.mxu0 %vm9053_vm0, %v4167_v61  ;;  %4112 = vmatpush.xpose.msk.msra.mxu2 %vm9053_vm0, %v4099_v12  ;;  %v5058_v61 = vld [vmem:[%s4819_s9 + $0x208] sm:$0xff] }
  0x2d   : > { %1421 = vadd.xlane.f32.xlu1 %v1420_v1  ;;  %4145 = vmatpush.xpose.msk.msra.mxu3 %vm9053_vm0, %v4132_v14  ;;  %v1258_v1 = vmul.f32 %v4097_v38, %v4097_v38  ;;  %v4204_v14 = vld [vmem:[%s4819_s9 + $0x278] sm:$0xff] }
  0x2e   : > { %1418 = vadd.xlane.f32.xlu2 %v1417_v2  ;;  %v5076_v2 = vld [vmem:[%s4819_s9 + $0x198] sm:$0xff] }
  0x2f   : > { %1562 = vadd.xlane.f32.xlu0 %v1561_v3  ;;  %4080 = vmatpush.xpose.msk.msra.mxu1 %vm9053_vm0, %v4971_v20 }
  0x30   : > { %4177 = vmatpush.xpose.msk.msrb.mxu0 %vm9053_vm0, %v4166_v10  ;;  %4113 = vmatpush.xpose.msk.msra.mxu2 %vm9053_vm0, %v4974_v21  ;;  %v1432_v10 = vsel %vm9053_vm0, %v1258_v1, 0.0  ;;  %v4232_v1 = vld [vmem:[%s4819_s9 + $0x2d0] sm:$0xff] }
  0x31   : > { %4146 = vmatpush.xpose.msk.msra.mxu3 %vm9053_vm0, %v4131_v22  ;;  %v4203_v22 = vld [vmem:[%s4819_s9 + $0x270] sm:$0xff] }
  0x33   : > { %4081 = vmatpush.xpose.msk.msra.mxu1 %vm9053_vm0, %v4993_v30 }
  0x34   : > { %4178 = vmatpush.xpose.msk.msrb.mxu0 %vm9053_vm0, %v4165_v19  ;;  %4114 = vmatpush.xpose.msk.msra.mxu2 %vm9053_vm0, %v4097_v38  ;;  %v4303_v19 = vld [vmem:[%s4819_s9 + $0x3f8] sm:$0xff]  ;;  %v4201_v38 = vld [vmem:[%s4819_s9 + $0x260] sm:$0xff] }
  0x35   : > { %1508 = vadd.xlane.f32.xlu1 %v1507_v23  ;;  %4147 = vmatpush.xpose.msk.msra.mxu3 %vm9053_vm0, %v4996_v31  ;;  %v4236_v23 = vld [vmem:[%s4819_s9 + $0x2f0] sm:$0xff] }
  0x36   : > { %1373 = vadd.xlane.f32.xlu2 %v1372_v24  ;;  %v4269_v24 = vld [vmem:[%s4819_s9 + $0x370] sm:$0xff] }
  0x37   : > { %1382 = vadd.xlane.f32.xlu0 %v1381_v25  ;;  %4082 = vmatpush.xpose.msk.msra.mxu1 %vm9053_vm0, %v272_v9  ;;  %v1423_v9 = vsel %vm9053_vm0, %v1255_v0, 0.0  ;;  %v4302_v25 = vld [vmem:[%s4819_s9 + $0x3f0] sm:$0xff]  ;;  %v1304_v0 = vmul.f32 %v5177_v56, %v5177_v56 }
  0x38   : > { %4179 = vmatpush.xpose.msk.msrb.mxu0 %vm9053_vm0, %v4164_v29  ;;  %4115 = vmatpush.xpose.msk.msra.mxu2 %vm9053_vm0, %v5009_v40  ;;  %v4235_v29 = vld [vmem:[%s4819_s9 + $0x2e8] sm:$0xff]  ;;  %v4267_v40 = vld [vmem:[%s4819_s9 + $0x360] sm:$0xff] }
  0x39   : > { %4148 = vmatpush.xpose.msk.msra.mxu3 %vm9053_vm0, %v5012_v41 }
  0x3b   : > { %4083 = vmatpush.xpose.msk.msra.mxu1 %vm9053_vm0, %v5034_v49 }
  0x3c   : > { %4180 = vmatpush.xpose.msk.msrb.mxu0 %vm9053_vm0, %v4163_v39  ;;  %4116 = vmatpush.xpose.msk.msra.mxu2 %vm9053_vm0, %v4887_v36  ;;  %v1300_v36 = vmul.f32 %v5058_v61, %v5058_v61  ;;  %v1286_v39 = vmul.f32 %v5076_v2, %v5076_v2 }
  0x3d   : > { %1376 = vadd.xlane.f32.xlu1 %v1375_v42  ;;  %4149 = vmatpush.xpose.msk.msra.mxu3 %vm9053_vm0, %v5037_v50  ;;  %v1259_v42 = vmul.f32 %v4974_v21, %v4974_v21 }
  0x3e   : > { %1466 = vadd.xlane.f32.xlu2 %v1465_v43  ;;  %v1558_v3 = vsel %vm9053_vm0, %v1300_v36, 0.0  ;;  %v4234_v43 = vld [vmem:[%s4819_s9 + $0x2e0] sm:$0xff]  ;;  %v1316_v36 = vmul.f32 %v5174_v55, %v5174_v55 }
  0x3f   : > { %1520 = vadd.xlane.f32.xlu0 %v1519_v44  ;;  %4084 = vmatpush.xpose.msk.msra.mxu1 %vm9053_vm0, %v270_v26  ;;  %v4300_v44 = vld [vmem:[%s4819_s9 + $0x3e0] sm:$0xff]  ;;  %v1435_v21 = vsel %vm9053_vm0, %v1259_v42, 0.0  ;;  %v4293_v42 = vld [vmem:[%s4819_s9 + $0x3a8] sm:$0xff] }
  0x40   : > { %4181 = vmatpush.xpose.msk.msrb.mxu0 %vm9053_vm0, %v5031_v48  ;;  %4117 = vmatpush.xpose.msk.msra.mxu2 %vm9053_vm0, %v286_v62  ;;  %v1302_v62 = vmul.f32 %v5170_v54, %v5170_v54 }
  0x41   : > { %4150 = vmatpush.xpose.msk.msra.mxu3 %vm9053_vm0, %v302_v63 }
  0x43   : > { %4085 = vmatpush.xpose.msk.msra.mxu1 %vm9053_vm0, %v4950_v8  ;;  %v316_v8 = vld [vmem:[%s4819_s9 + $0x190] sm:$0xff] }
  0x44   : > { %4182 = vmatpush.xpose.msk.msrb.mxu0 %vm9053_vm0, %v5052_v57  ;;  %4118 = vmatpush.xpose.msk.msra.mxu2 %vm9053_vm0, %v4913_v51  ;;  %v1271_v51 = vmul.f32 %v302_v63, %v302_v63  ;;  %v1285_v12 = vmul.f32 %v316_v8, %v316_v8  ;;  %v4199_v63 = vld [vmem:[%s4819_s9 + $0x250] sm:$0xff] }
  0x45   : > { %1469 = vadd.xlane.f32.xlu1 %v1468_v58  ;;  %4151 = vmatpush.xpose.msk.msra.mxu3 %vm9053_vm0, %v301_v45  ;;  %v1429_v45 = vsel %vm9053_vm0, %v1257_v37, 0.0  ;;  %v4233_v58 = vld [vmem:[%s4819_s9 + $0x2d8] sm:$0xff] }
  0x46   : > { %1511 = vadd.xlane.f32.xlu2 %v1510_v59  ;;  %v1513_v15 = vsel %vm9053_vm0, %v1285_v12, 0.0  ;;  %v4266_v59 = vld [vmem:[%s4819_s9 + $0x358] sm:$0xff]  ;;  %v5204_v12 = vld [vmem:[%s4819_s9 + $0x308] sm:$0xff] }
  0x47   : > { %1652 = vadd.xlane.f32.xlu0 %v1651_v60  ;;  %4086 = vmatpush.xpose.msk.msra.mxu1 %vm9053_vm0, %v4844_v13  ;;  %v1303_v13 = vmul.f32 %v5087_v11, %v5087_v11  ;;  %v4299_v60 = vld [vmem:[%s4819_s9 + $0x3d8] sm:$0xff] }
  0x48   : > { %4183 = vmatpush.xpose.msk.msrb.mxu0 %vm9053_vm0, %v318_v28  ;;  %4119 = vmatpush.xpose.msk.msra.mxu2 %vm9053_vm0, %v4916_v52  ;;  %v1471_v52 = vsel %vm9053_vm0, %v1271_v51, 0.0  ;;  %v1570_v51 = vsel %vm9053_vm0, %v1304_v0, 0.0  ;;  %v349_v37 = vld [vmem:[%s4819_s9 + $0x298] sm:$0xff] }
  0x49   : > { %4152 = vmatpush.xpose.msk.msra.mxu3 %vm9053_vm0, %v4982_v27  ;;  %v1567_v16 = vsel %vm9053_vm0, %v1303_v13, 0.0  ;;  %v4202_v27 = vld [vmem:[%s4819_s9 + $0x268] sm:$0xff] }
  0x4a   : > { %v4231_v13 = vld [vmem:[%s4819_s9 + $0x2c8] sm:$0xff] }
  0x4b   : > { %4087 = vmatpush.xpose.msk.msra.mxu1 %vm9053_vm0, %v4855_v17  ;;  %v5114_v17 = vld [vmem:[%s4819_s9 + $0x380] sm:$0xff] }
  0x4c   : > { %4184 = vmatpush.xpose.msk.msrb.mxu0 %vm9053_vm0, %v5076_v2  ;;  %4120 = vmatpush.xpose.msk.msra.mxu2 %vm9053_vm0, %v4882_v35  ;;  %v4270_v35 = vld [vmem:[%s4819_s9 + $0x378] sm:$0xff]  ;;  %v4265_v2 = vld [vmem:[%s4819_s9 + $0x350] sm:$0xff] }
  0x4d   : > { %1559 = vadd.xlane.f32.xlu1 %v1558_v3  ;;  %4153 = vmatpush.xpose.msk.msra.mxu3 %vm9053_vm0, %v4879_v34  ;;  %v4237_v34 = vld [vmem:[%s4819_s9 + $0x2f8] sm:$0xff]  ;;  %v4298_v3 = vld [vmem:[%s4819_s9 + $0x3d0] sm:$0xff] }
  0x4e   : > { %1424 = vadd.xlane.f32.xlu2 %v1423_v9  ;;  %v1564_v9 = vsel %vm9053_vm0, %v1302_v62, 0.0 }
  0x4f   : > { %1433 = vadd.xlane.f32.xlu0 %v1432_v10  ;;  %4088 = vmatpush.xpose.msk.msra.mxu1 %vm9053_vm0, %v4825_v6  ;;  %v1315_v6 = vmul.f32 %v5107_v18, %v5107_v18  ;;  %v4198_v10 = vld [vmem:[%s4819_s9 + $0x248] sm:$0xff] }
  0x50   : > { %4185 = vmatpush.xpose.msk.msrb.mxu0 %vm9053_vm0, %v316_v8  ;;  %4121 = vmatpush.xpose.msk.msra.mxu2 %vm9053_vm0, %v4822_v5  ;;  %v1240_v5 = vmul.f32 %v5034_v49, %v5034_v49  ;;  %v1516_v49 = vsel %vm9053_vm0, %v1286_v39, 0.0  ;;  %v1606_v8 = vsel %vm9053_vm0, %v1316_v36, 0.0  ;;  %v5265_v39 = vld [vmem:[%s4819_s9 + $0x328] sm:$0xff]  ;;  %v4290_v36 = vld [vmem:[%s4819_s9 + $0x390] sm:$0xff] }
  0x51   : > { %4154 = vmatpush.xpose.msk.msra.mxu3 %vm9053_vm0, %v4828_v7  ;;  %v1347_v7 = vmul.f32 %v5114_v17, %v5114_v17  ;;  %v1603_v26 = vsel %vm9053_vm0, %v1315_v6, 0.0  ;;  %v4296_v6 = vld [vmem:[%s4819_s9 + $0x3c0] sm:$0xff] }
  0x52   : > { %v1378_v28 = vsel %vm9053_vm0, %v1240_v5, 0.0  ;;  %v4196_v5 = vld [vmem:[%s4819_s9 + $0x238] sm:$0xff] }
  0x53   : > { %4205 = vmatpush.xpose.msk.msrb.mxu1 %vm9053_vm0, %v4204_v14  ;;  %v4297_v14 = vld [vmem:[%s4819_s9 + $0x3c8] sm:$0xff] }
  0x54   : > { %4186 = vmatpush.xpose.msk.msrb.mxu0 %vm9053_vm0, %v5019_v46  ;;  %4238 = vmatpush.xpose.msk.msrb.mxu2 %vm9053_vm0, %v4237_v34  ;;  %v4200_v46 = vld [vmem:[%s4819_s9 + $0x258] sm:$0xff]  ;;  %v1272_v34 = vmul.f32 %v5037_v50, %v5037_v50  ;;  %v5230_v50 = vld [vmem:[%s4819_s9 + $0x290] sm:$0xff] }
  0x55   : > { %1472 = vadd.xlane.f32.xlu1 %v1471_v52  ;;  %4271 = vmatpush.xpose.msk.msrb.mxu3 %vm9053_vm0, %v4270_v35  ;;  %v4264_v52 = vld [vmem:[%s4819_s9 + $0x348] sm:$0xff]  ;;  %v4230_v35 = vld [vmem:[%s4819_s9 + $0x2c0] sm:$0xff] }
  0x56   : > { %1514 = vadd.xlane.f32.xlu2 %v1513_v15  ;;  %v1332_v15 = vmul.f32 %v5204_v12, %v5204_v12 }
  0x57   : > { %1568 = vadd.xlane.f32.xlu0 %v1567_v16  ;;  %4206 = vmatpush.xpose.msk.msrb.mxu1 %vm9053_vm0, %v4203_v22  ;;  %v4197_v16 = vld [vmem:[%s4819_s9 + $0x240] sm:$0xff] }
  0x58   : > { %4187 = vmatpush.xpose.msk.msrb.mxu0 %vm9053_vm0, %v4947_v4  ;;  %v1699_v4 = vsel %vm9053_vm0, %v1347_v7, 0.0  ;;  %4239 = vmatpush.xpose.msk.msrb.mxu2 %vm9053_vm0, %v4236_v23  ;;  %v1654_v22 = vsel %vm9053_vm0, %v1332_v15, 0.0  ;;  %v1474_v7 = vsel %vm9053_vm0, %v1272_v34, 0.0  ;;  %v4229_v23 = vld [vmem:[%s4819_s9 + $0x2b8] sm:$0xff] }
  0x59   : > { %4272 = vmatpush.xpose.msk.msrb.mxu3 %vm9053_vm0, %v4269_v24  ;;  %v4262_v24 = vld [vmem:[%s4819_s9 + $0x338] sm:$0xff] }
  0x5b   : > { %4207 = vmatpush.xpose.msk.msrb.mxu1 %vm9053_vm0, %v4202_v27  ;;  %v5241_v27 = vld [vmem:[%s4819_s9 + $0x230] sm:$0xff] }
  0x5c   : > { %4304 = vmatpush.xpose.msk.msra.mxu0 %vm9053_vm0, %v4303_v19  ;;  %4240 = vmatpush.xpose.msk.msrb.mxu2 %vm9053_vm0, %v4235_v29  ;;  %v4263_v19 = vld [vmem:[%s4819_s9 + $0x340] sm:$0xff]  ;;  %v4261_v29 = vld [vmem:[%s4819_s9 + $0x330] sm:$0xff] }
  0x5d   : > { %1604 = vadd.xlane.f32.xlu1 %v1603_v26  ;;  %4273 = vmatpush.xpose.msk.msrb.mxu3 %vm9053_vm0, %v4268_v32  ;;  %v1273_v26 = vmul.f32 %v5012_v41, %v5012_v41  ;;  %v4294_v41 = vld [vmem:[%s4819_s9 + $0x3b0] sm:$0xff] }
  0x5e   : > { %1379 = vadd.xlane.f32.xlu2 %v1378_v28  ;;  %v1317_v28 = vmul.f32 %v5230_v50, %v5230_v50 }
  0x5f   : > { %1700 = vadd.xlane.f32.xlu0 %v1699_v4  ;;  %4208 = vmatpush.xpose.msk.msrb.mxu1 %vm9053_vm0, %v4201_v38  ;;  %v4228_v4 = vld [vmem:[%s4819_s9 + $0x2b0] sm:$0xff]  ;;  %v1477_v32 = vsel %vm9053_vm0, %v1273_v26, 0.0  ;;  %v5260_v38 = vld [vmem:[%s4819_s9 + $0x2a8] sm:$0xff] }
  0x60   : > { %4305 = vmatpush.xpose.msk.msra.mxu0 %vm9053_vm0, %v4302_v25  ;;  %4241 = vmatpush.xpose.msk.msrb.mxu2 %vm9053_vm0, %v4234_v43  ;;  %v4295_v25 = vld [vmem:[%s4819_s9 + $0x3b8] sm:$0xff]  ;;  %v1318_v43 = vmul.f32 %v349_v37, %v349_v37 }
  0x61   : > { %4274 = vmatpush.xpose.msk.msrb.mxu3 %vm9053_vm0, %v4267_v40  ;;  %v1242_v40 = vmul.f32 %v4993_v30, %v4993_v30 }
  0x62   : > { %v1612_v30 = vsel %vm9053_vm0, %v1318_v43, 0.0 }
  0x63   : > { %4209 = vmatpush.xpose.msk.msrb.mxu1 %vm9053_vm0, %v4200_v46  ;;  %v4292_v46 = vld [vmem:[%s4819_s9 + $0x3a0] sm:$0xff] }
  0x64   : > { %4306 = vmatpush.xpose.msk.msra.mxu0 %vm9053_vm0, %v4301_v33  ;;  %4242 = vmatpush.xpose.msk.msrb.mxu2 %vm9053_vm0, %v4233_v58  ;;  %v1609_v33 = vsel %vm9053_vm0, %v1317_v28, 0.0 }
  0x65   : > { %1430 = vadd.xlane.f32.xlu1 %v1429_v45  ;;  %4275 = vmatpush.xpose.msk.msrb.mxu3 %vm9053_vm0, %v4266_v59  ;;  %v5281_v45 = vld [vmem:[%s4819_s9 + $0x320] sm:$0xff]  ;;  %v1288_v59 = vmul.f32 %v5052_v57, %v5052_v57 }
  0x66   : > { %1517 = vadd.xlane.f32.xlu2 %v1516_v49  ;;  %v1384_v49 = vsel %vm9053_vm0, %v1242_v40, 0.0 }
  0x67   : > { %1436 = vadd.xlane.f32.xlu0 %v1435_v21  ;;  %4210 = vmatpush.xpose.msk.msrb.mxu1 %vm9053_vm0, %v4199_v63  ;;  %v379_v21 = vld [vmem:[%s4819_s9 + $0x388] sm:$0xff] }
  0x68   : > { %4307 = vmatpush.xpose.msk.msra.mxu0 %vm9053_vm0, %v4300_v44  ;;  %4243 = vmatpush.xpose.msk.msrb.mxu2 %vm9053_vm0, %v4232_v1  ;;  %v5276_v44 = vld [vmem:[%s4819_s9 + $0x2a0] sm:$0xff]  ;;  %v1348_v58 = vmul.f32 %v379_v21, %v379_v21 }
  0x69   : > { %4276 = vmatpush.xpose.msk.msrb.mxu3 %vm9053_vm0, %v4265_v2  ;;  %v1522_v2 = vsel %vm9053_vm0, %v1288_v59, 0.0 }
  0x6a   : > { %v1702_v1 = vsel %vm9053_vm0, %v1348_v58, 0.0  ;;  %v275_v58 = vld [vmem:[%s4819_s9 + $0x48] sm:$0xff] }
  0x6b   : > { %4211 = vmatpush.xpose.msk.msrb.mxu1 %vm9053_vm0, %v4198_v10 }
  0x6c   : > { %4308 = vmatpush.xpose.msk.msra.mxu0 %vm9053_vm0, %v4299_v60  ;;  %4244 = vmatpush.xpose.msk.msrb.mxu2 %vm9053_vm0, %v4231_v13 }
  0x6d   : > { %1565 = vadd.xlane.f32.xlu1 %v1564_v9  ;;  %4277 = vmatpush.xpose.msk.msrb.mxu3 %vm9053_vm0, %v4264_v52  ;;  %v4189_v9 = vld [vmem:[%s4819_s9 + $0x200] sm:$0xff] }
  0x6e   : > { %1607 = vadd.xlane.f32.xlu2 %v1606_v8  ;;  %v3284_v8 = vlaneseq }
  0x6f   : > { %1571 = vadd.xlane.f32.xlu0 %v1570_v51  ;;  %4212 = vmatpush.xpose.msk.msrb.mxu1 %vm9053_vm0, %v4197_v16 }
  0x70   : > { %4309 = vmatpush.xpose.msk.msra.mxu0 %vm9053_vm0, %v4298_v3  ;;  %4245 = vmatpush.xpose.msk.msrb.mxu2 %vm9053_vm0, %v4230_v35  ;;  %v364_v3 = vld [vmem:[%s4819_s9 + $0x310] sm:$0xff] }
  0x71   : > { %4278 = vmatpush.xpose.msk.msrb.mxu3 %vm9053_vm0, %v4263_v19  ;;  %v1333_v10 = vmul.f32 %v364_v3, %v364_v3  ;;  %v5356_v19 = vand.u32 127, %v3284_v8 }
  0x73   : > { %4213 = vmatpush.xpose.msk.msrb.mxu1 %vm9053_vm0, %v4196_v5  ;;  %v1657_v35 = vsel %vm9053_vm0, %v1333_v10, 0.0  ;;  %v4462_v5 = vld [vmem:[%s9048_s4] ss:$0 sm:$0xff]  ;;  %v5380_v26 = vadd.s32 4294967280, %v5356_v19  ;;  %v5395_v40 = vadd.s32 4294967288, %v5356_v19  ;;  %v5431_v8 = vadd.s32 4294967256, %v5356_v19 }
  0x74   : > { %4310 = vmatpush.xpose.msk.msra.mxu0 %vm9053_vm0, %v4297_v14  ;;  %4246 = vmatpush.xpose.msk.msrb.mxu2 %vm9053_vm0, %v4229_v23  ;;  %v1289_v23 = vmul.f32 %v5031_v48, %v5031_v48 }
  0x75   : > { %1655 = vadd.xlane.f32.xlu1 %v1654_v22  ;;  %4279 = vmatpush.xpose.msk.msrb.mxu3 %vm9053_vm0, %v4262_v24  ;;  %v306_v24 = vld [vmem:[%s4819_s9 + $0x140] sm:$0xff] }
  0x76   : > { %1475 = vadd.xlane.f32.xlu2 %v1474_v7 }
  0x77   : > { %4214 = vmatpush.xpose.msk.msrb.mxu1 %vm9053_vm0, %v5241_v27 }
  0x78   : > { %4311 = vmatpush.xpose.msk.msra.mxu0 %vm9053_vm0, %v4296_v6  ;;  %4247 = vmatpush.xpose.msk.msrb.mxu2 %vm9053_vm0, %v4228_v4  ;;  %v1319_v4 = vmul.f32 %v5276_v44, %v5276_v44 }
  0x79   : > { %4280 = vmatpush.xpose.msk.msrb.mxu3 %vm9053_vm0, %v4261_v29 }
  0x7b   : > { %4215 = vmatpush.xpose.msk.msrb.mxu1 %vm9053_vm0, %v5177_v56  ;;  %v5298_v56 = vld [vmem:[%s4819_s9 + $0x398] sm:$0xff] }
  0x7c   : > { %4312 = vmatpush.xpose.msk.msra.mxu0 %vm9053_vm0, %v4295_v25  ;;  %4248 = vmatpush.xpose.msk.msrb.mxu2 %vm9053_vm0, %v5260_v38 }
  0x7d   : > { %1478 = vadd.xlane.f32.xlu1 %v1477_v32  ;;  %4281 = vmatpush.xpose.msk.msrb.mxu3 %vm9053_vm0, %v5265_v39 }
  0x7e   : > { %1610 = vadd.xlane.f32.xlu2 %v1609_v33 }
  0x7f   : > { %4216 = vmatpush.xpose.msk.msrb.mxu1 %vm9053_vm0, %v5087_v11  ;;  %v5295_v11 = vld [vmem:[%s4819_s9 + $0x318] sm:$0xff] }
  0x80   : > { %4313 = vmatpush.xpose.msk.msra.mxu0 %vm9053_vm0, %v4294_v41  ;;  %4249 = vmatpush.xpose.msk.msrb.mxu2 %vm9053_vm0, %v5276_v44 }
  0x81   : > { %4282 = vmatpush.xpose.msk.msrb.mxu3 %vm9053_vm0, %v5281_v45 }
  0x83   : > { %4217 = vmatpush.xpose.msk.msrb.mxu1 %vm9053_vm0, %v5170_v54 }
  0x84   : > { %4314 = vmatpush.xpose.msk.msra.mxu0 %vm9053_vm0, %v4293_v42  ;;  %4250 = vmatpush.xpose.msk.msrb.mxu2 %vm9053_vm0, %v349_v37  ;;  %v1275_v42 = vmul.f32 %v306_v24, %v306_v24 }
  0x85   : > { %1613 = vadd.xlane.f32.xlu1 %v1612_v30  ;;  %4283 = vmatpush.xpose.msk.msrb.mxu3 %vm9053_vm0, %v5295_v11 }
  0x86   : > { %1385 = vadd.xlane.f32.xlu2 %v1384_v49 }
  0x87   : > { %4218 = vmatpush.xpose.msk.msrb.mxu1 %vm9053_vm0, %v4921_v53  ;;  %v1274_v53 = vmul.f32 %v4996_v31, %v4996_v31 }
  0x88   : > { %4315 = vmatpush.xpose.msk.msra.mxu0 %vm9053_vm0, %v4292_v46  ;;  %v1413_v60 = vpop.xlane.xlu1 %1412  ;;  %4251 = vmatpush.xpose.msk.msrb.mxu2 %vm9053_vm0, %v5230_v50  ;;  %v1349_v50 = vmul.f32 %v4290_v36, %v4290_v36  ;;  %v5403_v46 = vsel %vm9053_vm0, %v1289_v23, 0.0 }
  0x89   : > { %v5307_v54 = vmax.f32 %v1413_v60, 1e-16  ;;  %v1365_v62 = vpop.xlane.xlu2 %1364  ;;  %4284 = vmatpush.xpose.msk.msrb.mxu3 %vm9053_vm0, %v364_v3  ;;  %v5414_v60 = vsel %vm9053_vm0, %v1319_v4, 0.0  ;;  %v1244_v3 = vmul.f32 %v275_v58, %v275_v58 }
  0x8a   : > { %v1461_v63 = vpop.xlane.xlu0 %1460  ;;  %v5312_v0 = vmax.f32 %v1365_v62, 1e-16  ;;  %v5400_v44 = vsel %vm9053_vm0, %v1349_v50, 0.0 }
  0x8b   : > { %v5314_v57 = vmax.f32 %v1461_v63, 1e-16  ;;  %4463 = vrsqrt.f32 %v5307_v54  ;;  %4219 = vmatpush.xpose.msk.msrb.mxu1 %vm9053_vm0, %v5058_v61  ;;  %vm2041_vm3 = vweird.f32 %v5307_v54 }
  0x8c   : > { %4316 = vmatpush.xpose.msk.msra.mxu0 %vm9053_vm0, %v5298_v56  ;;  %4465 = vrsqrt.f32 %v5312_v0  ;;  %4252 = vmatpush.xpose.msk.msrb.mxu2 %vm9053_vm0, %v5174_v55  ;;  %v1480_v55 = vsel %vm9053_vm0, %v1274_v53, 0.0  ;;  %vm1881_vm4 = vweird.f32 %v5312_v0 }
  0x8d   : > { %4467 = vrsqrt.f32 %v5314_v57  ;;  %1703 = vadd.xlane.f32.xlu1 %v1702_v1  ;;  %4285 = vmatpush.xpose.msk.msrb.mxu3 %vm9053_vm0, %v5204_v12  ;;  %vm2201_vm5 = vweird.f32 %v5314_v57  ;;  %v5420_v1 = vsel %vm9053_vm0, %v1275_v42, 0.0 }
  0x8e   : > { %1523 = vadd.xlane.f32.xlu2 %v1522_v2  ;;  %v1334_v2 = vmul.f32 %v5295_v11, %v5295_v11 }
  0x8f   : > { %4220 = vmatpush.xpose.msk.msrb.mxu1 %vm9053_vm0, %v4189_v9 }
  0x90   : > { %4317 = vmatpush.xpose.msk.msra.mxu0 %vm9053_vm0, %v4290_v36  ;;  %v1371_v51 = vpop.xlane.xlu1 %1370  ;;  %4253 = vmatpush.xpose.msk.msrb.mxu2 %vm9053_vm0, %v5107_v18  ;;  %v1243_v18 = vmul.f32 %v4971_v20, %v4971_v20 }
  0x91   : > { %v5336_v13 = vpop.eup %4463  ;;  %v5338_v52 = vmax.f32 %v1371_v51, 1e-16  ;;  %v1368_v61 = vpop.xlane.xlu2 %1367  ;;  %4286 = vmatpush.xpose.msk.msrb.mxu3 %vm9053_vm0, %v5024_v47 }
  0x92   : > { %v1557_v14 = vpop.xlane.xlu0 %1556  ;;  %v5341_v31 = vpop.eup %4465  ;;  %v5343_v15 = vmax.f32 %v1368_v61, 1e-16  ;;  %v2036_v12 = vmul.f32 %v5336_v13, %v5307_v54  ;;  %v1387_v37 = vsel %vm9053_vm0, %v1243_v18, 0.0  ;;  %vm2042_vm6 = vweird.f32 %v5336_v13 }
  0x93   : > { %v5346_v16 = vpop.eup %4467  ;;  %4469 = vrsqrt.f32 %v5338_v52  ;;  %v5351_v34 = vmax.f32 %v1557_v14, 1e-16  ;;  %v1876_v6 = vmul.f32 %v5341_v31, %v5312_v0  ;;  %vm1882_vm7 = vweird.f32 %v5341_v31  ;;  %vm5476_vm12 = vmor %vm2041_vm3, %vm2042_vm6 }
  0x94   : > { %4318 = vmatpush.xpose.msk.msra.mxu0 %vm9053_vm0, %v379_v21  ;;  %v2196_v22 = vmul.f32 %v5346_v16, %v5314_v57  ;;  %4471 = vrsqrt.f32 %v5343_v15  ;;  %v2037_v25 = vmul.f32 %v5336_v13, %v2036_v12  ;;  %vm2202_vm8 = vweird.f32 %v5346_v16  ;;  %vm5491_vm14 = vmor %vm1881_vm4, %vm1882_vm7 }
  0x95   : > { %1481 = vadd.xlane.f32.xlu1 %v1480_v55  ;;  %4473 = vrsqrt.f32 %v5351_v34  ;;  %vm5449_vm9 = vmor %vm2201_vm5, %vm2202_vm8  ;;  %vm1891_vm10 = vweird.f32 %v5343_v15  ;;  %v5462_v57 = vsel %vm9053_vm0, %v1244_v3, 0.0  ;;  %vm1901_vm11 = vweird.f32 %v5338_v52 }
  0x96   : > { %v2197_v7 = vmul.f32 %v5346_v16, %v2196_v22  ;;  %1658 = vadd.xlane.f32.xlu2 %v1657_v35  ;;  %v2038_v30 = vmul.f32 0.5, %v2037_v25  ;;  %vm2521_vm3 = vweird.f32 %v5351_v34 }
  0x98   : > { %4319 = vmatpush.xpose.msk.msra.mxu0 %vm9053_vm0, %v5114_v17  ;;  %v427_v47 = vpop.f32.mrf.mxu0  ;;  %v1877_v17 = vmul.f32 %v5341_v31, %v1876_v6  ;;  %v1464_v28 = vpop.xlane.xlu1 %1463  ;;  %v2198_v48 = vmul.f32 0.5, %v2197_v7  ;;  %v2039_v53 = vsub.f32 1.5, %v2038_v30 }
  0x99   : > { %v5382_v20 = vadd.f32 %v4462_v5, %v427_v47  ;;  %v5386_v29 = vpop.eup %4469  ;;  %v5388_v41 = vmax.f32 %v1464_v28, 1e-16  ;;  %v1416_v32 = vpop.xlane.xlu2 %1415  ;;  %v5459_v47 = vsel %vm9053_vm0, %v1334_v2, 0.0 }
  0x9a   : > { %v1428_v33 = vpop.xlane.xlu0 %1427  ;;  %v5391_v43 = vpop.eup %4471  ;;  %v1896_v49 = vmul.f32 %v5386_v29, %v5338_v52  ;;  %v1878_v59 = vmul.f32 0.5, %v1877_v17  ;;  %v2199_v63 = vsub.f32 1.5, %v2198_v48  ;;  %v5428_v10 = vmax.f32 %v1416_v32, 1e-16 }
  0x9b   : > { %499 = vst.msk [vmem:[#allocation2] sm:$0xff] %vm9053_vm0, %v5382_v20  ;;  %v1886_v21 = vmul.f32 %v5391_v43, %v5343_v15  ;;  %4475 = vrsqrt.f32 %v5388_v41  ;;  %v5416_v62 = vpop.eup %4473  ;;  %v5435_v61 = vmax.f32 %v1428_v33, 1e-16  ;;  %v468_v14 = vsel %vm467_vm2, %v5382_v20, -inf }
  0x9c   : > { %v1897_v9 = vmul.f32 %v5386_v29, %v1896_v49  ;;  %v1879_v51 = vsub.f32 1.5, %v1878_v59  ;;  %v2516_v11 = vmul.f32 %v5416_v62, %v5351_v34  ;;  %v2200_v35 = vmul.f32 %v5346_v16, %v2199_v63  ;;  %469 = vmax.xlane.f32.xlu0 %v468_v14 }
  0x9d   : > { %v1887_v36 = vmul.f32 %v5391_v43, %v1886_v21  ;;  %4477 = vrsqrt.f32 %v5428_v10  ;;  %v1220_v22 = vmul.f32 %v5382_v20, %v5382_v20  ;;  %v5465_v17 = vmul.f32 %v5336_v13, %v2039_v53 }
  0x9e   : > { %1388 = vadd.xlane.f32.xlu2 %v1387_v37  ;;  %v1898_v28 = vmul.f32 0.5, %v1897_v9  ;;  %4479 = vrsqrt.f32 %v5435_v61  ;;  %v5481_v33 = vmul.f32 %v5341_v31, %v1879_v51  ;;  %v2517_v37 = vmul.f32 %v5416_v62, %v2516_v11 }
  0x9f   : > { %v1888_v6 = vmul.f32 0.5, %v1887_v36  ;;  %v1221_v4 = vsel %vm9053_vm0, %v1220_v22, 0.0  ;;  %v2204_v49 = vsel %vm5449_vm9, %v5346_v16, %v2200_v35  ;;  %vm2211_vm15 = vweird.f32 %v5388_v41 }
  0xa0   : > { %v1422_v55 = vpop.xlane.xlu1 %1421  ;;  %1222 = vadd.xlane.f32.xlu1 %v1221_v4  ;;  %v2044_v16 = vsel %vm5476_vm12, %v5336_v13, %v5465_v17  ;;  %v1899_v36 = vsub.f32 1.5, %v1898_v28  ;;  %vm1892_vm2 = vweird.f32 %v5391_v43  ;;  %v1884_v2 = vsel %vm5491_vm14, %v5341_v31, %v5481_v33 }
  0xa1   : > { %v5439_v12 = vpop.eup %4475  ;;  %v1419_v5 = vpop.xlane.xlu2 %1418  ;;  %v5485_v30 = vmax.f32 %v1422_v55, 1e-16  ;;  %v1889_v21 = vsub.f32 1.5, %v1888_v6  ;;  %v3378_v51 = vperm.slane %v2204_v49, %v5356_v19  ;;  %vm1902_vm5 = vweird.f32 %v5386_v29  ;;  %vm5551_vm6 = vmor %vm1891_vm10, %vm1892_vm2 }
  0xa2   : > { %v500_v18 = vld [vmem:[#allocation2] sm:$0x1]  ;;  %v589_v7 = vld [vmem:[#allocation2 + $0x1] sm:$0x1]  ;;  %v2206_v23 = vmul.f32 %v5439_v12, %v5388_v41  ;;  %v679_v24 = vld [vmem:[#allocation2 + $0x2] sm:$0x1]  ;;  %v1563_v48 = vpop.xlane.xlu0 %1562  ;;  %vm2212_vm1 = vweird.f32 %v5439_v12  ;;  %vm2051_vm7 = vweird.f32 %v5428_v10  ;;  %vm2522_vm12 = vweird.f32 %v5416_v62 }
  0xa3   : > { %4089 = vmatmul.msk.f32.vlgmr.msra.gmra.mxu1 %vm9053_vm0, %v500_v18  ;;  %4122 = vmatmul.msk.f32.vlgmr.msra.gmra.mxu2 %vm9053_vm0, %v589_v7  ;;  %v769_v25 = vld [vmem:[#allocation2 + $0x3] sm:$0x1]  ;;  %v5498_v58 = vmax.f32 %v1419_v5, 1e-16  ;;  %v5500_v59 = vmax.f32 %v1563_v48, 1e-16  ;;  %4481 = vrsqrt.f32 %v5485_v30  ;;  %v5506_v0 = vpop.eup %4477  ;;  %v1890_v11 = vmul.f32 %v5391_v43, %v1889_v21  ;;  %vm5531_vm4 = vmor %vm2211_vm15, %vm2212_vm1 }
  0xa4   : > { %4155 = vmatmul.msk.f32.vlgmr.msra.gmra.mxu3 %vm9053_vm0, %v679_v24  ;;  %4188 = vmatmul.msk.f32.vlgmr.msrb.gmra.mxu0 %vm9053_vm0, %v769_v25  ;;  %v2207_v42 = vmul.f32 %v5439_v12, %v2206_v23  ;;  %v2046_v53 = vmul.f32 %v5506_v0, %v5428_v10  ;;  %v5523_v13 = vpop.eup %4479  ;;  %v859_v35 = vld [vmem:[#allocation2 + $0x4] sm:$0x1]  ;;  %v949_v6 = vld [vmem:[#allocation2 + $0x5] sm:$0x1]  ;;  %v1039_v18 = vld [vmem:[#allocation2 + $0x6] sm:$0x1]  ;;  %v1900_v7 = vmul.f32 %v5386_v29, %v1899_v36  ;;  %vm2052_vm8 = vweird.f32 %v5506_v0 }
  0xa5   : > { %4483 = vrsqrt.f32 %v5498_v58  ;;  %1706 = vadd.xlane.f32.xlu0 %v5400_v44  ;;  %v2086_v41 = vmul.f32 %v5523_v13, %v5435_v61  ;;  %v1129_v44 = vld [vmem:[#allocation2 + $0x7] sm:$0x1]  ;;  %vm5581_vm9 = vmor %vm1901_vm11, %vm1902_vm5  ;;  %vm9052_vm10 = vcmask 195712   ;;  %vm2061_vm14 = vweird.f32 %v5498_v58 }
  0xa6   : > { %v2208_v63 = vmul.f32 0.5, %v2207_v42  ;;  %1526 = vadd.xlane.f32.xlu2 %v5403_v46  ;;  %v5519_v46 = vmul.f32 0.5, %v2517_v37  ;;  %4485 = vrsqrt.f32 %v5500_v59  ;;  %v2047_v5 = vmul.f32 %v5506_v0, %v2046_v53  ;;  %vm5601_vm11 = vmor %vm2051_vm7, %vm2052_vm8 }
  0xa7   : > { %v2087_v17 = vmul.f32 %v5523_v13, %v2086_v41  ;;  %v1894_v37 = vsel %vm5551_vm6, %v5391_v43, %v1890_v11  ;;  %v1904_v10 = vsel %vm5581_vm9, %v5386_v29, %v1900_v7  ;;  %vm5624_vm15 = vmor %vm2521_vm3, %vm2522_vm12  ;;  %vm2091_vm2 = vweird.f32 %v5435_v61 }
  0xa8   : > { %v2209_v3 = vsub.f32 1.5, %v2208_v63  ;;  %v1509_v9 = vpop.xlane.xlu1 %1508  ;;  %v2048_v25 = vmul.f32 0.5, %v2047_v5  ;;  %1616 = vadd.xlane.f32.xlu1 %v5414_v60  ;;  %v2519_v4 = vsub.f32 1.5, %v5519_v46  ;;  %v3292_v41 = vperm.slane %v1904_v10, %v5380_v26 }
  0xa9   : > { %v5537_v31 = vmax.f32 %v1509_v9, 1e-16  ;;  %v1374_v55 = vpop.xlane.xlu2 %1373  ;;  %v5561_v24 = vpop.eup %4481  ;;  %v2088_v21 = vmul.f32 0.5, %v2087_v17  ;;  %v3288_v9 = vperm.slane %v1894_v37, %v5395_v40  ;;  %vm2092_vm3 = vweird.f32 %v5523_v13 }
  0xaa   : > { %v2210_v22 = vmul.f32 %v5439_v12, %v2209_v3  ;;  %v5557_v23 = vmax.f32 %v1374_v55, 1e-16  ;;  %v2066_v32 = vmul.f32 %v5561_v24, %v5485_v30  ;;  %v1383_v33 = vpop.xlane.xlu0 %1382  ;;  %v2049_v42 = vsub.f32 1.5, %v2048_v25  ;;  %vm5672_vm5 = vmor %vm2091_vm2, %vm2092_vm3 }
  0xab   : > { %4221 = vmatmul.msk.f32.vlgmr.msrb.gmra.mxu1 %vm9053_vm0, %v859_v35  ;;  %4254 = vmatmul.msk.f32.vlgmr.msrb.gmra.mxu2 %vm9053_vm0, %v949_v6  ;;  %4487 = vrsqrt.f32 %v5537_v31  ;;  %v5569_v28 = vpop.eup %4483  ;;  %v5609_v46 = vmax.f32 %v1383_v33, 1e-16  ;;  %v2089_v35 = vsub.f32 1.5, %v2088_v21  ;;  %v5664_v17 = vadd.s32 4294967272, %v5356_v19 }
  0xac   : > { %4287 = vmatmul.msk.f32.vlgmr.msrb.gmra.mxu3 %vm9053_vm0, %v1039_v18  ;;  %4320 = vmatmul.msk.f32.vlgmr.msra.gmra.mxu0 %vm9053_vm0, %v1129_v44  ;;  %v2214_v15 = vsel %vm5531_vm4, %v5439_v12, %v2210_v22  ;;  %4489 = vrsqrt.f32 %v5557_v23  ;;  %v3347_v12 = vperm.slane %v2044_v16, %v5356_v19  ;;  %v2056_v54 = vmul.f32 %v5569_v28, %v5498_v58  ;;  %v5591_v49 = vpop.eup %4485 }
  0xad   : > { %v3379_v48 = vperm.slane %v2214_v15, %v5395_v40  ;;  %v2067_v63 = vmul.f32 %v5561_v24, %v2066_v32  ;;  %v2050_v16 = vmul.f32 %v5506_v0, %v2049_v42  ;;  %1484 = vadd.xlane.f32.xlu0 %v5420_v1  ;;  %vm2062_vm1 = vweird.f32 %v5569_v28 }
  0xae   : > { %1661 = vadd.xlane.f32.xlu2 %v5459_v47  ;;  %v3286_v47 = vperm.slane %v1884_v2, %v5356_v19  ;;  %v2057_v36 = vmul.f32 %v5569_v28, %v2056_v54  ;;  %v2536_v55 = vmul.f32 %v5591_v49, %v5500_v59  ;;  %4491 = vrsqrt.f32 %v5609_v46  ;;  %vm5653_vm4 = vmor %vm2061_vm14, %vm2062_vm1 }
  0xaf   : > { %v5595_v52 = vsel %vm9050_vm13, %v3379_v48, %v3378_v51  ;;  %v2520_v51 = vmul.f32 %v5416_v62, %v2519_v4  ;;  %v2054_v29 = vsel %vm5601_vm11, %v5506_v0, %v2050_v16  ;;  %v2068_v34 = vmul.f32 0.5, %v2067_v63 }
  0xb0   : > { %v1377_v3 = vpop.xlane.xlu1 %1376  ;;  %v2058_v14 = vmul.f32 0.5, %v2057_v36  ;;  %v3348_v22 = vperm.slane %v2054_v29, %v5395_v40  ;;  %1391 = vadd.xlane.f32.xlu1 %v5462_v57  ;;  %v3290_v57 = vsel %vm9050_vm13, %v3288_v9, %v3286_v47  ;;  %v2537_v15 = vmul.f32 %v5591_v49, %v2536_v55  ;;  %v321_v29 = vld [vmem:[%s4819_s9 + $0x1b8] sm:$0xff] }
  0xb1   : > { %v5611_v53 = vpop.eup %4487  ;;  %v1467_v2 = vpop.xlane.xlu2 %1466  ;;  %v2524_v18 = vsel %vm5624_vm15, %v5416_v62, %v2520_v51  ;;  %v2090_v25 = vmul.f32 %v5523_v13, %v2089_v35  ;;  %v2069_v58 = vsub.f32 1.5, %v2068_v34  ;;  %vm2071_vm6 = vweird.f32 %v5485_v30  ;;  %v291_v51 = vld [vmem:[%s4819_s9 + $0xc8] sm:$0xff] }
  0xb2   : > { %v5634_v1 = vpop.eup %4489  ;;  %v2356_v6 = vmul.f32 %v5611_v53, %v5537_v31  ;;  %v2059_v5 = vsub.f32 1.5, %v2058_v14  ;;  %v1521_v48 = vpop.xlane.xlu0 %1520  ;;  %v5667_v32 = vperm.slane %v2524_v18, %v5356_v19  ;;  %v3349_v33 = vsel %vm9050_vm13, %v3348_v22, %v3347_v12 }
  0xb3   : > { %v1906_v0 = vmul.f32 %v5634_v1, %v5557_v23  ;;  %vm2072_vm7 = vweird.f32 %v5561_v24  ;;  %v5683_v12 = vsel %vm9052_vm10, %v3292_v41, %v3290_v57  ;;  %v2538_v63 = vmul.f32 0.5, %v2537_v15 }
  0xb4   : > { %v2357_v7 = vmul.f32 %v5611_v53, %v2356_v6  ;;  %v2060_v50 = vmul.f32 %v5569_v28, %v2059_v5  ;;  %v5685_v21 = vpop.eup %4491  ;;  %vm2361_vm8 = vweird.f32 %v5537_v31  ;;  %v5688_v47 = vmax.f32 %v1377_v3, 1e-16  ;;  %vm5704_vm9 = vmor %vm2071_vm6, %vm2072_vm7  ;;  %v276_v5 = vld [vmem:[%s4819_s9 + $0x50] sm:$0xff] }
  0xb5   : > { %v1907_v62 = vmul.f32 %v5634_v1, %v1906_v0  ;;  %v5690_v16 = vmax.f32 %v1467_v2, 1e-16  ;;  %v2070_v36 = vmul.f32 %v5561_v24, %v2069_v58  ;;  %vm2362_vm12 = vweird.f32 %v5611_v53 }
  0xb6   : > { %v2358_v4 = vmul.f32 0.5, %v2357_v7  ;;  %v2064_v37 = vsel %vm5653_vm4, %v5569_v28, %v2060_v50  ;;  %v2094_v28 = vsel %vm5672_vm5, %v5523_v13, %v2090_v25  ;;  %vm9051_vm11 = vcmask 261312   ;;  %vm5744_vm3 = vmor %vm2361_vm8, %vm2362_vm12 }
  0xb7   : > { %v3350_v54 = vperm.slane %v2064_v37, %v5380_v26  ;;  %v1908_v61 = vmul.f32 0.5, %v1907_v62  ;;  %vm1911_vm14 = vweird.f32 %v5557_v23  ;;  %v5711_v13 = vadd.s32 4294967248, %v5356_v19 }
  0xb8   : > { %v1470_v42 = vpop.xlane.xlu1 %1469  ;;  %v2359_v9 = vsub.f32 1.5, %v2358_v4  ;;  %4493 = vrsqrt.f32 %v5688_v47  ;;  %v1936_v11 = vmul.f32 %v5685_v21, %v5609_v46  ;;  %v5717_v30 = vmax.f32 %v1521_v48, 1e-16 }
  0xb9   : > { %v1512_v43 = vpop.xlane.xlu2 %1511  ;;  %v5697_v10 = vsel %vm9052_vm10, %v3350_v54, %v3349_v33  ;;  %v1909_v2 = vsub.f32 1.5, %v1908_v61  ;;  %4495 = vrsqrt.f32 %v5690_v16  ;;  %v5721_v14 = vperm.slane %v2094_v28, %v5431_v8 }
  0xba   : > { %v2539_v55 = vsub.f32 1.5, %v2538_v63  ;;  %v1320_v35 = vmul.f32 %v5260_v38, %v5260_v38  ;;  %v1260_v34 = vmul.f32 %v291_v51, %v291_v51  ;;  %v2074_v6 = vsel %vm5704_vm9, %v5561_v24, %v2070_v36  ;;  %v1653_v62 = vpop.xlane.xlu0 %1652 }
  0xbb   : > { %v5729_v22 = vmul.f32 %v5611_v53, %v2359_v9  ;;  %vm1912_vm15 = vweird.f32 %v5634_v1  ;;  %4497 = vrsqrt.f32 %v5717_v30  ;;  %v1290_v18 = vmul.f32 %v321_v29, %v321_v29 }
  0xbc   : > { %v1618_v0 = vsel %vm9053_vm0, %v1320_v35, 0.0  ;;  %v1438_v41 = vsel %vm9053_vm0, %v1260_v34, 0.0  ;;  %v5736_v44 = vmax.f32 %v1470_v42, 1e-16  ;;  %vm2541_vm1 = vweird.f32 %v5500_v59  ;;  %vm5762_vm4 = vmor %vm1911_vm14, %vm1912_vm15 }
  0xbd   : > { %vm2542_vm2 = vweird.f32 %v5591_v49  ;;  %v1910_v7 = vmul.f32 %v5634_v1, %v1909_v2  ;;  %v1937_v57 = vmul.f32 %v5685_v21, %v1936_v11  ;;  %v5751_v50 = vadd.s32 4294967264, %v5356_v19  ;;  %1619 = vadd.xlane.f32.xlu0 %v1618_v0  ;;  %1439 = vadd.xlane.f32.xlu2 %v1438_v41 }
  0xbe   : > { %v5753_v15 = vmax.f32 %v1512_v43, 1e-16  ;;  %v5755_v58 = vpop.eup %4493  ;;  %v3352_v31 = vperm.slane %v2074_v6, %v5664_v17  ;;  %v1528_v48 = vsel %vm9053_vm0, %v1290_v18, 0.0  ;;  %4499 = vrsqrt.f32 %v5736_v44 }
  0xbf   : > { %v1245_v33 = vmul.f32 %v276_v5, %v276_v5  ;;  %v5768_v60 = vpop.eup %4495  ;;  %v5771_v37 = vmul.f32 %v5591_v49, %v2539_v55  ;;  %v1916_v42 = vmul.f32 %v5755_v58, %v5688_v47  ;;  %vm1921_vm5 = vweird.f32 %v5688_v47  ;;  %1529 = vadd.xlane.f32.xlu1 %v1528_v48 }
  0xc0   : > { %v1560_v38 = vpop.xlane.xlu1 %1559  ;;  %4501 = vrsqrt.f32 %v5753_v15  ;;  %v2364_v23 = vsel %vm5744_vm3, %v5611_v53, %v5729_v22  ;;  %v2216_v54 = vmul.f32 %v5768_v60, %v5690_v16  ;;  %vm2221_vm6 = vweird.f32 %v5690_v16 }
  0xc1   : > { %v1425_v25 = vpop.xlane.xlu2 %1424  ;;  %v5784_v61 = vmax.f32 %v1653_v62, 1e-16  ;;  %v5786_v43 = vpop.eup %4497  ;;  %v1914_v63 = vsel %vm5762_vm4, %v5634_v1, %v1910_v7  ;;  %v1938_v28 = vmul.f32 0.5, %v1937_v57  ;;  %vm9057_vm7 = vcmask 326912   ;;  %vm5850_vm4 = vmor %vm2541_vm1, %vm2542_vm2 }
  0xc2   : > { %v1917_v36 = vmul.f32 %v5755_v58, %v1916_v42  ;;  %vm1922_vm8 = vweird.f32 %v5755_v58  ;;  %v2217_v9 = vmul.f32 %v5768_v60, %v2216_v54  ;;  %vm2222_vm9 = vweird.f32 %v5768_v60  ;;  %v1434_v48 = vpop.xlane.xlu0 %1433 }
  0xc3   : > { %v1393_v51 = vsel %vm9053_vm0, %v1245_v33, 0.0  ;;  %v1305_v3 = vmul.f32 %v5241_v27, %v5241_v27  ;;  %v1335_v11 = vmul.f32 %v5281_v45, %v5281_v45  ;;  %v5800_v1 = vmax.f32 %v1560_v38, 1e-16  ;;  %vm5828_vm12 = vmor %vm1921_vm5, %vm1922_vm8 }
  0xc4   : > { %v1918_v2 = vmul.f32 0.5, %v1917_v36  ;;  %v5804_v29 = vsel %vm9051_vm11, %v3352_v31, %v5697_v10  ;;  %v5806_v55 = vpop.eup %4499  ;;  %v2218_v35 = vmul.f32 0.5, %v2217_v9  ;;  %v2396_v34 = vmul.f32 %v5786_v43, %v5717_v30  ;;  %vm5839_vm14 = vmor %vm2221_vm6, %vm2222_vm9 }
  0xc5   : > { %4503 = vrsqrt.f32 %v5784_v61  ;;  %v1573_v27 = vsel %vm9053_vm0, %v1305_v3, 0.0  ;;  %v2226_v0 = vmul.f32 %v5806_v55, %v5736_v44  ;;  %1394 = vadd.xlane.f32.xlu0 %v1393_v51  ;;  %v1663_v10 = vsel %vm9053_vm0, %v1335_v11, 0.0 }
  0xc6   : > { %v5814_v5 = vpop.eup %4501  ;;  %v1919_v45 = vsub.f32 1.5, %v1918_v2  ;;  %1574 = vadd.xlane.f32.xlu2 %v1573_v27  ;;  %v5819_v41 = vmax.f32 %v1425_v25, 1e-16  ;;  %v3296_v38 = vperm.slane %v1914_v63, %v5664_v17  ;;  %v1939_v7 = vsub.f32 1.5, %v1938_v28 }
  0xc7   : > { %v2219_v62 = vsub.f32 1.5, %v2218_v35  ;;  %v2366_v31 = vmul.f32 %v5814_v5, %v5753_v15  ;;  %v2227_v47 = vmul.f32 %v5806_v55, %v2226_v0  ;;  %vm2231_vm15 = vweird.f32 %v5736_v44  ;;  %1664 = vadd.xlane.f32.xlu1 %v1663_v10 }
  0xc8   : > { %v5812_v6 = vpop.xlane.xlu1 %1472  ;;  %v1920_v25 = vmul.f32 %v5755_v58, %v1919_v45  ;;  %4505 = vrsqrt.f32 %v5800_v1  ;;  %v2397_v42 = vmul.f32 %v5786_v43, %v2396_v34  ;;  %vm2371_vm5 = vweird.f32 %v5753_v15  ;;  %v322_v45 = vld [vmem:[%s4819_s9 + $0x1c0] sm:$0xff] }
  0xc9   : > { %v5821_v18 = vpop.xlane.xlu2 %1514  ;;  %v2220_v16 = vmul.f32 %v5768_v60, %v2219_v62  ;;  %v2367_v54 = vmul.f32 %v5814_v5, %v2366_v31  ;;  %vm1941_vm6 = vweird.f32 %v5609_v46  ;;  %vm1942_vm8 = vweird.f32 %v5685_v21 }
  0xca   : > { %v1924_v59 = vsel %vm5828_vm12, %v5755_v58, %v1920_v25  ;;  %v2228_v63 = vmul.f32 0.5, %v2227_v47  ;;  %vm2232_vm1 = vweird.f32 %v5806_v55  ;;  %4507 = vrsqrt.f32 %v5819_v41 }
  0xcb   : > { %v5865_v28 = vpop.eup %4503  ;;  %v3300_v36 = vperm.slane %v1924_v59, %v5751_v50  ;;  %v2224_v9 = vsel %vm5839_vm14, %v5768_v60, %v2220_v16  ;;  %v2368_v51 = vmul.f32 0.5, %v2367_v54  ;;  %vm2372_vm2 = vweird.f32 %v5814_v5  ;;  %vm5893_vm9 = vmor %vm2231_vm15, %vm2232_vm1  ;;  %v1569_v59 = vpop.xlane.xlu0 %1568 }
  0xcc   : > { %v2544_v58 = vsel %vm5850_vm4, %v5591_v49, %v5771_v37  ;;  %v3298_v3 = vsel %vm9051_vm11, %v3296_v38, %v5683_v12  ;;  %v3381_v2 = vperm.slane %v2224_v9, %v5380_v26  ;;  %v2229_v11 = vsub.f32 1.5, %v2228_v63  ;;  %vm5910_vm12 = vmor %vm2371_vm5, %vm2372_vm2  ;;  %v337_v49 = vld [vmem:[%s4819_s9 + $0x238] sm:$0xff] }
  0xcd   : > { %v3409_v60 = vperm.slane %v2364_v23, %v5356_v19  ;;  %v5886_v35 = vmul.f32 %v5685_v21, %v1939_v7  ;;  %v5889_v34 = vsel %vm9057_vm7, %v3300_v36, %v3298_v3  ;;  %v2369_v27 = vsub.f32 1.5, %v2368_v51  ;;  %vm5959_vm2 = vmor %vm1941_vm6, %vm1942_vm8 }
  0xce   : > { %v5900_v24 = vpop.eup %4505  ;;  %v3382_v53 = vsel %vm9052_vm10, %v3381_v2, %v5595_v52  ;;  %v2398_v22 = vmul.f32 0.5, %v2397_v42  ;;  %vm2401_vm3 = vweird.f32 %v5717_v30  ;;  %v2230_v23 = vmul.f32 %v5806_v55, %v2229_v11  ;;  %v307_v2 = vld [vmem:[%s4819_s9 + $0x148] sm:$0xff] }
  0xcf   : > { %v2836_v10 = vmul.f32 %v5865_v28, %v5784_v61  ;;  %vm2402_vm14 = vweird.f32 %v5786_v43  ;;  %v2370_v52 = vmul.f32 %v5814_v5, %v2369_v27  ;;  %v2526_v7 = vmul.f32 %v5900_v24, %v5800_v1 }
  0xd0   : > { %v5898_v0 = vpop.xlane.xlu1 %1604  ;;  %v5922_v57 = vmax.f32 %v1434_v48, 1e-16  ;;  %v5924_v15 = vpop.eup %4507  ;;  %v2234_v62 = vsel %vm5893_vm9, %v5806_v55, %v2230_v23  ;;  %vm2531_vm15 = vweird.f32 %v5800_v1  ;;  %v1291_v31 = vmul.f32 %v322_v45, %v322_v45  ;;  %vm6019_vm4 = vmor %vm2401_vm3, %vm2402_vm14 }
  0xd1   : > { %v5916_v38 = vpop.xlane.xlu2 %1379  ;;  %v1350_v25 = vmul.f32 %v5298_v56, %v5298_v56  ;;  %v3383_v4 = vperm.slane %v2234_v62, %v5664_v17  ;;  %v2374_v47 = vsel %vm5910_vm12, %v5814_v5, %v2370_v52  ;;  %v2527_v48 = vmul.f32 %v5900_v24, %v2526_v7  ;;  %v292_v56 = vld [vmem:[%s4819_s9 + $0xd0] sm:$0xff] }
  0xd2   : > { %v2076_v16 = vmul.f32 %v5924_v15, %v5819_v41  ;;  %v2399_v42 = vsub.f32 1.5, %v2398_v22  ;;  %v3410_v55 = vperm.slane %v2374_v47, %v5395_v40  ;;  %v2837_v54 = vmul.f32 %v5865_v28, %v2836_v10 }
  0xd3   : > { %4509 = vrsqrt.f32 %v5922_v57  ;;  %v5944_v63 = vsel %vm9051_vm11, %v3383_v4, %v3382_v53  ;;  %v2528_v36 = vmul.f32 0.5, %v2527_v48  ;;  %vm2532_vm5 = vweird.f32 %v5900_v24  ;;  %v352_v53 = vld [vmem:[%s4819_s9 + $0x2b0] sm:$0xff] }
  0xd4   : > { %v2077_v5 = vmul.f32 %v5924_v15, %v2076_v16  ;;  %v5949_v9 = vsel %vm9050_vm13, %v3410_v55, %v3409_v60  ;;  %vm2081_vm1 = vweird.f32 %v5819_v41  ;;  %v1531_v51 = vsel %vm9053_vm0, %v1291_v31, 0.0  ;;  %vm5970_vm12 = vmor %vm2531_vm15, %vm2532_vm5  ;;  %v293_v55 = vld [vmem:[%s4819_s9 + $0xd8] sm:$0xff] }
  0xd5   : > { %v1708_v3 = vsel %vm9053_vm0, %v1350_v25, 0.0  ;;  %v2529_v12 = vsub.f32 1.5, %v2528_v36  ;;  %vm2082_vm9 = vweird.f32 %v5924_v15  ;;  %1532 = vadd.xlane.f32.xlu0 %v1531_v51  ;;  %v1261_v60 = vmul.f32 %v292_v56, %v292_v56 }
  0xd6   : > { %v2078_v27 = vmul.f32 0.5, %v2077_v5  ;;  %1709 = vadd.xlane.f32.xlu2 %v1708_v3  ;;  %v5975_v46 = vmax.f32 %v5812_v6, 1e-16  ;;  %v5978_v22 = vmax.f32 %v5821_v18, 1e-16  ;;  %v1336_v44 = vmul.f32 %v5265_v39, %v5265_v39  ;;  %vm6009_vm6 = vmor %vm2081_vm1, %vm2082_vm9 }
  0xd7   : > { %v5980_v23 = vmax.f32 %v1569_v59, 1e-16  ;;  %v2530_v10 = vmul.f32 %v5900_v24, %v2529_v12  ;;  %v1441_v1 = vsel %vm9053_vm0, %v1261_v60, 0.0  ;;  %v1276_v7 = vmul.f32 %v307_v2, %v307_v2 }
  0xd8   : > { %v5964_v45 = vpop.xlane.xlu1 %1430  ;;  %v2079_v52 = vsub.f32 1.5, %v2078_v27  ;;  %v5996_v6 = vperm.slane %v2544_v58, %v5380_v26  ;;  %v1944_v39 = vsel %vm5959_vm2, %v5685_v21, %v5886_v35  ;;  %v6003_v18 = vmul.f32 %v5786_v43, %v2399_v42  ;;  %1442 = vadd.xlane.f32.xlu1 %v1441_v1 }
  0xd9   : > { %v5986_v62 = vpop.xlane.xlu2 %1517  ;;  %v5988_v31 = vpop.eup %4509  ;;  %4511 = vrsqrt.f32 %v5975_v46  ;;  %v6023_v33 = vmul.f32 0.5, %v2837_v54  ;;  %v2534_v41 = vsel %vm5970_vm12, %v5900_v24, %v2530_v10  ;;  %v1666_v30 = vsel %vm9053_vm0, %v1336_v44, 0.0 }
  0xda   : > { %v2080_v58 = vmul.f32 %v5924_v15, %v2079_v52  ;;  %v2106_v4 = vmul.f32 %v5988_v31, %v5922_v57  ;;  %v3441_v47 = vperm.slane %v2534_v41, %v5395_v40  ;;  %4513 = vrsqrt.f32 %v5978_v22 }
  0xdb   : > { %v1486_v48 = vsel %vm9053_vm0, %v1276_v7, 0.0  ;;  %4515 = vrsqrt.f32 %v5980_v23  ;;  %v1306_v24 = vmul.f32 %v337_v49, %v337_v49  ;;  %v2404_v54 = vsel %vm6019_vm4, %v5786_v43, %v6003_v18  ;;  %v308_v18 = vld [vmem:[%s4819_s9 + $0x150] sm:$0xff] }
  0xdc   : > { %v2084_v16 = vsel %vm6009_vm6, %v5924_v15, %v2080_v58  ;;  %v2107_v42 = vmul.f32 %v5988_v31, %v2106_v4  ;;  %v6047_v56 = vsel %vm9050_vm13, %v3441_v47, %v5667_v32  ;;  %v6051_v36 = vmax.f32 %v5898_v0, 1e-16  ;;  %v1701_v15 = vpop.xlane.xlu0 %1700  ;;  %v4743_v4 = vld [vmem:[%s4819_s9 + $0x3a0] sm:$0xff] }
  0xdd   : > { %v3354_v59 = vperm.slane %v2084_v16, %v5751_v50  ;;  %1667 = vadd.xlane.f32.xlu0 %v1666_v30  ;;  %v1576_v51 = vsel %vm9053_vm0, %v1306_v24, 0.0  ;;  %v6055_v3 = vmax.f32 %v5916_v38, 1e-16  ;;  %v6057_v2 = vmax.f32 %v1701_v15, 1e-16 }
  0xde   : > { %v2108_v5 = vmul.f32 0.5, %v2107_v42  ;;  %1487 = vadd.xlane.f32.xlu2 %v1486_v48  ;;  %v6066_v0 = vadd.s32 4294967240, %v5356_v19  ;;  %4517 = vrsqrt.f32 %v6051_v36  ;;  %v1262_v27 = vmul.f32 %v293_v55, %v293_v55 }
  0xdf   : > { %v6059_v12 = vpop.eup %4511  ;;  %v6063_v32 = vsel %vm9057_vm7, %v3354_v59, %v5804_v29  ;;  %v2839_v60 = vsub.f32 1.5, %v6023_v33  ;;  %vm2111_vm8 = vweird.f32 %v5922_v57  ;;  %4519 = vrsqrt.f32 %v6055_v3 }
  0xe0   : > { %v2236_v38 = vmul.f32 %v6059_v12, %v5975_v46  ;;  %v6075_v44 = vpop.xlane.xlu1 %1565  ;;  %v6077_v29 = vpop.eup %4513  ;;  %vm2241_vm3 = vweird.f32 %v5975_v46  ;;  %vm2381_vm14 = vweird.f32 %v5978_v22  ;;  %vm2561_vm15 = vweird.f32 %v5980_v23  ;;  %1577 = vadd.xlane.f32.xlu1 %v1576_v51 }
  0xe1   : > { %4521 = vrsqrt.f32 %v6057_v2  ;;  %v6083_v10 = vpop.eup %4515  ;;  %vm2841_vm5 = vweird.f32 %v5784_v61  ;;  %vm2842_vm1 = vweird.f32 %v5865_v28  ;;  %v2109_v52 = vsub.f32 1.5, %v2108_v5  ;;  %v6091_v25 = vpop.xlane.xlu2 %1607 }
  0xe2   : > { %vm2112_vm9 = vweird.f32 %v5988_v31  ;;  %v2237_v1 = vmul.f32 %v6059_v12, %v2236_v38  ;;  %v2376_v7 = vmul.f32 %v6077_v29, %v5978_v22  ;;  %v2556_v49 = vmul.f32 %v6083_v10, %v5980_v23 }
  0xe3   : > { %v1444_v41 = vsel %vm9053_vm0, %v1262_v27, 0.0  ;;  %v1321_v58 = vmul.f32 %v352_v53, %v352_v53  ;;  %v1351_v47 = vmul.f32 %v4743_v4, %v4743_v4  ;;  %vm2242_vm12 = vweird.f32 %v6059_v12 }
  0xe4   : > { %v2238_v30 = vmul.f32 0.5, %v2237_v1  ;;  %v2377_v48 = vmul.f32 %v6077_v29, %v2376_v7  ;;  %vm9056_vm6 = vcmask 392512   ;;  %v6099_v16 = vpop.eup %4517  ;;  %vm2382_vm13 = vweird.f32 %v6077_v29  ;;  %vm6117_vm10 = vmor %vm2241_vm3, %vm2242_vm12 }
  0xe5   : > { %v2557_v42 = vmul.f32 %v6083_v10, %v2556_v49  ;;  %vm1931_vm11 = vweird.f32 %v6055_v3  ;;  %v1621_v24 = vsel %vm9053_vm0, %v1321_v58, 0.0  ;;  %v6105_v55 = vpop.eup %4519  ;;  %v2676_v5 = vmul.f32 %v6099_v16, %v6051_v36  ;;  %1445 = vadd.xlane.f32.xlu0 %v1444_v41  ;;  %vm6142_vm3 = vmor %vm2381_vm14, %vm2382_vm13 }
  0xe6   : > { %v2239_v59 = vsub.f32 1.5, %v2238_v30  ;;  %v2378_v15 = vmul.f32 0.5, %v2377_v48  ;;  %1622 = vadd.xlane.f32.xlu2 %v1621_v24  ;;  %v1711_v51 = vsel %vm9053_vm0, %v1351_v47, 0.0  ;;  %v2110_v38 = vmul.f32 %v5988_v31, %v2109_v52  ;;  %vm6130_vm0 = vmor %vm2111_vm8, %vm2112_vm9  ;;  %v1437_v24 = vpop.xlane.xlu0 %1436 }
  0xe7   : > { %v6110_v27 = vpop.eup %4521  ;;  %v2558_v1 = vmul.f32 0.5, %v2557_v42  ;;  %v1926_v7 = vmul.f32 %v6105_v55, %v6055_v3  ;;  %v6124_v49 = vmax.f32 %v5964_v45, 1e-16  ;;  %v2677_v58 = vmul.f32 %v6099_v16, %v2676_v5 }
  0xe8   : > { %v2240_v46 = vmul.f32 %v6059_v12, %v2239_v59  ;;  %v2379_v41 = vsub.f32 1.5, %v2378_v15  ;;  %v2996_v4 = vmul.f32 %v6110_v27, %v6057_v2  ;;  %vm2562_vm8 = vweird.f32 %v6083_v10  ;;  %1712 = vadd.xlane.f32.xlu1 %v1711_v51  ;;  %v6154_v59 = vpop.xlane.xlu1 %1655 }
  0xe9   : > { %v2559_v57 = vsub.f32 1.5, %v2558_v1  ;;  %v1927_v47 = vmul.f32 %v6105_v55, %v1926_v7  ;;  %4523 = vrsqrt.f32 %v6124_v49  ;;  %v2678_v42 = vmul.f32 0.5, %v2677_v58  ;;  %v353_v7 = vld [vmem:[%s4819_s9 + $0x2b8] sm:$0xff] }
  0xea   : > { %v2244_v30 = vsel %vm6117_vm10, %v6059_v12, %v2240_v46  ;;  %v2380_v48 = vmul.f32 %v6077_v29, %v2379_v41  ;;  %v2997_v22 = vmul.f32 %v6110_v27, %v2996_v4  ;;  %vm1932_vm13 = vweird.f32 %v6105_v55  ;;  %vm6174_vm10 = vmor %vm2561_vm15, %vm2562_vm8  ;;  %v338_v46 = vld [vmem:[%s4819_s9 + $0x240] sm:$0xff]  ;;  %v277_v41 = vld [vmem:[%s4819_s9 + $0x58] sm:$0xff] }
  0xeb   : > { %v3385_v15 = vperm.slane %v2244_v30, %v5751_v50  ;;  %v2560_v5 = vmul.f32 %v6083_v10, %v2559_v57  ;;  %v1928_v1 = vmul.f32 0.5, %v1927_v47  ;;  %v6162_v51 = vmul.f32 %v5865_v28, %v2839_v60  ;;  %v6183_v60 = vpop.xlane.xlu2 %1475  ;;  %vm6209_vm15 = vmor %vm1931_vm11, %vm1932_vm13 }
  0xec   : > { %v2114_v12 = vsel %vm6130_vm0, %v5988_v31, %v2110_v38  ;;  %v2384_v53 = vsel %vm6142_vm3, %v6077_v29, %v2380_v48  ;;  %v6181_v33 = vsel %vm9056_vm6, %v5721_v14, %v6063_v32  ;;  %vm6189_vm0 = vmor %vm2841_vm5, %vm2842_vm1  ;;  %v2679_v38 = vsub.f32 1.5, %v2678_v42 }
  0xed   : > { %v6195_v23 = vsel %vm9057_vm7, %v3385_v15, %v5944_v63  ;;  %v3412_v29 = vperm.slane %v2384_v53, %v5380_v26  ;;  %v1929_v14 = vsub.f32 1.5, %v1928_v1  ;;  %v6204_v61 = vperm.slane %v1944_v39, %v5711_v13  ;;  %v323_v1 = vld [vmem:[%s4819_s9 + $0x1c8] sm:$0xff]  ;;  %v278_v63 = vld [vmem:[%s4819_s9 + $0x60] sm:$0xff] }
  0xee   : > { %vm2681_vm14 = vweird.f32 %v6051_v36  ;;  %v6213_v32 = vmul.f32 0.5, %v2997_v22  ;;  %v6216_v52 = vmax.f32 %v5986_v62, 1e-16  ;;  %vm9121_vm2 = vcmask 195712   ;;  %v1572_v15 = vpop.xlane.xlu0 %1571 }
  0xef   : > { %v6218_v11 = vpop.eup %4523  ;;  %v6222_v21 = vsel %vm9121_vm2, %v3412_v29, %v5949_v9  ;;  %v2564_v35 = vsel %vm6174_vm10, %v6083_v10, %v2560_v5  ;;  %vm2682_vm11 = vweird.f32 %v6099_v16  ;;  %v1930_v39 = vmul.f32 %v6105_v55, %v1929_v14  ;;  %vm9124_vm3 = vmmov %vm9121_vm2  ;;  %v383_v5 = vld [vmem:[%s4819_s9 + $0x3a8] sm:$0xff] }
  0xf0   : > { %v6235_v62 = vperm.slane %v2404_v54, %v5751_v50  ;;  %v2844_v9 = vsel %vm6189_vm0, %v5865_v28, %v6162_v51  ;;  %v6242_v3 = vperm.slane %v2114_v12, %v6066_v0  ;;  %v2096_v10 = vmul.f32 %v6218_v11, %v6124_v49  ;;  %vm6260_vm5 = vmor %vm2681_vm14, %vm2682_vm11 }
  0xf1   : > { %v2680_v37 = vmul.f32 %v6099_v16, %v2679_v38  ;;  %v1934_v43 = vsel %vm6209_vm15, %v6105_v55, %v1930_v39  ;;  %vm2101_vm4 = vweird.f32 %v6124_v49  ;;  %4525 = vrsqrt.f32 %v6216_v52 }
  0xf2   : > { %v6256_v54 = vperm.slane %v2564_v35, %v5751_v50  ;;  %v3304_v4 = vperm.slane %v1934_v43, %v5431_v8  ;;  %v2999_v55 = vsub.f32 1.5, %v6213_v32  ;;  %v2097_v45 = vmul.f32 %v6218_v11, %v2096_v10 }
  0xf3   : > { %vm2102_vm1 = vweird.f32 %v6218_v11  ;;  %vm9054_vm9 = vcmask 523712   ;;  %v6268_v57 = vmax.f32 %v1437_v24, 1e-16  ;;  %v1307_v47 = vmul.f32 %v338_v46, %v338_v46  ;;  %v6281_v24 = vpop.xlane.xlu1 %1478  ;;  %v6297_v14 = vpop.xlane.xlu2 %1610 }
  0xf4   : > { %v1246_v36 = vmul.f32 %v277_v41, %v277_v41  ;;  %v6272_v30 = vsel %vm9056_vm6, %v3304_v4, %v5889_v34  ;;  %vm9055_vm12 = vcmask 458112   ;;  %v2098_v48 = vmul.f32 0.5, %v2097_v45  ;;  %vm6305_vm14 = vmor %vm2101_vm4, %vm2102_vm1 }
  0xf5   : > { %v1277_v42 = vmul.f32 %v308_v18, %v308_v18  ;;  %v6277_v22 = vsel %vm9124_vm3, %v5996_v6, %v6047_v56  ;;  %v2684_v12 = vsel %vm6260_vm5, %v6099_v16, %v2680_v37  ;;  %4527 = vrsqrt.f32 %v6268_v57  ;;  %v309_v18 = vld [vmem:[%s4819_s9 + $0x158] sm:$0xff] }
  0xf6   : > { %vm9125_vm8 = vcmask 261120   ;;  %v2099_v29 = vsub.f32 1.5, %v2098_v48  ;;  %v6292_v56 = vmax.f32 %v6075_v44, 1e-16  ;;  %v6295_v38 = vmax.f32 %v6091_v25, 1e-16 }
  0xf7   : > { %v1579_v34 = vsel %vm9125_vm8, %v1307_v47, 0.0  ;;  %vm9126_vm13 = vmmov %vm9125_vm8  ;;  %v6299_v16 = vpop.eup %4525  ;;  %v6310_v35 = vadd.s32 4294967232, %v5356_v19  ;;  %v6312_v44 = vmax.f32 %v1572_v15, 1e-16  ;;  %v1352_v25 = vmul.f32 %v383_v5, %v383_v5 }
  0xf8   : > { %v1396_v53 = vsel %vm9126_vm13, %v1246_v36, 0.0  ;;  %1580 = vadd.xlane.f32.xlu0 %v1579_v34  ;;  %vm9127_vm10 = vmmov %vm9125_vm8  ;;  %v1292_v39 = vmul.f32 %v323_v1, %v323_v1  ;;  %v2100_v10 = vmul.f32 %v6218_v11, %v2099_v29  ;;  %v2386_v46 = vmul.f32 %v6299_v16, %v6216_v52 }
  0xf9   : > { %1397 = vadd.xlane.f32.xlu2 %v1396_v53  ;;  %v1489_v6 = vsel %vm9127_vm10, %v1277_v42, 0.0  ;;  %4529 = vrsqrt.f32 %v6292_v56  ;;  %v1322_v49 = vmul.f32 %v353_v7, %v353_v7  ;;  %v6319_v41 = vperm.slane %v2684_v12, %v5356_v19  ;;  %vm9130_vm5 = vmmov %vm9125_vm8 }
  0xfa   : > { %1490 = vadd.xlane.f32.xlu1 %v1489_v6  ;;  %vm2391_vm15 = vweird.f32 %v6216_v52  ;;  %vm2121_vm2 = vweird.f32 %v6268_v57  ;;  %4531 = vrsqrt.f32 %v6295_v38  ;;  %v2104_v37 = vsel %vm6305_vm14, %v6218_v11, %v2100_v10  ;;  %vm9131_vm1 = vmmov %vm9130_vm5 }
  0xfb   : > { %v2387_v43 = vmul.f32 %v6299_v16, %v2386_v46  ;;  %vm2392_vm11 = vweird.f32 %v6299_v16  ;;  %4533 = vrsqrt.f32 %v6312_v44  ;;  %v6331_v58 = vpop.eup %4527  ;;  %v3358_v4 = vperm.slane %v2104_v37, %v5711_v13  ;;  %vm9132_vm8 = vmmov %vm9131_vm1  ;;  %v6385_v46 = vpop.xlane.xlu2 %1385 }
  0xfc   : > { %vm2551_vm4 = vweird.f32 %v6292_v56  ;;  %v1714_v45 = vsel %vm9130_vm5, %v1352_v25, 0.0  ;;  %v1534_v47 = vsel %vm9131_vm1, %v1292_v39, 0.0  ;;  %v6338_v36 = vmax.f32 %v6154_v59, 1e-16  ;;  %vm6368_vm14 = vmor %vm2391_vm15, %vm2392_vm11 }
  0xfd   : > { %v2388_v11 = vmul.f32 0.5, %v2387_v43  ;;  %v2116_v48 = vmul.f32 %v6331_v58, %v6268_v57  ;;  %vm2691_vm3 = vweird.f32 %v6295_v38  ;;  %v1624_v42 = vsel %vm9132_vm8, %v1322_v49, 0.0 }
  0xfe   : > { %v6345_v15 = vmax.f32 %v6183_v60, 1e-16  ;;  %v3359_v5 = vsel %vm9055_vm12, %v3358_v4, %v6181_v33  ;;  %vm2571_vm13 = vweird.f32 %v6312_v44  ;;  %4535 = vrsqrt.f32 %v6338_v36  ;;  %v368_v33 = vld [vmem:[%s4819_s9 + $0x330] sm:$0xff]  ;;  %v6360_v60 = vpop.xlane.xlu1 %1613 }
  0xff   : > { %v1278_v59 = vmul.f32 %v309_v18, %v309_v18  ;;  %v6351_v1 = vpop.eup %4529  ;;  %v2389_v12 = vsub.f32 1.5, %v2388_v11  ;;  %vm9060_vm10 = vcmask 589312   ;;  %v2117_v34 = vmul.f32 %v6331_v58, %v2116_v48 }
 0x100   : > { %v6356_v53 = vsel %vm9054_vm9, %v6242_v3, %v3359_v5  ;;  %1715 = vadd.xlane.f32.xlu0 %v1714_v45  ;;  %4537 = vrsqrt.f32 %v6345_v15  ;;  %v6362_v7 = vpop.eup %4531  ;;  %vm2122_vm5 = vweird.f32 %v6331_v58  ;;  %v2546_v3 = vmul.f32 %v6351_v1, %v6292_v56 }
 0x101   : > { %1535 = vadd.xlane.f32.xlu2 %v1534_v47  ;;  %vm2552_vm1 = vweird.f32 %v6351_v1  ;;  %v1492_v6 = vsel %vm9132_vm8, %v1278_v59, 0.0  ;;  %v6378_v25 = vpop.eup %4533  ;;  %v2390_v39 = vmul.f32 %v6299_v16, %v2389_v12  ;;  %v2118_v52 = vmul.f32 0.5, %v2117_v34  ;;  %vm6405_vm7 = vmor %vm2121_vm2, %vm2122_vm5 }
 0x102   : > { %1625 = vadd.xlane.f32.xlu1 %v1624_v42  ;;  %v2686_v10 = vmul.f32 %v6362_v7, %v6295_v38  ;;  %vm2692_vm15 = vweird.f32 %v6362_v7  ;;  %vm2851_vm11 = vweird.f32 %v6338_v36  ;;  %v2547_v49 = vmul.f32 %v6351_v1, %v2546_v3  ;;  %vm6430_vm5 = vmor %vm2551_vm4, %vm2552_vm1 }
 0x103   : > { %v2566_v37 = vmul.f32 %v6378_v25, %v6312_v44  ;;  %vm2572_vm8 = vweird.f32 %v6378_v25  ;;  %vm2251_vm9 = vweird.f32 %v6345_v15  ;;  %v1337_v43 = vmul.f32 %v368_v33, %v368_v33 }
 0x104   : > { %v2394_v18 = vsel %vm6368_vm14, %v6299_v16, %v2390_v39  ;;  %v2119_v4 = vsub.f32 1.5, %v2118_v52  ;;  %v2687_v45 = vmul.f32 %v6362_v7, %v2686_v10  ;;  %v1247_v47 = vmul.f32 %v278_v63, %v278_v63  ;;  %v6396_v11 = vpop.eup %4535  ;;  %vm6452_vm4 = vmor %vm2571_vm13, %vm2572_vm8 }
 0x105   : > { %vm3002_vm6 = vweird.f32 %v6110_v27  ;;  %v3414_v48 = vperm.slane %v2394_v18, %v5664_v17  ;;  %v2548_v16 = vmul.f32 0.5, %v2547_v49  ;;  %v2567_v5 = vmul.f32 %v6378_v25, %v2566_v37 }
 0x106   : > { %vm9137_vm14 = vcmask 261120   ;;  %v6411_v12 = vpop.eup %4537  ;;  %v2120_v34 = vmul.f32 %v6331_v58, %v2119_v4  ;;  %v2688_v33 = vmul.f32 0.5, %v2687_v45  ;;  %v2846_v29 = vmul.f32 %v6396_v11, %v6338_v36  ;;  %v6460_v42 = vpop.xlane.xlu1 %1703 }
 0x107   : > { %v1669_v59 = vsel %vm9137_vm14, %v1337_v43, 0.0  ;;  %vm2852_vm12 = vweird.f32 %v6396_v11  ;;  %vm9138_vm2 = vcmask 261312   ;;  %v2549_v3 = vsub.f32 1.5, %v2548_v16  ;;  %v6462_v16 = vpop.xlane.xlu2 %1523 }
 0x108   : > { %v6419_v57 = vsel %vm9138_vm2, %v3414_v48, %v6222_v21  ;;  %v2568_v63 = vmul.f32 0.5, %v2567_v5  ;;  %v2246_v39 = vmul.f32 %v6411_v12, %v6345_v15  ;;  %v2124_v52 = vsel %vm6405_vm7, %v6331_v58, %v2120_v34  ;;  %1493 = vadd.xlane.f32.xlu0 %v1492_v6  ;;  %vm6442_vm7 = vmor %vm2691_vm3, %vm2692_vm15 }
 0x109   : > { %v2689_v49 = vsub.f32 1.5, %v2688_v33  ;;  %v2847_v21 = vmul.f32 %v6396_v11, %v2846_v29  ;;  %vm2252_vm14 = vweird.f32 %v6411_v12  ;;  %1670 = vadd.xlane.f32.xlu2 %v1669_v59  ;;  %v3362_v37 = vperm.slane %v2124_v52, %v6310_v35  ;;  %vm6489_vm3 = vmor %vm2851_vm11, %vm2852_vm12  ;;  %v294_v52 = vld [vmem:[%s4819_s9 + $0xe0] sm:$0xff] }
 0x10a   : > { %v2550_v43 = vmul.f32 %v6351_v1, %v2549_v3  ;;  %v2569_v58 = vsub.f32 1.5, %v2568_v63  ;;  %v2247_v18 = vmul.f32 %v6411_v12, %v2246_v39  ;;  %vm9145_vm1 = vcmask 261120   ;;  %vm9148_vm13 = vmmov %vm9138_vm2 }
 0x10b   : > { %v2690_v4 = vmul.f32 %v6362_v7, %v2689_v49  ;;  %v2848_v45 = vmul.f32 0.5, %v2847_v21  ;;  %v1399_v38 = vsel %vm9145_vm1, %v1247_v47, 0.0  ;;  %v6458_v48 = vmax.f32 %v6281_v24, 1e-16  ;;  %vm6501_vm15 = vmor %vm2251_vm9, %vm2252_vm14 }
 0x10c   : > { %v6466_v5 = vsel %vm9060_vm10, %v3362_v37, %v6356_v53  ;;  %v2554_v44 = vsel %vm6430_vm5, %v6351_v1, %v2550_v43  ;;  %v2570_v59 = vmul.f32 %v6378_v25, %v2569_v58  ;;  %v2248_v34 = vmul.f32 0.5, %v2247_v18  ;;  %1400 = vadd.xlane.f32.xlu1 %v1399_v38  ;;  %v354_v53 = vld [vmem:[%s4819_s9 + $0x2c0] sm:$0xff]  ;;  %v324_v37 = vld [vmem:[%s4819_s9 + $0x1d0] sm:$0xff]  ;;  %vm9157_vm0 = vmmov %vm9145_vm1 }
 0x10d   : > { %v3445_v24 = vperm.slane %v2554_v44, %v5664_v17  ;;  %v2694_v47 = vsel %vm6442_vm7, %v6362_v7, %v2690_v4  ;;  %v2849_v33 = vsub.f32 1.5, %v2848_v45  ;;  %4539 = vrsqrt.f32 %v6458_v48  ;;  %v279_v18 = vld [vmem:[%s4819_s9 + $0x68] sm:$0xff]  ;;  %vm9160_vm14 = vmmov %vm9157_vm0  ;;  %v325_v7 = vld [vmem:[%s4819_s9 + $0x1d8] sm:$0xff] }
 0x10e   : > { %v3000_v1 = vmul.f32 %v6110_v27, %v2999_v55  ;;  %v3472_v29 = vperm.slane %v2694_v47, %v5395_v40  ;;  %v2574_v3 = vsel %vm6452_vm4, %v6378_v25, %v2570_v59  ;;  %v2249_v63 = vsub.f32 1.5, %v2248_v34  ;;  %v1482_v4 = vpop.xlane.xlu1 %1481  ;;  %v369_v59 = vld [vmem:[%s4819_s9 + $0x338] sm:$0xff]  ;;  %vm9162_vm1 = vmmov %vm9157_vm0 }
 0x10f   : > { %v3446_v32 = vsel %vm9148_vm13, %v3445_v24, %v6277_v22  ;;  %v3449_v55 = vperm.slane %v2574_v3, %v5431_v8  ;;  %v2850_v39 = vmul.f32 %v6396_v11, %v2849_v33  ;;  %v6506_v36 = vmax.f32 %v6297_v14, 1e-16  ;;  %v6556_v6 = vpop.xlane.xlu2 %1658 }
 0x110   : > { %vm9151_vm12 = vcmask 130112   ;;  %vm9152_vm11 = vcmask 326912   ;;  %v2250_v49 = vmul.f32 %v6411_v12, %v2249_v63  ;;  %v1323_v21 = vmul.f32 %v354_v53, %v354_v53 }
 0x111   : > { %v6511_v10 = vsel %vm9151_vm12, %v3472_v29, %v6319_v41  ;;  %v3448_v22 = vsel %vm9152_vm11, %v6256_v54, %v3446_v32  ;;  %v3502_v14 = vperm.slane %v2844_v9, %v5356_v19  ;;  %vm9153_vm9 = vweird.f32 %v6057_v2  ;;  %vm9159_vm5 = vmmov %vm9151_vm12 }
 0x112   : > { %vm6527_vm8 = vmor %vm9153_vm9, %vm3002_vm6  ;;  %vm9156_vm2 = vcmask 392512   ;;  %v2854_v31 = vsel %vm6489_vm3, %v6396_v11, %v2850_v39  ;;  %4541 = vrsqrt.f32 %v6506_v36  ;;  %v2254_v2 = vsel %vm6501_vm15, %v6411_v12, %v2250_v49  ;;  %v339_v12 = vld [vmem:[%s4819_s9 + $0x248] sm:$0xff] }
 0x113   : > { %v6532_v54 = vsel %vm9156_vm2, %v3449_v55, %v3448_v22  ;;  %v3503_v28 = vperm.slane %v2854_v31, %v5395_v40  ;;  %v1627_v51 = vsel %vm9157_vm0, %v1323_v21, 0.0  ;;  %v1263_v9 = vmul.f32 %v294_v52, %v294_v52  ;;  %v6543_v15 = vpop.eup %4539  ;;  %vm9161_vm7 = vmmov %vm9156_vm2  ;;  %v295_v22 = vld [vmem:[%s4819_s9 + $0xe8] sm:$0xff] }
 0x114   : > { %v3387_v43 = vperm.slane %v2254_v2, %v5431_v8  ;;  %1628 = vadd.xlane.f32.xlu0 %v1627_v51  ;;  %v1293_v56 = vmul.f32 %v324_v37, %v324_v37  ;;  %v6547_v11 = vmax.f32 %v6360_v60, 1e-16  ;;  %vm9158_vm6 = vcmask 458112   ;;  %vm9163_vm3 = vmmov %vm9152_vm11 }
 0x115   : > { %v6552_v58 = vsel %vm9158_vm6, %v6204_v61, %v6272_v30  ;;  %v3004_v45 = vsel %vm6527_vm8, %v6110_v27, %v3000_v1  ;;  %v6562_v38 = vsel %vm9159_vm5, %v3503_v28, %v3502_v14  ;;  %v2256_v60 = vmul.f32 %v6543_v15, %v6458_v48  ;;  %vm9164_vm11 = vmmov %vm9157_vm0 }
 0x116   : > { %v1447_v44 = vsel %vm9160_vm14, %v1263_v9, 0.0  ;;  %v6570_v61 = vsel %vm9161_vm7, %v3387_v43, %v6195_v23  ;;  %vm2261_vm4 = vweird.f32 %v6458_v48  ;;  %v1537_v30 = vsel %vm9162_vm1, %v1293_v56, 0.0  ;;  %vm9165_vm9 = vmmov %vm9157_vm0  ;;  %v6629_v31 = vpop.xlane.xlu1 %1222 }
 0x117   : > { %1448 = vadd.xlane.f32.xlu2 %v1447_v44  ;;  %4543 = vrsqrt.f32 %v6547_v11  ;;  %v2257_v27 = vmul.f32 %v6543_v15, %v2256_v60  ;;  %1538 = vadd.xlane.f32.xlu1 %v1537_v30  ;;  %v6577_v34 = vmax.f32 %v6385_v46, 1e-16  ;;  %v1248_v24 = vmul.f32 %v279_v18, %v279_v18  ;;  %v6619_v49 = vpop.xlane.xlu2 %1388  ;;  %vm9170_vm1 = vmmov %vm9157_vm0 }
 0x118   : > { %v1308_v47 = vmul.f32 %v339_v12, %v339_v12  ;;  %v6579_v33 = vpop.eup %4541  ;;  %v1338_v23 = vmul.f32 %v369_v59, %v369_v59  ;;  %v6582_v53 = vmax.f32 %v6460_v42, 1e-16  ;;  %v6587_v1 = vsel %vm9163_vm3, %v6235_v62, %v6419_v57  ;;  %v384_v57 = vld [vmem:[%s4819_s9 + $0x3b0] sm:$0xff]  ;;  %vm9171_vm3 = vmmov %vm9157_vm0 }
 0x119   : > { %v6590_v29 = vmax.f32 %v6462_v16, 1e-16  ;;  %v2258_v3 = vmul.f32 0.5, %v2257_v27  ;;  %vm2262_vm13 = vweird.f32 %v6543_v15  ;;  %v2696_v46 = vmul.f32 %v6579_v33, %v6506_v36 }
 0x11a   : > { %4545 = vrsqrt.f32 %v6577_v34  ;;  %v6598_v42 = vperm.slane %v3004_v45, %v5356_v19  ;;  %vm2701_vm15 = vweird.f32 %v6506_v36  ;;  %vm2711_vm12 = vweird.f32 %v6547_v11  ;;  %vm6611_vm8 = vmor %vm2261_vm4, %vm2262_vm13  ;;  %v6653_v45 = vpop.xlane.xlu0 %469 }
 0x11b   : > { %v1402_v62 = vsel %vm9164_vm11, %v1248_v24, 0.0  ;;  %v2259_v16 = vsub.f32 1.5, %v2258_v3  ;;  %v2697_v63 = vmul.f32 %v6579_v33, %v2696_v46  ;;  %v1582_v32 = vsel %vm9165_vm9, %v1308_v47, 0.0  ;;  %v370_v47 = vld [vmem:[%s4819_s9 + $0x340] sm:$0xff]  ;;  %vm9173_vm11 = vmmov %vm9157_vm0 }
 0x11c   : > { %4547 = vrsqrt.f32 %v6582_v53  ;;  %vm2702_vm2 = vweird.f32 %v6579_v33  ;;  %1403 = vadd.xlane.f32.xlu0 %v1402_v62  ;;  %v1672_v25 = vsel %vm9157_vm0, %v1338_v23, 0.0  ;;  %v1294_v52 = vmul.f32 %v325_v7, %v325_v7 }
 0x11d   : > { %v6607_v55 = vpop.eup %4543  ;;  %4549 = vrsqrt.f32 %v6590_v29  ;;  %v2260_v21 = vmul.f32 %v6543_v15, %v2259_v16  ;;  %v2698_v37 = vmul.f32 0.5, %v2697_v63  ;;  %v1353_v14 = vmul.f32 %v384_v57, %v384_v57  ;;  %vm6643_vm4 = vmor %vm2701_vm15, %vm2702_vm2  ;;  %v340_v63 = vld [vmem:[%s4819_s9 + $0x250] sm:$0xff] }
 0x11e   : > { %v2706_v48 = vmul.f32 %v6607_v55, %v6547_v11  ;;  %vm2712_vm6 = vweird.f32 %v6607_v55  ;;  %vm1951_vm5 = vweird.f32 %v6577_v34  ;;  %vm3011_vm14 = vweird.f32 %v6582_v53  ;;  %v6715_v18 = vpop.xlane.xlu1 %1616 }
 0x11f   : > { %1583 = vadd.xlane.f32.xlu2 %v1582_v32  ;;  %v6627_v41 = vmax.f32 %v1482_v4, 1e-16  ;;  %v2264_v2 = vsel %vm6611_vm8, %v6543_v15, %v2260_v21  ;;  %v2699_v51 = vsub.f32 1.5, %v2698_v37  ;;  %1673 = vadd.xlane.f32.xlu1 %v1672_v25  ;;  %vm2411_vm7 = vweird.f32 %v6590_v29  ;;  %vm6682_vm9 = vmor %vm2711_vm12, %vm2712_vm6  ;;  %v6696_v21 = vpop.xlane.xlu2 %1526 }
 0x120   : > { %v6631_v28 = vpop.eup %4545  ;;  %v2707_v9 = vmul.f32 %v6607_v55, %v2706_v48  ;;  %v1264_v43 = vmul.f32 %v295_v22, %v295_v22  ;;  %v3389_v56 = vperm.slane %v2264_v2, %v5711_v13  ;;  %v1540_v12 = vsel %vm9170_vm1, %v1294_v52, 0.0 }
 0x121   : > { %v1946_v15 = vmul.f32 %v6631_v28, %v6577_v34  ;;  %v6651_v4 = vmax.f32 %v6556_v6, 1e-16  ;;  %v2700_v44 = vmul.f32 %v6579_v33, %v2699_v51  ;;  %v1717_v59 = vsel %vm9171_vm3, %v1353_v14, 0.0 }
 0x122   : > { %v6655_v60 = vpop.eup %4547  ;;  %v2708_v36 = vmul.f32 0.5, %v2707_v9  ;;  %4551 = vrsqrt.f32 %v6627_v41  ;;  %vm9172_vm13 = vcmask 458112   ;;  %vm1952_vm15 = vweird.f32 %v6631_v28 }
 0x123   : > { %v6660_v30 = vpop.eup %4549  ;;  %v6664_v27 = vsel %vm9172_vm13, %v3389_v56, %v6570_v61  ;;  %v1947_v6 = vmul.f32 %v6631_v28, %v1946_v15  ;;  %v3006_v24 = vmul.f32 %v6655_v60, %v6582_v53  ;;  %v2704_v23 = vsel %vm6643_vm4, %v6579_v33, %v2700_v44  ;;  %v310_v33 = vld [vmem:[%s4819_s9 + $0x160] sm:$0xff]  ;;  %vm6707_vm0 = vmor %vm1951_vm5, %vm1952_vm15 }
 0x124   : > { %v2709_v3 = vsub.f32 1.5, %v2708_v36  ;;  %v2406_v46 = vmul.f32 %v6660_v30, %v6590_v29  ;;  %v1450_v61 = vsel %vm9173_vm11, %v1264_v43, 0.0  ;;  %v3474_v7 = vperm.slane %v2704_v23, %v5380_v26  ;;  %1541 = vadd.xlane.f32.xlu0 %v1540_v12  ;;  %vm9184_vm13 = vmmov %vm9170_vm1 }
 0x125   : > { %v1948_v57 = vmul.f32 0.5, %v1947_v6  ;;  %v3007_v16 = vmul.f32 %v6655_v60, %v3006_v24  ;;  %4553 = vrsqrt.f32 %v6651_v4  ;;  %vm3012_vm8 = vweird.f32 %v6655_v60 }
 0x126   : > { %v2710_v32 = vmul.f32 %v6607_v55, %v2709_v3  ;;  %v2407_v39 = vmul.f32 %v6660_v30, %v2406_v46  ;;  %v1339_v25 = vmul.f32 %v370_v47, %v370_v47  ;;  %vm9176_vm12 = vcmask 195712   ;;  %vm6721_vm6 = vmor %vm3011_vm14, %vm3012_vm8  ;;  %v1707_v47 = vpop.xlane.xlu0 %1706  ;;  %v1392_v34 = vpop.xlane.xlu1 %1391 }
 0x127   : > { %v3475_v11 = vsel %vm9176_vm12, %v3474_v7, %v6511_v10  ;;  %v1949_v52 = vsub.f32 1.5, %v1948_v57  ;;  %v3008_v22 = vmul.f32 0.5, %v3007_v16  ;;  %vm2412_vm2 = vweird.f32 %v6660_v30  ;;  %1718 = vadd.xlane.f32.xlu2 %v1717_v59  ;;  %1451 = vadd.xlane.f32.xlu1 %v1450_v61  ;;  %v585_v61 = vpop.f32.mrf.mxu1  ;;  %v855_v7 = vpop.f32.mrf.mxu0 }
 0x128   : > { %v6698_v37 = vpop.eup %4551  ;;  %v2714_v48 = vsel %vm6682_vm9, %v6607_v55, %v2710_v32  ;;  %v2408_v10 = vmul.f32 0.5, %v2407_v39  ;;  %v1279_v2 = vmul.f32 %v310_v33, %v310_v33  ;;  %v1309_v51 = vmul.f32 %v340_v63, %v340_v63  ;;  %vm6741_vm14 = vmor %vm2411_vm7, %vm2412_vm2  ;;  %588 = vst [vmem:[#allocation3] sm:$0x1] %v585_v61  ;;  %v296_v39 = vld [vmem:[%s4819_s9 + $0xf0] sm:$0xff]  ;;  %v1662_v14 = vpop.xlane.xlu2 %1661  ;;  %v311_v61 = vld [vmem:[%s4819_s9 + $0x168] sm:$0xff] }
 0x129   : > { %v3476_v9 = vperm.slane %v2714_v48, %v5664_v17  ;;  %v1950_v43 = vmul.f32 %v6631_v28, %v1949_v52  ;;  %v3009_v56 = vsub.f32 1.5, %v3008_v22  ;;  %v2266_v55 = vmul.f32 %v6698_v37, %v6627_v41  ;;  %vm9185_vm7 = vmmov %vm9170_vm1  ;;  %858 = vst [vmem:[#allocation3 + $0x3] sm:$0x1] %v855_v7  ;;  %v385_v52 = vld [vmem:[%s4819_s9 + $0x3b8] sm:$0xff] }
 0x12a   : > { %v2409_v15 = vsub.f32 1.5, %v2408_v10  ;;  %vm2271_vm5 = vweird.f32 %v6627_v41  ;;  %vm2272_vm4 = vweird.f32 %v6698_v37  ;;  %v1675_v12 = vsel %vm9170_vm1, %v1339_v25, 0.0 }
 0x12b   : > { %v6728_v44 = vpop.eup %4553  ;;  %vm9181_vm3 = vcmask 261312   ;;  %v1954_v53 = vsel %vm6707_vm0, %v6631_v28, %v1950_v43  ;;  %v3010_v59 = vmul.f32 %v6655_v60, %v3009_v56  ;;  %v2267_v24 = vmul.f32 %v6698_v37, %v2266_v55  ;;  %vm6779_vm9 = vmor %vm2271_vm5, %vm2272_vm4 }
 0x12c   : > { %v6731_v36 = vsel %vm9181_vm3, %v3476_v9, %v3475_v11  ;;  %v3312_v23 = vperm.slane %v1954_v53, %v6066_v0  ;;  %v2410_v3 = vmul.f32 %v6660_v30, %v2409_v15  ;;  %v2856_v28 = vmul.f32 %v6728_v44, %v6651_v4  ;;  %1676 = vadd.xlane.f32.xlu0 %v1675_v12  ;;  %v355_v11 = vld [vmem:[%s4819_s9 + $0x2c8] sm:$0xff]  ;;  %v765_v9 = vpop.f32.mrf.mxu3  ;;  %vm9194_vm5 = vmmov %vm9170_vm1 }
 0x12d   : > { %v1495_v46 = vsel %vm9184_vm13, %v1279_v2, 0.0  ;;  %v3014_v29 = vsel %vm6721_vm6, %v6655_v60, %v3010_v59  ;;  %v2268_v62 = vmul.f32 0.5, %v2267_v24  ;;  %v1585_v57 = vsel %vm9185_vm7, %v1309_v51, 0.0  ;;  %v675_v51 = vpop.f32.mrf.mxu2  ;;  %vm9193_vm6 = vmmov %vm9170_vm1  ;;  %768 = vst [vmem:[#allocation3 + $0x2] sm:$0x1] %v765_v9 }
 0x12e   : > { %v6756_v16 = vmax.f32 %v6619_v49, 1e-16  ;;  %vm9186_vm15 = vcmask 523712   ;;  %v3534_v63 = vperm.slane %v3014_v29, %v5395_v40  ;;  %v2414_v60 = vsel %vm6741_vm14, %v6660_v30, %v2410_v3  ;;  %678 = vst [vmem:[#allocation3 + $0x1] sm:$0x1] %v675_v51  ;;  %vm9195_vm4 = vmmov %vm9170_vm1  ;;  %v1485_v7 = vpop.xlane.xlu0 %1484  ;;  %v356_v51 = vld [vmem:[%s4819_s9 + $0x2d0] sm:$0xff] }
 0x12f   : > { %v6760_v33 = vsel %vm9186_vm15, %v3312_v23, %v6552_v58  ;;  %v2857_v32 = vmul.f32 %v6728_v44, %v2856_v28  ;;  %v3418_v25 = vperm.slane %v2414_v60, %v5431_v8  ;;  %v2269_v49 = vsub.f32 1.5, %v2268_v62  ;;  %1496 = vadd.xlane.f32.xlu2 %v1495_v46  ;;  %1586 = vadd.xlane.f32.xlu1 %v1585_v57  ;;  %v945_v53 = vpop.f32.mrf.mxu1  ;;  %v1215_v59 = vpop.f32.mrf.mxu0  ;;  %v280_v23 = vld [vmem:[%s4819_s9 + $0x70] sm:$0xff]  ;;  %vm9196_vm1 = vmmov %vm9186_vm15 }
 0x130   : > { %4555 = vrsqrt.f32 %v6756_v16  ;;  %vm9187_vm11 = vcmask 130112   ;;  %vm2861_vm8 = vweird.f32 %v6651_v4  ;;  %vm2862_vm12 = vweird.f32 %v6728_v44  ;;  %948 = vst [vmem:[#allocation3 + $0x4] sm:$0x1] %v945_v53  ;;  %vm9198_vm15 = vmmov %vm9195_vm4  ;;  %v6849_v40 = vpop.xlane.xlu2 %1439 }
 0x131   : > { %v6773_v58 = vsel %vm9187_vm11, %v3534_v63, %v6598_v42  ;;  %v2858_v30 = vmul.f32 0.5, %v2857_v32  ;;  %vm9190_vm2 = vcmask 392512   ;;  %v2270_v42 = vmul.f32 %v6698_v37, %v2269_v49  ;;  %vm6796_vm0 = vmor %vm2861_vm8, %vm2862_vm12  ;;  %1218 = vst [vmem:[#allocation3 + $0x7] sm:$0x1] %v1215_v59 }
 0x132   : > { %v6788_v22 = vsel %vm9190_vm2, %v3418_v25, %v6587_v1  ;;  %v1265_v48 = vmul.f32 %v296_v39, %v296_v39  ;;  %v471_v10 = vsub.f32 %v5382_v20, %v6653_v45  ;;  %v1324_v2 = vmul.f32 %v355_v11, %v355_v11  ;;  %vm9201_vm12 = vmmov %vm9195_vm4  ;;  %v6875_v9 = vpop.xlane.xlu1 %1529 }
 0x133   : > { %v2859_v41 = vsub.f32 1.5, %v2858_v30  ;;  %v2274_v4 = vsel %vm6779_vm9, %v6698_v37, %v2270_v42  ;;  %v1354_v56 = vmul.f32 %v385_v52, %v385_v52  ;;  %v6801_v55 = vmax.f32 %v1707_v47, 1e-16 }
 0x134   : > { %v1453_v1 = vsel %vm9193_vm6, %v1265_v48, 0.0  ;;  %v3391_v45 = vperm.slane %v2274_v4, %v6066_v0  ;;  %v1630_v12 = vsel %vm9194_vm5, %v1324_v2, 0.0  ;;  %v6807_v37 = vmax.f32 %v6696_v21, 1e-16  ;;  %v1125_v39 = vpop.f32.mrf.mxu3  ;;  %v326_v2 = vld [vmem:[%s4819_s9 + $0x1e0] sm:$0xff] }
 0x135   : > { %v2860_v15 = vmul.f32 %v6728_v44, %v2859_v41  ;;  %1454 = vadd.xlane.f32.xlu0 %v1453_v1  ;;  %v1720_v24 = vsel %vm9195_vm4, %v1354_v56, 0.0  ;;  %4557 = vrsqrt.f32 %v6801_v55  ;;  %v6814_v47 = vmax.f32 %v6715_v18, 1e-16  ;;  %v1035_v32 = vpop.f32.mrf.mxu2  ;;  %1128 = vst [vmem:[#allocation3 + $0x6] sm:$0x1] %v1125_v39 }
 0x136   : > { %v6809_v6 = vpop.eup %4555  ;;  %v6819_v3 = vsel %vm9196_vm1, %v3391_v45, %v6664_v27  ;;  %v472_v28 = vmul.f32 1.442695, %v471_v10  ;;  %4559 = vrsqrt.f32 %v6807_v37  ;;  %v1249_v27 = vmul.f32 %v280_v23, %v280_v23  ;;  %1038 = vst [vmem:[#allocation3 + $0x5] sm:$0x1] %v1035_v32  ;;  %v1620_v45 = vpop.xlane.xlu0 %1619 }
 0x137   : > { %v2864_v21 = vsel %vm6796_vm0, %v6728_v44, %v2860_v15  ;;  %v1956_v46 = vmul.f32 %v6809_v6, %v6756_v16  ;;  %1631 = vadd.xlane.f32.xlu2 %v1630_v12  ;;  %1721 = vadd.xlane.f32.xlu1 %v1720_v24  ;;  %4561 = vrsqrt.f32 %v6814_v47  ;;  %vm9197_vm3 = vcmask 195712  }
 0x138   : > { %v3505_v18 = vperm.slane %v2864_v21, %v5380_v26  ;;  %vm1961_vm14 = vweird.f32 %v6756_v16  ;;  %v1280_v62 = vmul.f32 %v311_v61, %v311_v61  ;;  %v6836_v57 = vmax.f32 %v1485_v7, 1e-16 }
 0x139   : > { %v1957_v29 = vmul.f32 %v6809_v6, %v1956_v46  ;;  %4563 = vpow2.f32 %v472_v28  ;;  %vm1962_vm13 = vweird.f32 %v6809_v6  ;;  %v6839_v60 = vmax.f32 %v1662_v14, 1e-16 }
 0x13a   : > { %v6833_v44 = vsel %vm9197_vm3, %v3505_v18, %v6562_v38  ;;  %vm3021_vm7 = vweird.f32 %v6801_v55  ;;  %4565 = vrsqrt.f32 %v6836_v57  ;;  %v1405_v11 = vsel %vm9198_vm15, %v1249_v27, 0.0  ;;  %vm6857_vm11 = vmor %vm1961_vm14, %vm1962_vm13 }
 0x13b   : > { %v1958_v63 = vmul.f32 0.5, %v1957_v29  ;;  %v6841_v25 = vpop.eup %4557  ;;  %4567 = vrsqrt.f32 %v6839_v60  ;;  %vm2421_vm9 = vweird.f32 %v6807_v37  ;;  %vm2721_vm8 = vweird.f32 %v6814_v47  ;;  %vm9204_vm13 = vmmov %vm9201_vm12 }
 0x13c   : > { %v3016_v49 = vmul.f32 %v6841_v25, %v6801_v55  ;;  %v6851_v30 = vpop.eup %4559  ;;  %v1498_v42 = vsel %vm9201_vm12, %v1280_v62, 0.0  ;;  %v6864_v48 = vmax.f32 %v1392_v34, 1e-16  ;;  %vm3022_vm2 = vweird.f32 %v6841_v25 }
 0x13d   : > { %v1959_v38 = vsub.f32 1.5, %v1958_v63  ;;  %v6866_v14 = vpop.eup %4561  ;;  %v2416_v16 = vmul.f32 %v6851_v30, %v6807_v37  ;;  %vm2422_vm0 = vweird.f32 %v6851_v30  ;;  %vm2871_vm6 = vweird.f32 %v6839_v60  ;;  %vm6911_vm14 = vmor %vm3021_vm7, %vm3022_vm2 }
 0x13e   : > { %v3017_v10 = vmul.f32 %v6841_v25, %v3016_v49  ;;  %v2716_v4 = vmul.f32 %v6866_v14, %v6814_v47  ;;  %4569 = vrsqrt.f32 %v6864_v48  ;;  %vm2722_vm5 = vweird.f32 %v6866_v14  ;;  %vm6923_vm15 = vmor %vm2421_vm9, %vm2422_vm0 }
 0x13f   : > { %v1960_v41 = vmul.f32 %v6809_v6, %v1959_v38  ;;  %1406 = vadd.xlane.f32.xlu2 %v1405_v11  ;;  %v6882_v43 = vpop.eup %4563  ;;  %v2417_v34 = vmul.f32 %v6851_v30, %v2416_v16  ;;  %1499 = vadd.xlane.f32.xlu1 %v1498_v42  ;;  %v1295_v59 = vmul.f32 %v326_v2, %v326_v2  ;;  %vm2281_vm4 = vweird.f32 %v6836_v57  ;;  %vm9207_vm7 = vmmov %vm9201_vm12 }
 0x140   : > { %v3018_v56 = vmul.f32 0.5, %v3017_v10  ;;  %v6889_v15 = vpop.eup %4565  ;;  %v2717_v53 = vmul.f32 %v6866_v14, %v2716_v4  ;;  %v1325_v24 = vmul.f32 %v356_v51, %v356_v51  ;;  %vm1971_vm1 = vweird.f32 %v6864_v48  ;;  %v1575_v10 = vpop.xlane.xlu2 %1574 }
 0x141   : > { %v1964_v1 = vsel %vm6857_vm11, %v6809_v6, %v1960_v41  ;;  %v6893_v23 = vpop.eup %4567  ;;  %v2418_v28 = vmul.f32 0.5, %v2417_v34  ;;  %v2276_v6 = vmul.f32 %v6889_v15, %v6836_v57  ;;  %vm2282_vm3 = vweird.f32 %v6889_v15  ;;  %vm6939_vm11 = vmor %vm2721_vm8, %vm2722_vm5 }
 0x142   : > { %v3316_v12 = vperm.slane %v1964_v1, %v6310_v35  ;;  %v3019_v21 = vsub.f32 1.5, %v3018_v56  ;;  %v2718_v61 = vmul.f32 0.5, %v2717_v53  ;;  %v2866_v7 = vmul.f32 %v6893_v23, %v6839_v60  ;;  %v1665_v1 = vpop.xlane.xlu1 %1664  ;;  %vm2283_vm5 = vmor %vm2281_vm4, %vm2282_vm3 }
 0x143   : > { %v2419_v27 = vsub.f32 1.5, %v2418_v28  ;;  %v1543_v62 = vsel %vm9204_vm13, %v1295_v59, 0.0  ;;  %v1633_v38 = vsel %vm9207_vm7, %v1325_v24, 0.0  ;;  %v6929_v49 = vmax.f32 %v1620_v45, 1e-16 }
 0x144   : > { %v6901_v46 = vsel %vm9060_vm10, %v3316_v12, %v6760_v33  ;;  %v3020_v18 = vmul.f32 %v6841_v25, %v3019_v21  ;;  %v2277_v33 = vmul.f32 %v6889_v15, %v2276_v6  ;;  %v6917_v63 = vpop.eup %4569  ;;  %v2719_v55 = vsub.f32 1.5, %v2718_v61 }
 0x145   : > { %v2867_v39 = vmul.f32 %v6893_v23, %v2866_v7  ;;  %v2420_v52 = vmul.f32 %v6851_v30, %v2419_v27  ;;  %v1966_v41 = vmul.f32 %v6917_v63, %v6864_v48  ;;  %vm2872_vm9 = vweird.f32 %v6893_v23 }
 0x146   : > { %v3024_v11 = vsel %vm6911_vm14, %v6841_v25, %v3020_v18  ;;  %v2278_v42 = vmul.f32 0.5, %v2277_v33  ;;  %v2720_v2 = vmul.f32 %v6866_v14, %v2719_v55  ;;  %4571 = vrsqrt.f32 %v6929_v49  ;;  %vm6969_vm12 = vmor %vm2871_vm6, %vm2872_vm9 }
 0x147   : > { %v3536_v16 = vperm.slane %v3024_v11, %v5380_v26  ;;  %v2868_v25 = vmul.f32 0.5, %v2867_v39  ;;  %1544 = vadd.xlane.f32.xlu2 %v1543_v62  ;;  %v2424_v47 = vsel %vm6923_vm15, %v6851_v30, %v2420_v52  ;;  %v1967_v4 = vmul.f32 %v6917_v63, %v1966_v41  ;;  %1634 = vadd.xlane.f32.xlu1 %v1633_v38  ;;  %v371_v30 = vld [vmem:[%s4819_s9 + $0x348] sm:$0xff]  ;;  %v297_v62 = vld [vmem:[%s4819_s9 + $0xf8] sm:$0xff] }
 0x148   : > { %v2279_v51 = vsub.f32 1.5, %v2278_v42  ;;  %vm9210_vm8 = vcmask 195712   ;;  %v3420_v56 = vperm.slane %v2424_v47, %v5711_v13  ;;  %v2724_v34 = vsel %vm6939_vm11, %v6866_v14, %v2720_v2  ;;  %v1395_v14 = vpop.xlane.xlu0 %1394  ;;  %v327_v47 = vld [vmem:[%s4819_s9 + $0x1e8] sm:$0xff] }
 0x149   : > { %v6955_v26 = vsel %vm9210_vm8, %v3536_v16, %v6773_v58  ;;  %v2869_v45 = vsub.f32 1.5, %v2868_v25  ;;  %475 = vrot.lane.b32.xlu0 %v6882_v43, %s4752_s24  ;;  %v3478_v12 = vperm.slane %v2724_v34, %v5751_v50  ;;  %v1968_v59 = vmul.f32 0.5, %v1967_v4  ;;  %v1710_v38 = vpop.xlane.xlu2 %1709 }
 0x14a   : > { %v2280_v53 = vmul.f32 %v6889_v15, %v2279_v51  ;;  %vm1972_vm2 = vweird.f32 %v6917_v63  ;;  %vm9213_vm0 = vcmask 458112   ;;  %v6984_v21 = vmax.f32 %v6849_v40, 1e-16 }
 0x14b   : > { %v6976_v24 = vsel %vm9213_vm0, %v3420_v56, %v6788_v22  ;;  %v2870_v60 = vmul.f32 %v6893_v23, %v2869_v45  ;;  %v6987_v28 = vmax.f32 %v6875_v9, 1e-16  ;;  %vm9214_vm6 = vcmask 326912   ;;  %vm7003_vm4 = vmor %vm1971_vm1, %vm1972_vm2 }
 0x14c   : > { %v6991_v6 = vsel %vm9214_vm6, %v3478_v12, %v6731_v36  ;;  %v2284_v22 = vsel %vm2283_vm5, %v6889_v15, %v2280_v53  ;;  %v1969_v61 = vsub.f32 1.5, %v1968_v59  ;;  %v1340_v7 = vmul.f32 %v371_v30, %v371_v30  ;;  %v281_v36 = vld [vmem:[%s4819_s9 + $0x78] sm:$0xff]  ;;  %v7009_v15 = vpop.eup %4571  ;;  %vm9217_vm1 = vmmov %vm9207_vm7 }
 0x14d   : > { %v3393_v57 = vperm.slane %v2284_v22, %v6310_v35  ;;  %v2874_v18 = vsel %vm6969_vm12, %v6893_v23, %v2870_v60  ;;  %v6999_v40 = vadd.s32 4294967224, %v5356_v19  ;;  %4573 = vrsqrt.f32 %v6984_v21  ;;  %vm9219_vm15 = vmmov %vm9217_vm1 }
 0x14e   : > { %v3507_v29 = vperm.slane %v2874_v18, %v5664_v17  ;;  %v1970_v27 = vmul.f32 %v6917_v63, %v1969_v61  ;;  %4575 = vrsqrt.f32 %v6987_v28  ;;  %v2726_v48 = vmul.f32 %v7009_v15, %v6929_v49  ;;  %vm9220_vm12 = vmmov %vm9217_vm1 }
 0x14f   : > { %v7016_v23 = vsel %vm9060_vm10, %v3393_v57, %v6819_v3  ;;  %v1678_v33 = vsel %vm9217_vm1, %v1340_v7, 0.0  ;;  %vm9218_vm3 = vcmask 261312   ;;  %vm3321_vm14 = vcmask 654912  }
 0x150   : > { %v7024_v32 = vsel %vm9218_vm3, %v3507_v29, %v6833_v44  ;;  %v1974_v55 = vsel %vm7003_vm4, %v6917_v63, %v1970_v27  ;;  %1679 = vadd.xlane.f32.xlu2 %v1678_v33  ;;  %v1250_v39 = vmul.f32 %v281_v36, %v281_v36  ;;  %v2727_v11 = vmul.f32 %v7009_v15, %v2726_v48  ;;  %v1443_v63 = vpop.xlane.xlu1 %1442 }
 0x151   : > { %v3320_v3 = vperm.slane %v1974_v55, %v6999_v40  ;;  %vm2731_vm13 = vweird.f32 %v6929_v49  ;;  %v7032_v52 = vmax.f32 %v1395_v14, 1e-16  ;;  %v7035_v37 = vmax.f32 %v1575_v10, 1e-16  ;;  %v342_v14 = vld [vmem:[%s4819_s9 + $0x260] sm:$0xff]  ;;  %v7091_v48 = vpop.xlane.xlu2 %1487 }
 0x152   : > { %v1408_v44 = vsel %vm9219_vm15, %v1250_v39, 0.0  ;;  %v7037_v42 = vmax.f32 %v1665_v1, 1e-16  ;;  %v1266_v41 = vmul.f32 %v297_v62, %v297_v62  ;;  %v2728_v25 = vmul.f32 0.5, %v2727_v11 }
 0x153   : > { %v7039_v16 = vpop.eup %4573  ;;  %v7043_v2 = vsel %vm3321_vm14, %v3320_v3, %v6901_v46  ;;  %vm2131_vm7 = vweird.f32 %v6984_v21  ;;  %1409 = vadd.xlane.f32.xlu1 %v1408_v44  ;;  %4577 = vrsqrt.f32 %v7032_v52  ;;  %vm2732_vm11 = vweird.f32 %v7009_v15  ;;  %v1533_v46 = vpop.xlane.xlu0 %1532 }
 0x154   : > { %v7048_v51 = vpop.eup %4575  ;;  %v2126_v10 = vmul.f32 %v7039_v16, %v6984_v21  ;;  %vm2431_vm9 = vweird.f32 %v6987_v28  ;;  %4579 = vrsqrt.f32 %v7035_v37  ;;  %v2729_v4 = vsub.f32 1.5, %v2728_v25  ;;  %vm2733_vm0 = vmor %vm2731_vm13, %vm2732_vm11 }
 0x155   : > { %v2426_v1 = vmul.f32 %v7048_v51, %v6987_v28  ;;  %v7058_v56 = vadd.s32 4294967216, %v5356_v19  ;;  %4581 = vrsqrt.f32 %v7037_v42  ;;  %vm2132_vm8 = vweird.f32 %v7039_v16 }
 0x156   : > { %v2127_v34 = vmul.f32 %v7039_v16, %v2126_v10  ;;  %v1456_v45 = vsel %vm9220_vm12, %v1266_v41, 0.0  ;;  %v1296_v30 = vmul.f32 %v327_v47, %v327_v47  ;;  %v2730_v12 = vmul.f32 %v7009_v15, %v2729_v4  ;;  %vm7099_vm3 = vmor %vm2131_vm7, %vm2132_vm8 }
 0x157   : > { %v2427_v53 = vmul.f32 %v7048_v51, %v2426_v1  ;;  %vm2581_vm2 = vweird.f32 %v7035_v37  ;;  %v7067_v58 = vmax.f32 %v1533_v46, 1e-16  ;;  %v7069_v59 = vmax.f32 %v1710_v38, 1e-16 }
 0x158   : > { %v2128_v60 = vmul.f32 0.5, %v2127_v34  ;;  %vm2432_vm5 = vweird.f32 %v7048_v51  ;;  %vm1981_vm6 = vweird.f32 %v7032_v52  ;;  %vm2881_vm4 = vweird.f32 %v7037_v42  ;;  %1457 = vadd.xlane.f32.xlu2 %v1456_v45  ;;  %v7123_v44 = vpop.xlane.xlu1 %1577 }
 0x159   : > { %v1546_v22 = vsel %vm9217_vm1, %v1296_v30, 0.0  ;;  %v7080_v61 = vpop.eup %4577  ;;  %v2734_v7 = vsel %vm2733_vm0, %v7009_v15, %v2730_v12  ;;  %v2428_v57 = vmul.f32 0.5, %v2427_v53  ;;  %4583 = vrsqrt.f32 %v7067_v58  ;;  %vm7116_vm7 = vmor %vm2431_vm9, %vm2432_vm5  ;;  %v372_v12 = vld [vmem:[%s4819_s9 + $0x350] sm:$0xff] }
 0x15a   : > { %v7084_v18 = vmax.f32 %v1443_v63, 1e-16  ;;  %v7086_v49 = vpop.eup %4579  ;;  %v3480_v9 = vperm.slane %v2734_v7, %v5431_v8  ;;  %v2129_v36 = vsub.f32 1.5, %v2128_v60  ;;  %v1976_v29 = vmul.f32 %v7080_v61, %v7032_v52 }
 0x15b   : > { %v1311_v27 = vmul.f32 %v342_v14, %v342_v14  ;;  %v7093_v33 = vpop.eup %4581  ;;  %v2429_v62 = vsub.f32 1.5, %v2428_v57  ;;  %vm1982_vm13 = vweird.f32 %v7080_v61  ;;  %v2576_v55 = vmul.f32 %v7086_v49, %v7035_v37  ;;  %1547 = vadd.xlane.f32.xlu1 %v1546_v22  ;;  %v1668_v47 = vpop.xlane.xlu0 %1667 }
 0x15c   : > { %4585 = vrsqrt.f32 %v7069_v59  ;;  %vm9223_vm15 = vcmask 392512   ;;  %v2130_v38 = vmul.f32 %v7039_v16, %v2129_v36  ;;  %vm9058_vm11 = vcmask 720512   ;;  %vm7156_vm5 = vmor %vm1981_vm6, %vm1982_vm13 }
 0x15d   : > { %v7109_v39 = vsel %vm9223_vm15, %v3480_v9, %v6991_v6  ;;  %v1977_v3 = vmul.f32 %v7080_v61, %v1976_v29  ;;  %v2876_v11 = vmul.f32 %v7093_v33, %v7037_v42  ;;  %v2430_v6 = vmul.f32 %v7048_v51, %v2429_v62 }
 0x15e   : > { %v2577_v41 = vmul.f32 %v7086_v49, %v2576_v55  ;;  %vm2582_vm8 = vweird.f32 %v7086_v49  ;;  %vm2882_vm12 = vweird.f32 %v7093_v33  ;;  %v2134_v28 = vsel %vm7099_vm3, %v7039_v16, %v2130_v38  ;;  %v1623_v38 = vpop.xlane.xlu2 %1622 }
 0x15f   : > { %v1978_v63 = vmul.f32 0.5, %v1977_v3  ;;  %v2877_v25 = vmul.f32 %v7093_v33, %v2876_v11  ;;  %4587 = vrsqrt.f32 %v7084_v18  ;;  %v7134_v10 = vpop.eup %4583  ;;  %v3364_v46 = vperm.slane %v2134_v28, %v6999_v40  ;;  %vm7179_vm6 = vmor %vm2881_vm4, %vm2882_vm12 }
 0x160   : > { %v2434_v4 = vsel %vm7116_vm7, %v7048_v51, %v2430_v6  ;;  %v2578_v1 = vmul.f32 0.5, %v2577_v41  ;;  %vm3031_vm9 = vweird.f32 %v7069_v59  ;;  %v2436_v30 = vmul.f32 %v7134_v10, %v7067_v58  ;;  %vm7169_vm7 = vmor %vm2581_vm2, %vm2582_vm8 }
 0x161   : > { %v3422_v34 = vperm.slane %v2434_v4, %v6066_v0  ;;  %v1979_v16 = vsub.f32 1.5, %v1978_v63  ;;  %v2878_v45 = vmul.f32 0.5, %v2877_v25  ;;  %vm2441_vm0 = vweird.f32 %v7067_v58  ;;  %v1713_v63 = vpop.xlane.xlu1 %1712  ;;  %v387_v4 = vld [vmem:[%s4819_s9 + $0x3c8] sm:$0xff] }
 0x162   : > { %v7146_v53 = vpop.eup %4585  ;;  %v7150_v14 = vsel %vm3321_vm14, %v3364_v46, %v6466_v5  ;;  %v2579_v60 = vsub.f32 1.5, %v2578_v1  ;;  %vm2141_vm1 = vweird.f32 %v7084_v18  ;;  %vm9228_vm3 = vcmask 261120  }
 0x163   : > { %v1591_v22 = vsel %vm9228_vm3, %v1311_v27, 0.0  ;;  %vm9229_vm15 = vcmask 523712   ;;  %v1980_v57 = vmul.f32 %v7080_v61, %v1979_v16  ;;  %v2879_v52 = vsub.f32 1.5, %v2878_v45  ;;  %vm9235_vm8 = vmmov %vm9228_vm3  ;;  %v328_v16 = vld [vmem:[%s4819_s9 + $0x1f0] sm:$0xff]  ;;  %v1446_v45 = vpop.xlane.xlu0 %1445 }
 0x164   : > { %v3423_v7 = vsel %vm9229_vm15, %v3422_v34, %v6976_v24  ;;  %v2437_v9 = vmul.f32 %v7134_v10, %v2436_v30  ;;  %1592 = vadd.xlane.f32.xlu2 %v1591_v22  ;;  %v2580_v36 = vmul.f32 %v7086_v49, %v2579_v60  ;;  %vm2442_vm13 = vweird.f32 %v7134_v10 }
 0x165   : > { %v3026_v37 = vmul.f32 %v7146_v53, %v7069_v59  ;;  %v1341_v29 = vmul.f32 %v372_v12, %v372_v12  ;;  %v4588_v27 = vpop.eup %4587  ;;  %v1984_v15 = vsel %vm7156_vm5, %v7080_v61, %v1980_v57  ;;  %v2880_v62 = vmul.f32 %v7093_v33, %v2879_v52  ;;  %vm2443_vm5 = vmor %vm2441_vm0, %vm2442_vm13 }
 0x166   : > { %v2438_v55 = vmul.f32 0.5, %v2437_v9  ;;  %v7190_v42 = vmax.f32 %v1668_v47, 1e-16  ;;  %v3324_v21 = vperm.slane %v1984_v15, %v7058_v56  ;;  %v2584_v3 = vsel %vm7169_vm7, %v7086_v49, %v2580_v36  ;;  %vm9241_vm0 = vmmov %vm9235_vm8 }
 0x167   : > { %v3027_v11 = vmul.f32 %v7146_v53, %v3026_v37  ;;  %v2136_v6 = vmul.f32 %v4588_v27, %v7084_v18  ;;  %v3451_v61 = vperm.slane %v2584_v3, %v5711_v13  ;;  %v2884_v41 = vsel %vm7179_vm6, %v7093_v33, %v2880_v62  ;;  %v343_v37 = vld [vmem:[%s4819_s9 + $0x268] sm:$0xff] }
 0x168   : > { %v2439_v28 = vsub.f32 1.5, %v2438_v55  ;;  %vm3032_vm2 = vweird.f32 %v7146_v53  ;;  %v7205_v25 = vsel %vm9058_vm11, %v3324_v21, %v7043_v2  ;;  %v3509_v49 = vperm.slane %v2884_v41, %v5751_v50 }
 0x169   : > { %v3028_v47 = vmul.f32 0.5, %v3027_v11  ;;  %v2137_v46 = vmul.f32 %v4588_v27, %v2136_v6  ;;  %vm9234_vm4 = vcmask 458112   ;;  %v1681_v33 = vsel %vm9235_vm8, %v1341_v29, 0.0  ;;  %vm7230_vm15 = vmor %vm3031_vm9, %vm3032_vm2  ;;  %v373_v6 = vld [vmem:[%s4819_s9 + $0x358] sm:$0xff] }
 0x16a   : > { %v7211_v1 = vsel %vm9234_vm4, %v3451_v61, %v6532_v54  ;;  %v2440_v34 = vmul.f32 %v7134_v10, %v2439_v28  ;;  %4589 = vrsqrt.f32 %v7190_v42  ;;  %vm9236_vm12 = vcmask 326912   ;;  %1682 = vadd.xlane.f32.xlu1 %v1681_v33  ;;  %vm9244_vm8 = vmmov %vm9241_vm0 }
 0x16b   : > { %v7219_v2 = vsel %vm9236_vm12, %v3509_v49, %v7024_v32  ;;  %v3029_v30 = vsub.f32 1.5, %v3028_v47  ;;  %v2138_v54 = vmul.f32 0.5, %v2137_v46  ;;  %vm2142_vm3 = vweird.f32 %v4588_v27 }
 0x16c   : > { %v2444_v12 = vsel %vm2443_vm5, %v7134_v10, %v2440_v34  ;;  %v7235_v32 = vmax.f32 %v7091_v48, 1e-16  ;;  %v7238_v58 = vmax.f32 %v7123_v44, 1e-16  ;;  %v1356_v60 = vmul.f32 %v387_v4, %v387_v4  ;;  %vm7244_vm9 = vmor %vm2141_vm1, %vm2142_vm3  ;;  %v1398_v29 = vpop.xlane.xlu2 %1397 }
 0x16d   : > { %v3424_v22 = vperm.slane %v2444_v12, %v6310_v35  ;;  %v3030_v10 = vmul.f32 %v7146_v53, %v3029_v30  ;;  %v2139_v57 = vsub.f32 1.5, %v2138_v54  ;;  %v1297_v5 = vmul.f32 %v328_v16, %v328_v16  ;;  %vm9242_vm1 = vmmov %vm9241_vm0  ;;  %v1491_v3 = vpop.xlane.xlu1 %1490 }
 0x16e   : > { %4591 = vrsqrt.f32 %v7235_v32  ;;  %v1726_v48 = vsel %vm9241_vm0, %v1356_v60, 0.0  ;;  %vm9243_vm7 = vcmask 261312   ;;  %v7275_v21 = vmax.f32 %v1713_v63, 1e-16 }
 0x16f   : > { %v7251_v44 = vsel %vm9060_vm10, %v3424_v22, %v3423_v7  ;;  %v3034_v52 = vsel %vm7230_vm15, %v7146_v53, %v3030_v10  ;;  %v2140_v9 = vmul.f32 %v4588_v27, %v2139_v57  ;;  %4593 = vrsqrt.f32 %v7238_v58  ;;  %1727 = vadd.xlane.f32.xlu2 %v1726_v48 }
 0x170   : > { %v7257_v18 = vpop.eup %4589  ;;  %v3538_v36 = vperm.slane %v3034_v52, %v5664_v17  ;;  %v1549_v24 = vsel %vm9242_vm1, %v1297_v5, 0.0  ;;  %v7266_v53 = vmax.f32 %v1446_v45, 1e-16  ;;  %v7273_v17 = vmax.f32 %v1623_v38, 1e-16  ;;  %v1581_v38 = vpop.xlane.xlu0 %1580  ;;  %v341_v45 = vld [vmem:[%s4819_s9 + $0x258] sm:$0xff] }
 0x171   : > { %v2144_v7 = vsel %vm7244_vm9, %v4588_v27, %v2140_v9  ;;  %v2886_v15 = vmul.f32 %v7257_v18, %v7190_v42  ;;  %vm2891_vm6 = vweird.f32 %v7190_v42  ;;  %v1312_v27 = vmul.f32 %v343_v37, %v343_v37 }
 0x172   : > { %v7270_v62 = vsel %vm9243_vm7, %v3538_v36, %v6955_v26  ;;  %v3366_v55 = vperm.slane %v2144_v7, %v7058_v56  ;;  %1550 = vadd.xlane.f32.xlu1 %v1549_v24  ;;  %4595 = vrsqrt.f32 %v7266_v53  ;;  %vm2291_vm13 = vweird.f32 %v7235_v32 }
 0x173   : > { %v2887_v11 = vmul.f32 %v7257_v18, %v2886_v15  ;;  %vm2591_vm2 = vweird.f32 %v7238_v58  ;;  %4597 = vrsqrt.f32 %v7273_v17  ;;  %v7295_v49 = vadd.s32 4294967208, %v5356_v19 }
 0x174   : > { %v7281_v61 = vpop.eup %4591  ;;  %v7285_v26 = vsel %vm9058_vm11, %v3366_v55, %v7150_v14  ;;  %4599 = vrsqrt.f32 %v7275_v21  ;;  %vm2892_vm4 = vweird.f32 %v7257_v18  ;;  %v1594_v47 = vsel %vm9244_vm8, %v1312_v27, 0.0  ;;  %v7330_v48 = vpop.xlane.xlu2 %1535 }
 0x175   : > { %v7290_v41 = vpop.eup %4593  ;;  %v2888_v28 = vmul.f32 0.5, %v2887_v11  ;;  %v2286_v63 = vmul.f32 %v7281_v61, %v7235_v32  ;;  %v1342_v46 = vmul.f32 %v373_v6, %v373_v6  ;;  %vm2741_vm12 = vweird.f32 %v7273_v17  ;;  %vm2893_vm1 = vmor %vm2891_vm6, %vm2892_vm4  ;;  %v7350_v15 = vpop.xlane.xlu1 %1625 }
 0x176   : > { %v2586_v14 = vmul.f32 %v7290_v41, %v7238_v58  ;;  %v7304_v33 = vmax.f32 %v1581_v38, 1e-16  ;;  %v7306_v16 = vmax.f32 %v1398_v29, 1e-16  ;;  %vm2292_vm5 = vweird.f32 %v7281_v61 }
 0x177   : > { %v2889_v4 = vsub.f32 1.5, %v2888_v28  ;;  %v2287_v34 = vmul.f32 %v7281_v61, %v2286_v63  ;;  %1595 = vadd.xlane.f32.xlu2 %v1594_v47  ;;  %vm2592_vm3 = vweird.f32 %v7290_v41  ;;  %vm2151_vm15 = vweird.f32 %v7266_v53  ;;  %vm7343_vm6 = vmor %vm2291_vm13, %vm2292_vm5 }
 0x178   : > { %v2587_v30 = vmul.f32 %v7290_v41, %v2586_v14  ;;  %vm3041_vm9 = vweird.f32 %v7275_v21  ;;  %v1684_v54 = vsel %vm9241_vm0, %v1342_v46, 0.0  ;;  %v7315_v12 = vpop.eup %4595  ;;  %4601 = vrsqrt.f32 %v7304_v33  ;;  %vm7357_vm8 = vmor %vm2591_vm2, %vm2592_vm3 }
 0x179   : > { %v2890_v51 = vmul.f32 %v7257_v18, %v2889_v4  ;;  %v2288_v60 = vmul.f32 0.5, %v2287_v34  ;;  %v7319_v22 = vmax.f32 %v1491_v3, 1e-16  ;;  %v7321_v10 = vpop.eup %4597  ;;  %v2146_v5 = vmul.f32 %v7315_v12, %v7266_v53  ;;  %v386_v53 = vld [vmem:[%s4819_s9 + $0x3c0] sm:$0xff] }
 0x17a   : > { %v2588_v57 = vmul.f32 0.5, %v2587_v30  ;;  %4603 = vrsqrt.f32 %v7306_v16  ;;  %v1310_v59 = vmul.f32 %v341_v45, %v341_v45  ;;  %v7332_v52 = vpop.eup %4599  ;;  %vm2152_vm7 = vweird.f32 %v7315_v12  ;;  %1685 = vadd.xlane.f32.xlu1 %v1684_v54 }
 0x17b   : > { %v2894_v9 = vsel %vm2893_vm1, %v7257_v18, %v2890_v51  ;;  %v2289_v36 = vsub.f32 1.5, %v2288_v60  ;;  %v2736_v42 = vmul.f32 %v7321_v10, %v7273_v17  ;;  %vm9061_vm4 = vcmask 786112   ;;  %vm7388_vm3 = vmor %vm2151_vm15, %vm2152_vm7 }
 0x17c   : > { %v3511_v24 = vperm.slane %v2894_v9, %v5431_v8  ;;  %v2589_v29 = vsub.f32 1.5, %v2588_v57  ;;  %v2147_v18 = vmul.f32 %v7315_v12, %v2146_v5  ;;  %v3036_v7 = vmul.f32 %v7332_v52, %v7275_v21  ;;  %v388_v57 = vld [vmem:[%s4819_s9 + $0x3d0] sm:$0xff]  ;;  %v1716_v5 = vpop.xlane.xlu0 %1715  ;;  %v1671_v21 = vpop.xlane.xlu2 %1670 }
 0x17d   : > { %v2290_v55 = vmul.f32 %v7281_v61, %v2289_v36  ;;  %v2737_v3 = vmul.f32 %v7321_v10, %v2736_v42  ;;  %vm2742_vm13 = vweird.f32 %v7321_v10  ;;  %vm3042_vm5 = vweird.f32 %v7332_v52 }
 0x17e   : > { %vm9249_vm0 = vcmask 392512   ;;  %v2590_v27 = vmul.f32 %v7290_v41, %v2589_v29  ;;  %v2148_v6 = vmul.f32 0.5, %v2147_v18  ;;  %v3037_v38 = vmul.f32 %v7332_v52, %v3036_v7  ;;  %v7370_v58 = vpop.eup %4601  ;;  %vm7405_vm15 = vmor %vm2741_vm12, %vm2742_vm13 }
 0x17f   : > { %v7366_v11 = vsel %vm9249_vm0, %v3511_v24, %v7219_v2  ;;  %v2294_v28 = vsel %vm7343_vm6, %v7281_v61, %v2290_v55  ;;  %v2738_v63 = vmul.f32 0.5, %v2737_v3  ;;  %vm1991_vm2 = vweird.f32 %v7306_v16  ;;  %vm7420_vm12 = vmor %vm3041_vm9, %vm3042_vm5 }
 0x180   : > { %4605 = vrsqrt.f32 %v7319_v22  ;;  %v7377_v14 = vpop.eup %4603  ;;  %v3395_v2 = vperm.slane %v2294_v28, %v6999_v40  ;;  %v2594_v47 = vsel %vm7357_vm8, %v7290_v41, %v2590_v27  ;;  %v2149_v46 = vsub.f32 1.5, %v2148_v6  ;;  %v344_v6 = vld [vmem:[%s4819_s9 + $0x270] sm:$0xff] }
 0x181   : > { %v3038_v4 = vmul.f32 0.5, %v3037_v38  ;;  %v3453_v34 = vperm.slane %v2594_v47, %v6066_v0  ;;  %v2739_v45 = vsub.f32 1.5, %v2738_v63  ;;  %v2596_v30 = vmul.f32 %v7370_v58, %v7304_v33  ;;  %v7442_v38 = vpop.xlane.xlu1 %1400 }
 0x182   : > { %vm2601_vm1 = vweird.f32 %v7304_v33  ;;  %vm2602_vm6 = vweird.f32 %v7370_v58  ;;  %v7398_v41 = vsel %vm3321_vm14, %v3395_v2, %v7016_v23  ;;  %v2150_v54 = vmul.f32 %v7315_v12, %v2149_v46 }
 0x183   : > { %v3039_v51 = vsub.f32 1.5, %v3038_v4  ;;  %v1986_v60 = vmul.f32 %v7377_v14, %v7306_v16  ;;  %vm2301_vm7 = vweird.f32 %v7319_v22  ;;  %vm9254_vm8 = vcmask 523712  }
 0x184   : > { %v3454_v23 = vsel %vm9254_vm8, %v3453_v34, %v7211_v1  ;;  %v2740_v9 = vmul.f32 %v7321_v10, %v2739_v45  ;;  %v2597_v36 = vmul.f32 %v7370_v58, %v2596_v30  ;;  %vm1992_vm13 = vweird.f32 %v7377_v14 }
 0x185   : > { %v2154_v42 = vsel %vm7388_vm3, %v7315_v12, %v2150_v54  ;;  %v3040_v1 = vmul.f32 %v7332_v52, %v3039_v51  ;;  %v1987_v24 = vmul.f32 %v7377_v14, %v1986_v60  ;;  %vm9257_vm0 = vcmask 261120   ;;  %vm7463_vm8 = vmor %vm1991_vm2, %vm1992_vm13  ;;  %v359_v51 = vld [vmem:[%s4819_s9 + $0x2e8] sm:$0xff] }
 0x186   : > { %v1588_v37 = vsel %vm9257_vm0, %v1310_v59, 0.0  ;;  %v4606_v29 = vpop.eup %4605  ;;  %v3368_v18 = vperm.slane %v2154_v42, %v7295_v49  ;;  %v2744_v7 = vsel %vm7405_vm15, %v7321_v10, %v2740_v9  ;;  %v2598_v55 = vmul.f32 0.5, %v2597_v36  ;;  %vm9259_vm3 = vmmov %vm9257_vm0 }
 0x187   : > { %1589 = vadd.xlane.f32.xlu0 %v1588_v37  ;;  %v1357_v32 = vmul.f32 %v388_v57, %v388_v57  ;;  %v3482_v3 = vperm.slane %v2744_v7, %v5711_v13  ;;  %v3044_v12 = vsel %vm7420_vm12, %v7332_v52, %v3040_v1  ;;  %v1988_v27 = vmul.f32 0.5, %v1987_v24  ;;  %vm2603_vm12 = vmor %vm2601_vm1, %vm2602_vm6 }
 0x188   : > { %v2296_v59 = vmul.f32 %v4606_v29, %v7319_v22  ;;  %v7446_v28 = vsel %vm9061_vm4, %v3368_v18, %v7285_v26  ;;  %v3540_v10 = vperm.slane %v3044_v12, %v5751_v50  ;;  %v2599_v63 = vsub.f32 1.5, %v2598_v55  ;;  %vm9263_vm2 = vmmov %vm9257_vm0  ;;  %v312_v12 = vld [vmem:[%s4819_s9 + $0x170] sm:$0xff] }
 0x189   : > { %vm2302_vm9 = vweird.f32 %v4606_v29  ;;  %vm9258_vm5 = vcmask 458112   ;;  %v1989_v47 = vsub.f32 1.5, %v1988_v27  ;;  %v1729_v46 = vsel %vm9259_vm3, %v1357_v32, 0.0  ;;  %vm9266_vm6 = vmmov %vm9257_vm0  ;;  %v345_v27 = vld [vmem:[%s4819_s9 + $0x278] sm:$0xff] }
 0x18a   : > { %v7451_v2 = vsel %vm9258_vm5, %v3482_v3, %v7109_v39  ;;  %v2297_v52 = vmul.f32 %v4606_v29, %v2296_v59  ;;  %vm9260_vm15 = vcmask 326912   ;;  %v2600_v26 = vmul.f32 %v7370_v58, %v2599_v63  ;;  %1730 = vadd.xlane.f32.xlu2 %v1729_v46  ;;  %vm7495_vm1 = vmor %vm2301_vm7, %vm2302_vm9  ;;  %v7503_v42 = vpop.xlane.xlu2 %1448  ;;  %v7517_v55 = vpop.xlane.xlu1 %1538  ;;  %v375_v59 = vld [vmem:[%s4819_s9 + $0x368] sm:$0xff] }
 0x18b   : > { %v7456_v4 = vsel %vm9260_vm15, %v3540_v10, %v7270_v62  ;;  %v1313_v39 = vmul.f32 %v344_v6, %v344_v6  ;;  %v7467_v34 = vmax.f32 %v1716_v5, 1e-16  ;;  %v1990_v62 = vmul.f32 %v7377_v14, %v1989_v47  ;;  %vm9267_vm7 = vmmov %vm9257_vm0 }
 0x18c   : > { %v2298_v61 = vmul.f32 0.5, %v2297_v52  ;;  %v7475_v45 = vmax.f32 %v7330_v48, 1e-16  ;;  %v7478_v16 = vmax.f32 %v7350_v15, 1e-16  ;;  %v2604_v30 = vsel %vm2603_vm12, %v7370_v58, %v2600_v26  ;;  %v389_v48 = vld [vmem:[%s4819_s9 + $0x3d8] sm:$0xff]  ;;  %v1494_v15 = vpop.xlane.xlu0 %1493  ;;  %vm9268_vm13 = vmmov %vm9257_vm0 }
 0x18d   : > { %v1597_v54 = vsel %vm9263_vm2, %v1313_v39, 0.0  ;;  %4607 = vrsqrt.f32 %v7467_v34  ;;  %v3455_v33 = vperm.slane %v2604_v30, %v6310_v35  ;;  %v1994_v60 = vsel %vm7463_vm8, %v7377_v14, %v1990_v62  ;;  %vm9269_vm12 = vmmov %vm9263_vm2 }
 0x18e   : > { %v2299_v57 = vsub.f32 1.5, %v2298_v61  ;;  %1598 = vadd.xlane.f32.xlu1 %v1597_v54  ;;  %4609 = vrsqrt.f32 %v7475_v45  ;;  %v3328_v58 = vperm.slane %v1994_v60, %v7295_v49  ;;  %v1355_v17 = vmul.f32 %v386_v53, %v386_v53 }
 0x18f   : > { %4611 = vrsqrt.f32 %v7478_v16  ;;  %v7501_v9 = vsel %vm9060_vm10, %v3455_v33, %v3454_v23  ;;  %v1328_v36 = vmul.f32 %v359_v51, %v359_v51  ;;  %v1358_v24 = vmul.f32 %v389_v48, %v389_v48 }
 0x190   : > { %v2300_v14 = vmul.f32 %v4606_v29, %v2299_v57  ;;  %v7507_v1 = vsel %vm9061_vm4, %v3328_v58, %v7205_v25  ;;  %v7509_v22 = vmax.f32 %v1494_v15, 1e-16  ;;  %v7511_v37 = vmax.f32 %v1671_v21, 1e-16 }
 0x191   : > { %v1723_v18 = vsel %vm9266_vm6, %v1355_v17, 0.0  ;;  %v1642_v7 = vsel %vm9267_vm7, %v1328_v36, 0.0  ;;  %v1732_v21 = vsel %vm9268_vm13, %v1358_v24, 0.0  ;;  %vm3051_vm0 = vweird.f32 %v7467_v34 }
 0x192   : > { %v2304_v23 = vsel %vm7495_vm1, %v4606_v29, %v2300_v14  ;;  %1724 = vadd.xlane.f32.xlu0 %v1723_v18  ;;  %1643 = vadd.xlane.f32.xlu2 %v1642_v7  ;;  %4613 = vrsqrt.f32 %v7509_v22  ;;  %vm2451_vm9 = vweird.f32 %v7475_v45  ;;  %vm2751_vm5 = vweird.f32 %v7478_v16  ;;  %v7565_v15 = vpop.xlane.xlu2 %1583 }
 0x193   : > { %v7519_v32 = vpop.eup %4607  ;;  %v3397_v25 = vperm.slane %v2304_v23, %v7058_v56  ;;  %4615 = vrsqrt.f32 %v7511_v37  ;;  %v7548_v46 = vmax.f32 %v7442_v38, 1e-16  ;;  %v1281_v26 = vmul.f32 %v312_v12, %v312_v12 }
 0x194   : > { %v7524_v3 = vpop.eup %4609  ;;  %v3046_v29 = vmul.f32 %v7519_v32, %v7467_v34  ;;  %vm3052_vm3 = vweird.f32 %v7519_v32  ;;  %v1314_v50 = vmul.f32 %v345_v27, %v345_v27  ;;  %v1344_v39 = vmul.f32 %v375_v59, %v375_v59  ;;  %v1629_v30 = vpop.xlane.xlu0 %1628 }
 0x195   : > { %v7533_v6 = vpop.eup %4611  ;;  %v7537_v10 = vsel %vm9058_vm11, %v3397_v25, %v7398_v41  ;;  %v2446_v63 = vmul.f32 %v7524_v3, %v7475_v45  ;;  %vm2901_vm15 = vweird.f32 %v7511_v37  ;;  %4617 = vrsqrt.f32 %v7548_v46  ;;  %vm7571_vm7 = vmor %vm3051_vm0, %vm3052_vm3  ;;  %v7594_v25 = vpop.xlane.xlu1 %1673 }
 0x196   : > { %v3047_v47 = vmul.f32 %v7519_v32, %v3046_v29  ;;  %v2746_v52 = vmul.f32 %v7533_v6, %v7478_v16  ;;  %1733 = vadd.xlane.f32.xlu1 %v1732_v21  ;;  %vm2452_vm8 = vweird.f32 %v7524_v3  ;;  %v1501_v38 = vsel %vm9269_vm12, %v1281_v26, 0.0  ;;  %vm9272_vm12 = vmmov %vm9263_vm2 }
 0x197   : > { %v2447_v41 = vmul.f32 %v7524_v3, %v2446_v63  ;;  %v1600_v51 = vsel %vm9263_vm2, %v1314_v50, 0.0  ;;  %vm2752_vm1 = vweird.f32 %v7533_v6  ;;  %vm2311_vm6 = vweird.f32 %v7509_v22  ;;  %vm7586_vm0 = vmor %vm2451_vm9, %vm2452_vm8  ;;  %v357_v50 = vld [vmem:[%s4819_s9 + $0x2d8] sm:$0xff] }
 0x198   : > { %v3048_v62 = vmul.f32 0.5, %v3047_v47  ;;  %v2747_v61 = vmul.f32 %v7533_v6, %v2746_v52  ;;  %v7554_v54 = vpop.eup %4613  ;;  %vm2001_vm13 = vweird.f32 %v7548_v46  ;;  %v1690_v17 = vsel %vm9272_vm12, %v1344_v39, 0.0  ;;  %vm7601_vm3 = vmor %vm2751_vm5, %vm2752_vm1 }
 0x199   : > { %v2448_v53 = vmul.f32 0.5, %v2447_v41  ;;  %v7559_v33 = vpop.eup %4615  ;;  %v2306_v48 = vmul.f32 %v7554_v54, %v7509_v22  ;;  %v7579_v36 = vmax.f32 %v1629_v30, 1e-16  ;;  %v7592_v7 = vmax.f32 %v7503_v42, 1e-16 }
 0x19a   : > { %v3049_v60 = vsub.f32 1.5, %v3048_v62  ;;  %v2748_v57 = vmul.f32 0.5, %v2747_v61  ;;  %v2896_v14 = vmul.f32 %v7559_v33, %v7511_v37  ;;  %1502 = vadd.xlane.f32.xlu0 %v1501_v38  ;;  %1601 = vadd.xlane.f32.xlu2 %v1600_v51  ;;  %vm2902_vm9 = vweird.f32 %v7559_v33 }
 0x19b   : > { %v2449_v5 = vsub.f32 1.5, %v2448_v53  ;;  %v2307_v18 = vmul.f32 %v7554_v54, %v2306_v48  ;;  %4619 = vrsqrt.f32 %v7579_v36  ;;  %v7608_v42 = vpop.eup %4617  ;;  %vm2312_vm5 = vweird.f32 %v7554_v54  ;;  %vm7642_vm2 = vmor %vm2901_vm15, %vm2902_vm9 }
 0x19c   : > { %v3050_v24 = vmul.f32 %v7519_v32, %v3049_v60  ;;  %v2749_v23 = vsub.f32 1.5, %v2748_v57  ;;  %v2897_v29 = vmul.f32 %v7559_v33, %v2896_v14  ;;  %4621 = vrsqrt.f32 %v7592_v7  ;;  %v1404_v53 = vpop.xlane.xlu0 %1403  ;;  %vm2313_vm15 = vmor %vm2311_vm6, %vm2312_vm5 }
 0x19d   : > { %v2450_v21 = vmul.f32 %v7524_v3, %v2449_v5  ;;  %v2308_v16 = vmul.f32 0.5, %v2307_v18  ;;  %v1996_v52 = vmul.f32 %v7608_v42, %v7548_v46  ;;  %vm9277_vm8 = vcmask 392512  }
 0x19e   : > { %v3054_v12 = vsel %vm7571_vm7, %v7519_v32, %v3050_v24  ;;  %v2750_v27 = vmul.f32 %v7533_v6, %v2749_v23  ;;  %1691 = vadd.xlane.f32.xlu1 %v1690_v17  ;;  %v2898_v47 = vmul.f32 0.5, %v2897_v29  ;;  %vm2002_vm1 = vweird.f32 %v7608_v42  ;;  %v390_v17 = vld [vmem:[%s4819_s9 + $0x3e0] sm:$0xff]  ;;  %v376_v24 = vld [vmem:[%s4819_s9 + $0x370] sm:$0xff] }
 0x19f   : > { %v3542_v59 = vperm.slane %v3054_v12, %v5431_v8  ;;  %v2454_v63 = vsel %vm7586_vm0, %v7524_v3, %v2450_v21  ;;  %v2309_v26 = vsub.f32 1.5, %v2308_v16  ;;  %v1997_v62 = vmul.f32 %v7608_v42, %v1996_v52  ;;  %vm7683_vm12 = vmor %vm2001_vm13, %vm2002_vm1 }
 0x1a0   : > { %v3426_v41 = vperm.slane %v2454_v63, %v6999_v40  ;;  %v2754_v32 = vsel %vm7601_vm3, %v7533_v6, %v2750_v27  ;;  %v2899_v39 = vsub.f32 1.5, %v2898_v47  ;;  %vm9280_vm7 = vcmask 523712   ;;  %v313_v6 = vld [vmem:[%s4819_s9 + $0x178] sm:$0xff] }
 0x1a1   : > { %v7629_v8 = vsel %vm9277_vm8, %v3542_v59, %v7456_v4  ;;  %v3484_v3 = vperm.slane %v2754_v32, %v6066_v0  ;;  %v2310_v30 = vmul.f32 %v7554_v54, %v2309_v26  ;;  %v7648_v4 = vmax.f32 %v7517_v55, 1e-16  ;;  %v7650_v38 = vpop.eup %4619 }
 0x1a2   : > { %v7635_v61 = vsel %vm3321_vm14, %v3426_v41, %v7251_v44  ;;  %v2900_v37 = vmul.f32 %v7559_v33, %v2899_v39  ;;  %v1998_v51 = vmul.f32 0.5, %v1997_v62  ;;  %v1326_v60 = vmul.f32 %v357_v50, %v357_v50  ;;  %v7659_v57 = vpop.eup %4621 }
 0x1a3   : > { %v7654_v44 = vsel %vm9280_vm7, %v3484_v3, %v7451_v2  ;;  %v2314_v55 = vsel %vm2313_vm15, %v7554_v54, %v2310_v30  ;;  %v7663_v48 = vadd.s32 4294967200, %v5356_v19  ;;  %v2756_v58 = vmul.f32 %v7650_v38, %v7579_v36  ;;  %v7668_v2 = vpop.xlane.xlu2 %1718 }
 0x1a4   : > { %4623 = vrsqrt.f32 %v7648_v4  ;;  %v3399_v22 = vperm.slane %v2314_v55, %v7295_v49  ;;  %v2904_v5 = vsel %vm7642_vm2, %v7559_v33, %v2900_v37  ;;  %v1999_v14 = vsub.f32 1.5, %v1998_v51  ;;  %v7689_v33 = vpop.xlane.xlu1 %1451  ;;  %v392_v51 = vld [vmem:[%s4819_s9 + $0x3f0] sm:$0xff] }
 0x1a5   : > { %v2156_v54 = vmul.f32 %v7659_v57, %v7592_v7  ;;  %v3513_v34 = vperm.slane %v2904_v5, %v5711_v13  ;;  %vm9059_vm6 = vcmask 851712   ;;  %v2757_v18 = vmul.f32 %v7650_v38, %v2756_v58 }
 0x1a6   : > { %vm2161_vm0 = vweird.f32 %v7592_v7  ;;  %v7693_v21 = vsel %vm9061_vm4, %v3399_v22, %v7537_v10  ;;  %v2000_v45 = vmul.f32 %v7608_v42, %v1999_v14  ;;  %vm9283_vm3 = vcmask 261120   ;;  %v391_v7 = vld [vmem:[%s4819_s9 + $0x3e8] sm:$0xff] }
 0x1a7   : > { %v2157_v29 = vmul.f32 %v7659_v57, %v2156_v54  ;;  %v1636_v46 = vsel %vm9283_vm3, %v1326_v60, 0.0  ;;  %vm9284_vm13 = vcmask 458112   ;;  %v2758_v27 = vmul.f32 0.5, %v2757_v18  ;;  %vm9285_vm8 = vmmov %vm9283_vm3 }
 0x1a8   : > { %v7700_v12 = vsel %vm9284_vm13, %v3513_v34, %v7366_v11  ;;  %1637 = vadd.xlane.f32.xlu0 %v1636_v46  ;;  %v1359_v16 = vmul.f32 %v390_v17, %v390_v17  ;;  %v1345_v59 = vmul.f32 %v376_v24, %v376_v24  ;;  %v2004_v63 = vsel %vm7683_vm12, %v7608_v42, %v2000_v45  ;;  %vm9286_vm2 = vmmov %vm9283_vm3 }
 0x1a9   : > { %vm2762_vm9 = vweird.f32 %v7650_v38  ;;  %v2158_v10 = vmul.f32 0.5, %v2157_v29  ;;  %vm2162_vm5 = vweird.f32 %v7659_v57  ;;  %v3332_v52 = vperm.slane %v2004_v63, %v7663_v48  ;;  %vm9291_vm13 = vmmov %vm9286_vm2 }
 0x1aa   : > { %v7707_v47 = vpop.eup %4623  ;;  %v2759_v11 = vsub.f32 1.5, %v2758_v27  ;;  %v1735_v41 = vsel %vm9285_vm8, %v1359_v16, 0.0  ;;  %v1693_v32 = vsel %vm9286_vm2, %v1345_v59, 0.0  ;;  %vm2761_vm1 = vweird.f32 %v7579_v36  ;;  %vm7724_vm7 = vmor %vm2161_vm0, %vm2162_vm5 }
 0x1ab   : > { %v2159_v26 = vsub.f32 1.5, %v2158_v10  ;;  %v2456_v42 = vmul.f32 %v7707_v47, %v7648_v4  ;;  %1736 = vadd.xlane.f32.xlu2 %v1735_v41  ;;  %1694 = vadd.xlane.f32.xlu1 %v1693_v32  ;;  %v7715_v50 = vmax.f32 %v1404_v53, 1e-16  ;;  %v7719_v3 = vsel %vm9059_vm6, %v3332_v52, %v7507_v1  ;;  %v1542_v53 = vpop.xlane.xlu0 %1541  ;;  %vm2763_vm15 = vmor %vm2761_vm1, %vm2762_vm9  ;;  %v393_v41 = vld [vmem:[%s4819_s9 + $0x3f8] sm:$0xff] }
 0x1ac   : > { %v2760_v39 = vmul.f32 %v7650_v38, %v2759_v11  ;;  %v7729_v62 = vmax.f32 %v7565_v15, 1e-16  ;;  %v7732_v30 = vmax.f32 %v7594_v25, 1e-16  ;;  %vm2461_vm12 = vweird.f32 %v7648_v4  ;;  %v1497_v15 = vpop.xlane.xlu2 %1496  ;;  %v7752_v54 = vpop.xlane.xlu1 %1586  ;;  %vm9292_vm9 = vmmov %vm9286_vm2 }
 0x1ad   : > { %v2160_v1 = vmul.f32 %v7659_v57, %v2159_v26  ;;  %v2457_v37 = vmul.f32 %v7707_v47, %v2456_v42  ;;  %4625 = vrsqrt.f32 %v7715_v50  ;;  %vm2462_vm0 = vweird.f32 %v7707_v47  ;;  %vm9293_vm5 = vmmov %vm9286_vm2 }
 0x1ae   : > { %v2764_v60 = vsel %vm2763_vm15, %v7650_v38, %v2760_v39  ;;  %4627 = vrsqrt.f32 %v7729_v62  ;;  %v1282_v38 = vmul.f32 %v313_v6, %v313_v6  ;;  %v1360_v5 = vmul.f32 %v391_v7, %v391_v7  ;;  %vm7771_vm3 = vmor %vm2461_vm12, %vm2462_vm0 }
 0x1af   : > { %v3486_v25 = vperm.slane %v2764_v60, %v6310_v35  ;;  %v2164_v55 = vsel %vm7724_vm7, %v7659_v57, %v2160_v1  ;;  %v2458_v58 = vmul.f32 0.5, %v2457_v37  ;;  %4629 = vrsqrt.f32 %v7732_v30  ;;  %vm9294_vm0 = vmmov %vm9293_vm5 }
 0x1b0   : > { %v3370_v22 = vperm.slane %v2164_v55, %v7663_v48  ;;  %v1361_v14 = vmul.f32 %v392_v51, %v392_v51  ;;  %v7758_v34 = vmax.f32 %v1542_v53, 1e-16  ;;  %v7761_v57 = vmax.f32 %v7668_v2, 1e-16  ;;  %v358_v2 = vld [vmem:[%s4819_s9 + $0x2e0] sm:$0xff] }
 0x1b1   : > { %v7756_v17 = vsel %vm9060_vm10, %v3486_v25, %v7654_v44  ;;  %v2459_v24 = vsub.f32 1.5, %v2458_v58  ;;  %v1504_v44 = vsel %vm9291_vm13, %v1282_v38, 0.0  ;;  %v1738_v45 = vsel %vm9292_vm9, %v1360_v5, 0.0 }
 0x1b2   : > { %v7765_v23 = vsel %vm9059_vm6, %v3370_v22, %v7446_v28  ;;  %v1741_v29 = vsel %vm9293_vm5, %v1361_v14, 0.0  ;;  %v7783_v27 = vadd.s32 4294967192, %v5356_v19  ;;  %1505 = vadd.xlane.f32.xlu0 %v1504_v44  ;;  %4631 = vrsqrt.f32 %v7758_v34 }
 0x1b3   : > { %v7779_v46 = vpop.eup %4625  ;;  %v2460_v28 = vmul.f32 %v7707_v47, %v2459_v24  ;;  %1739 = vadd.xlane.f32.xlu2 %v1738_v45  ;;  %vm2011_vm8 = vweird.f32 %v7715_v50  ;;  %1742 = vadd.xlane.f32.xlu1 %v1741_v29  ;;  %4633 = vrsqrt.f32 %v7761_v57  ;;  %v7793_v59 = vmax.f32 %v7689_v33, 1e-16  ;;  %v1677_v42 = vpop.xlane.xlu0 %1676 }
 0x1b4   : > { %v7786_v4 = vpop.eup %4627  ;;  %v2006_v16 = vmul.f32 %v7779_v46, %v7715_v50  ;;  %vm2611_vm2 = vweird.f32 %v7729_v62  ;;  %v1327_v11 = vmul.f32 %v358_v2, %v358_v2  ;;  %vm9062_vm1 = vcmask 917312   ;;  %v7819_v37 = vpop.xlane.xlu2 %1631 }
 0x1b5   : > { %v7795_v63 = vpop.eup %4629  ;;  %v2464_v10 = vsel %vm7771_vm3, %v7707_v47, %v2460_v28  ;;  %v2606_v52 = vmul.f32 %v7786_v4, %v7729_v62  ;;  %vm2911_vm7 = vweird.f32 %v7732_v30  ;;  %vm2012_vm15 = vweird.f32 %v7779_v46  ;;  %v7834_v38 = vpop.xlane.xlu1 %1721 }
 0x1b6   : > { %v3428_v32 = vperm.slane %v2464_v10, %v7058_v56  ;;  %v2007_v26 = vmul.f32 %v7779_v46, %v2006_v16  ;;  %v2906_v33 = vmul.f32 %v7795_v63, %v7732_v30  ;;  %vm3061_vm12 = vweird.f32 %v7761_v57  ;;  %vm7840_vm5 = vmor %vm2011_vm8, %vm2012_vm15 }
 0x1b7   : > { %v2607_v47 = vmul.f32 %v7786_v4, %v2606_v52  ;;  %4635 = vrsqrt.f32 %v7793_v59  ;;  %v1639_v39 = vsel %vm9294_vm0, %v1327_v11, 0.0  ;;  %v1362_v1 = vmul.f32 %v393_v41, %v393_v41 }
 0x1b8   : > { %v7816_v36 = vsel %vm9058_vm11, %v3428_v32, %v7635_v61  ;;  %v2008_v6 = vmul.f32 0.5, %v2007_v26  ;;  %v2907_v53 = vmul.f32 %v7795_v63, %v2906_v33  ;;  %v7821_v7 = vpop.eup %4631  ;;  %vm2612_vm3 = vweird.f32 %v7786_v4 }
 0x1b9   : > { %v2608_v51 = vmul.f32 0.5, %v2607_v47  ;;  %v7824_v60 = vmax.f32 %v1677_v42, 1e-16  ;;  %v7826_v25 = vmax.f32 %v1497_v15, 1e-16  ;;  %v7828_v55 = vpop.eup %4633  ;;  %vm2912_vm13 = vweird.f32 %v7795_v63  ;;  %vm7853_vm6 = vmor %vm2611_vm2, %vm2612_vm3  ;;  %v329_v47 = vld [vmem:[%s4819_s9 + $0x1f8] sm:$0xff] }
 0x1ba   : > { %v2009_v58 = vsub.f32 1.5, %v2008_v6  ;;  %v2908_v61 = vmul.f32 0.5, %v2907_v53  ;;  %v2466_v22 = vmul.f32 %v7821_v7, %v7758_v34  ;;  %vm2471_vm9 = vweird.f32 %v7758_v34  ;;  %1640 = vadd.xlane.f32.xlu0 %v1639_v39  ;;  %v361_v34 = vld [vmem:[%s4819_s9 + $0x2f8] sm:$0xff] }
 0x1bb   : > { %v2609_v5 = vsub.f32 1.5, %v2608_v51  ;;  %v3056_v14 = vmul.f32 %v7828_v55, %v7761_v57  ;;  %vm2171_vm0 = vweird.f32 %v7793_v59  ;;  %vm9297_vm11 = vcmask 261120   ;;  %v1455_v28 = vpop.xlane.xlu0 %1454 }
 0x1bc   : > { %v1744_v24 = vsel %vm9297_vm11, %v1362_v1, 0.0  ;;  %v2010_v18 = vmul.f32 %v7779_v46, %v2009_v58  ;;  %v2909_v44 = vsub.f32 1.5, %v2908_v61  ;;  %v2467_v45 = vmul.f32 %v7821_v7, %v2466_v22  ;;  %vm7864_vm11 = vmor %vm2911_vm7, %vm2912_vm13  ;;  %v1407_v61 = vpop.xlane.xlu2 %1406 }
 0x1bd   : > { %1745 = vadd.xlane.f32.xlu2 %v1744_v24  ;;  %4637 = vrsqrt.f32 %v7824_v60  ;;  %v4636_v29 = vpop.eup %4635  ;;  %v2610_v2 = vmul.f32 %v7786_v4, %v2609_v5  ;;  %vm2472_vm8 = vweird.f32 %v7821_v7  ;;  %v3057_v62 = vmul.f32 %v7828_v55, %v3056_v14 }
 0x1be   : > { %4639 = vrsqrt.f32 %v7826_v25  ;;  %v2014_v16 = vsel %vm7840_vm5, %v7779_v46, %v2010_v18  ;;  %v2910_v10 = vmul.f32 %v7795_v63, %v2909_v44  ;;  %v2468_v52 = vmul.f32 0.5, %v2467_v45  ;;  %vm2473_vm3 = vmor %vm2471_vm9, %vm2472_vm8  ;;  %v1500_v18 = vpop.xlane.xlu1 %1499 }
 0x1bf   : > { %v2166_v30 = vmul.f32 %v4636_v29, %v7793_v59  ;;  %v3336_v11 = vperm.slane %v2014_v16, %v7783_v27  ;;  %v2614_v41 = vsel %vm7853_vm6, %v7786_v4, %v2610_v2  ;;  %v3058_v32 = vmul.f32 0.5, %v3057_v62  ;;  %v374_v16 = vld [vmem:[%s4819_s9 + $0x360] sm:$0xff] }
 0x1c0   : > { %vm3062_vm2 = vweird.f32 %v7828_v55  ;;  %v3457_v26 = vperm.slane %v2614_v41, %v6999_v40  ;;  %v2914_v46 = vsel %vm7864_vm11, %v7795_v63, %v2910_v10  ;;  %v2469_v33 = vsub.f32 1.5, %v2468_v52 }
 0x1c1   : > { %v2167_v42 = vmul.f32 %v4636_v29, %v2166_v30  ;;  %v7888_v39 = vsel %vm9062_vm1, %v3336_v11, %v7719_v3  ;;  %v3515_v6 = vperm.slane %v2914_v46, %v6066_v0  ;;  %v3059_v53 = vsub.f32 1.5, %v3058_v32  ;;  %vm7898_vm7 = vmor %vm3061_vm12, %vm3062_vm2 }
 0x1c2   : > { %vm2172_vm6 = vweird.f32 %v4636_v29  ;;  %v7893_v1 = vsel %vm3321_vm14, %v3457_v26, %v7501_v9  ;;  %v2470_v51 = vmul.f32 %v7821_v7, %v2469_v33  ;;  %v7903_v3 = vmax.f32 %v7752_v54, 1e-16 }
 0x1c3   : > { %v4638_v4 = vpop.eup %4637  ;;  %v2168_v58 = vmul.f32 0.5, %v2167_v42  ;;  %vm9304_vm15 = vcmask 523712   ;;  %v3060_v9 = vmul.f32 %v7828_v55, %v3059_v53  ;;  %v1298_v5 = vmul.f32 %v329_v47, %v329_v47  ;;  %vm7924_vm12 = vmor %vm2171_vm0, %vm2172_vm6 }
 0x1c4   : > { %v4640_v22 = vpop.eup %4639  ;;  %v7907_v15 = vsel %vm9304_vm15, %v3515_v6, %v7700_v12  ;;  %v2916_v57 = vmul.f32 %v4638_v4, %v7824_v60  ;;  %v2474_v14 = vsel %vm2473_vm3, %v7821_v7, %v2470_v51  ;;  %4641 = vrsqrt.f32 %v7903_v3  ;;  %v360_v6 = vld [vmem:[%s4819_s9 + $0x2f0] sm:$0xff] }
 0x1c5   : > { %v2169_v54 = vsub.f32 1.5, %v2168_v58  ;;  %v2316_v24 = vmul.f32 %v4640_v22, %v7826_v25  ;;  %v3430_v12 = vperm.slane %v2474_v14, %v7295_v49  ;;  %v3064_v50 = vsel %vm7898_vm7, %v7828_v55, %v3060_v9 }
 0x1c6   : > { %v2917_v44 = vmul.f32 %v4638_v4, %v2916_v57  ;;  %v3544_v7 = vperm.slane %v3064_v50, %v5711_v13  ;;  %vm2321_vm13 = vweird.f32 %v7826_v25  ;;  %vm2922_vm9 = vweird.f32 %v4638_v4 }
 0x1c7   : > { %v2170_v45 = vmul.f32 %v4636_v29, %v2169_v54  ;;  %v2317_v2 = vmul.f32 %v4640_v22, %v2316_v24  ;;  %v7933_v55 = vsel %vm9061_vm4, %v3430_v12, %v7816_v36  ;;  %vm9307_vm5 = vcmask 261120  }
 0x1c8   : > { %v2918_v62 = vmul.f32 0.5, %v2917_v44  ;;  %v1552_v59 = vsel %vm9307_vm5, %v1298_v5, 0.0  ;;  %vm9308_vm0 = vcmask 458112   ;;  %vm2322_vm11 = vweird.f32 %v4640_v22  ;;  %vm9311_vm15 = vmmov %vm9307_vm5 }
 0x1c9   : > { %v7939_v10 = vsel %vm9308_vm0, %v3544_v7, %v7629_v8  ;;  %v2174_v13 = vsel %vm7924_vm12, %v4636_v29, %v2170_v45  ;;  %v2318_v52 = vmul.f32 0.5, %v2317_v2  ;;  %1553 = vadd.xlane.f32.xlu0 %v1552_v59  ;;  %v7944_v36 = vmax.f32 %v1455_v28, 1e-16  ;;  %vm7961_vm2 = vmor %vm2321_vm13, %vm2322_vm11 }
 0x1ca   : > { %v3372_v30 = vperm.slane %v2174_v13, %v7783_v27  ;;  %v2919_v11 = vsub.f32 1.5, %v2918_v62  ;;  %v7947_v41 = vmax.f32 %v7819_v37, 1e-16  ;;  %vm2921_vm8 = vweird.f32 %v7824_v60  ;;  %v7953_v29 = vpop.eup %4641 }
 0x1cb   : > { %v2319_v32 = vsub.f32 1.5, %v2318_v52  ;;  %v7951_v8 = vmax.f32 %v7834_v38, 1e-16  ;;  %v1343_v26 = vmul.f32 %v374_v16, %v374_v16  ;;  %4643 = vrsqrt.f32 %v7944_v36  ;;  %vm2923_vm6 = vmor %vm2921_vm8, %vm2922_vm9 }
 0x1cc   : > { %v7957_v46 = vsel %vm9062_vm1, %v3372_v30, %v7765_v23  ;;  %v2920_v33 = vmul.f32 %v4638_v4, %v2919_v11  ;;  %v7966_v60 = vmax.f32 %v1407_v61, 1e-16  ;;  %v2616_v42 = vmul.f32 %v7953_v29, %v7903_v3  ;;  %v1545_v23 = vpop.xlane.xlu2 %1544  ;;  %v1635_v61 = vpop.xlane.xlu1 %1634 }
 0x1cd   : > { %v2320_v38 = vmul.f32 %v4640_v22, %v2319_v32  ;;  %4645 = vrsqrt.f32 %v7947_v41  ;;  %vm2621_vm7 = vweird.f32 %v7903_v3  ;;  %v7974_v25 = vadd.s32 4294967184, %v5356_v19 }
 0x1ce   : > { %v2924_v47 = vsel %vm2923_vm6, %v4638_v4, %v2920_v33  ;;  %4647 = vrsqrt.f32 %v7951_v8  ;;  %v2617_v63 = vmul.f32 %v7953_v29, %v2616_v42  ;;  %v1687_v58 = vsel %vm9311_vm15, %v1343_v26, 0.0 }
 0x1cf   : > { %v3517_v53 = vperm.slane %v2924_v47, %v6310_v35  ;;  %v2324_v51 = vsel %vm7961_vm2, %v4640_v22, %v2320_v38  ;;  %vm2622_vm3 = vweird.f32 %v7953_v29  ;;  %4649 = vrsqrt.f32 %v7966_v60  ;;  %vm9315_vm2 = vmmov %vm9311_vm15 }
 0x1d0   : > { %v3401_v4 = vperm.slane %v2324_v51, %v7663_v48  ;;  %v7986_v9 = vmax.f32 %v1500_v18, 1e-16  ;;  %v2618_v5 = vmul.f32 0.5, %v2617_v63  ;;  %vm2181_vm12 = vweird.f32 %v7944_v36  ;;  %vm8018_vm11 = vmor %vm2621_vm7, %vm2622_vm3 }
 0x1d1   : > { %v7990_v57 = vsel %vm9060_vm10, %v3517_v53, %v7907_v15  ;;  %1688 = vadd.xlane.f32.xlu0 %v1687_v58  ;;  %v1329_v22 = vmul.f32 %v360_v6, %v360_v6  ;;  %v7993_v14 = vmax.f32 %v1545_v23, 1e-16  ;;  %v7995_v54 = vpop.eup %4643  ;;  %vm9312_vm13 = vcmask 851712  }
 0x1d2   : > { %v7999_v24 = vsel %vm9312_vm13, %v3401_v4, %v7693_v21  ;;  %vm2771_vm9 = vweird.f32 %v7947_v41  ;;  %4651 = vrsqrt.f32 %v7986_v9  ;;  %v8003_v15 = vmax.f32 %v1635_v61, 1e-16 }
 0x1d3   : > { %v8005_v18 = vpop.eup %4645  ;;  %v2619_v12 = vsub.f32 1.5, %v2618_v5  ;;  %v2176_v50 = vmul.f32 %v7995_v54, %v7944_v36  ;;  %vm3071_vm5 = vweird.f32 %v7951_v8  ;;  %vm2021_vm0 = vweird.f32 %v7966_v60 }
 0x1d4   : > { %v8012_v44 = vpop.eup %4647  ;;  %vm2182_vm8 = vweird.f32 %v7995_v54  ;;  %v2766_v7 = vmul.f32 %v8005_v18, %v7947_v41  ;;  %v1645_v45 = vsel %vm9315_vm2, %v1329_v22, 0.0  ;;  %4653 = vrsqrt.f32 %v7993_v14  ;;  %v1680_v32 = vpop.xlane.xlu2 %1679 }
 0x1d5   : > { %v2620_v2 = vmul.f32 %v7953_v29, %v2619_v12  ;;  %vm3341_vm6 = vcmask 982912   ;;  %v2177_v28 = vmul.f32 %v7995_v54, %v2176_v50  ;;  %vm2772_vm15 = vweird.f32 %v8005_v18  ;;  %v8033_v62 = vpop.eup %4649  ;;  %vm8063_vm4 = vmor %vm2181_vm12, %vm2182_vm8 }
 0x1d6   : > { %v3066_v3 = vmul.f32 %v8012_v44, %v7951_v8  ;;  %vm2331_vm7 = vweird.f32 %v7986_v9  ;;  %v2767_v59 = vmul.f32 %v8005_v18, %v2766_v7  ;;  %vm3072_vm3 = vweird.f32 %v8012_v44 }
 0x1d7   : > { %4655 = vrsqrt.f32 %v8003_v15  ;;  %v1330_v16 = vmul.f32 %v361_v34, %v361_v34  ;;  %v2624_v13 = vsel %vm8018_vm11, %v7953_v29, %v2620_v2  ;;  %v2178_v52 = vmul.f32 0.5, %v2177_v28  ;;  %vm8086_vm12 = vmor %vm3071_vm5, %vm3072_vm3 }
 0x1d8   : > { %v3067_v30 = vmul.f32 %v8012_v44, %v3066_v3  ;;  %v2016_v11 = vmul.f32 %v8033_v62, %v7966_v60  ;;  %v8044_v26 = vpop.eup %4651  ;;  %v3459_v33 = vperm.slane %v2624_v13, %v7058_v56  ;;  %v2768_v37 = vmul.f32 0.5, %v2767_v59 }
 0x1d9   : > { %vm2022_vm13 = vweird.f32 %v8033_v62  ;;  %vm2481_vm2 = vweird.f32 %v7993_v14  ;;  %vm9316_vm10 = vcmask 261120   ;;  %v2179_v42 = vsub.f32 1.5, %v2178_v52  ;;  %1646 = vadd.xlane.f32.xlu0 %v1645_v45 }
 0x1da   : > { %v1648_v38 = vsel %vm9316_vm10, %v1330_v16, 0.0  ;;  %v3068_v29 = vmul.f32 0.5, %v3067_v30  ;;  %v2017_v23 = vmul.f32 %v8033_v62, %v2016_v11  ;;  %v2326_v47 = vmul.f32 %v8044_v26, %v7986_v9  ;;  %v8053_v6 = vpop.eup %4653  ;;  %vm8106_vm5 = vmor %vm2021_vm0, %vm2022_vm13 }
 0x1db   : > { %vm9317_vm11 = vcmask 720512   ;;  %v2769_v63 = vsub.f32 1.5, %v2768_v37  ;;  %vm2332_vm10 = vweird.f32 %v8044_v26  ;;  %vm2781_vm1 = vweird.f32 %v8003_v15 }
 0x1dc   : > { %v8057_v53 = vsel %vm9317_vm11, %v3459_v33, %v7893_v1  ;;  %v8069_v58 = vmax.f32 %v1680_v32, 1e-16  ;;  %v2180_v61 = vmul.f32 %v7995_v54, %v2179_v42  ;;  %vm8076_vm11 = vmor %vm2771_vm9, %vm2772_vm15  ;;  %v3069_v36 = vsub.f32 1.5, %v3068_v29 }
 0x1dd   : > { %v2018_v4 = vmul.f32 0.5, %v2017_v23  ;;  %v2327_v5 = vmul.f32 %v8044_v26, %v2326_v47  ;;  %v4656_v22 = vpop.eup %4655  ;;  %v2770_v12 = vmul.f32 %v8005_v18, %v2769_v63  ;;  %v2476_v41 = vmul.f32 %v8053_v6, %v7993_v14  ;;  %v1410_v23 = vpop.xlane.xlu1 %1409 }
 0x1de   : > { %vm2482_vm9 = vweird.f32 %v8053_v6  ;;  %4657 = vrsqrt.f32 %v8069_v58  ;;  %v2184_v34 = vsel %vm8063_vm4, %v7995_v54, %v2180_v61  ;;  %v3070_v21 = vmul.f32 %v8012_v44, %v3069_v36  ;;  %vm8126_vm4 = vmor %vm2331_vm7, %vm2332_vm10  ;;  %v1458_v36 = vpop.xlane.xlu2 %1457 }
 0x1df   : > { %v2019_v7 = vsub.f32 1.5, %v2018_v4  ;;  %v2328_v45 = vmul.f32 0.5, %v2327_v5  ;;  %v3374_v8 = vperm.slane %v2184_v34, %v7974_v25  ;;  %v2774_v2 = vsel %vm8076_vm11, %v8005_v18, %v2770_v12  ;;  %vm8148_vm15 = vmor %vm2481_vm2, %vm2482_vm9 }
 0x1e0   : > { %v2477_v54 = vmul.f32 %v8053_v6, %v2476_v41  ;;  %v2776_v3 = vmul.f32 %v4656_v22, %v8003_v15  ;;  %v3488_v59 = vperm.slane %v2774_v2, %v6999_v40  ;;  %v3074_v16 = vsel %vm8086_vm12, %v8012_v44, %v3070_v21 }
 0x1e1   : > { %v2020_v18 = vmul.f32 %v8033_v62, %v2019_v7  ;;  %v2329_v13 = vsub.f32 1.5, %v2328_v45  ;;  %v8119_v60 = vsel %vm3341_vm6, %v3374_v8, %v7957_v46  ;;  %v3546_v52 = vperm.slane %v3074_v16, %v6066_v0  ;;  %1649 = vadd.xlane.f32.xlu0 %v1648_v38  ;;  %v377_v38 = vld [vmem:[%s4819_s9 + $0x378] sm:$0xff] }
 0x1e2   : > { %v2478_v11 = vmul.f32 0.5, %v2477_v54  ;;  %v2777_v44 = vmul.f32 %v4656_v22, %v2776_v3  ;;  %v3489_v32 = vsel %vm3321_vm14, %v3488_v59, %v7756_v17  ;;  %vm2782_vm0 = vweird.f32 %v4656_v22 }
 0x1e3   : > { %v2024_v46 = vsel %vm8106_vm5, %v8033_v62, %v2020_v18  ;;  %v2330_v0 = vmul.f32 %v8044_v26, %v2329_v13  ;;  %vm9328_vm8 = vcmask 523712   ;;  %vm8163_vm7 = vmor %vm2781_vm1, %vm2782_vm0  ;;  %vm2931_vm3 = vweird.f32 %v8069_v58 }
 0x1e4   : > { %v4658_v33 = vpop.eup %4657  ;;  %v8138_v9 = vsel %vm9328_vm8, %v3546_v52, %v7939_v10  ;;  %v3340_v37 = vperm.slane %v2024_v46, %v7974_v25  ;;  %v2479_v42 = vsub.f32 1.5, %v2478_v11  ;;  %v2778_v29 = vmul.f32 0.5, %v2777_v44 }
 0x1e5   : > { %v2334_v17 = vsel %vm8126_vm4, %v8044_v26, %v2330_v0  ;;  %v2926_v10 = vmul.f32 %v4658_v33, %v8069_v58  ;;  %v1762_v1 = vmax.f32 %v1410_v23, 1e-16  ;;  %vm9333_vm13 = vcmask 917312   ;;  %v1548_v46 = vpop.xlane.xlu1 %1547  ;;  %v8198_v0 = vpop.permute.xlu0 %475 }
 0x1e6   : > { %v8156_v47 = vsel %vm3341_vm6, %v3340_v37, %v7888_v39  ;;  %v3403_v51 = vperm.slane %v2334_v17, %v7783_v27  ;;  %v2480_v63 = vmul.f32 %v8053_v6, %v2479_v42  ;;  %v2779_v26 = vsub.f32 1.5, %v2778_v29  ;;  %v1593_v42 = vpop.xlane.xlu2 %1592 }
 0x1e7   : > { %v2927_v61 = vmul.f32 %v4658_v33, %v2926_v10  ;;  %v1346_v12 = vmul.f32 %v377_v38, %v377_v38  ;;  %vm2932_vm1 = vweird.f32 %v4658_v33  ;;  %4659 = vrsqrt.f32 %v1762_v1 }
 0x1e8   : > { %v8170_v39 = vsel %vm9333_vm13, %v3403_v51, %v7999_v24  ;;  %v2484_v4 = vsel %vm8148_vm15, %v8053_v6, %v2480_v63  ;;  %v2780_v5 = vmul.f32 %v4656_v22, %v2779_v26  ;;  %vm9334_vm2 = vcmask 261120   ;;  %vm2933_vm11 = vmor %vm2931_vm3, %vm2932_vm1 }
 0x1e9   : > { %v3432_v15 = vperm.slane %v2484_v4, %v7663_v48  ;;  %v2928_v50 = vmul.f32 0.5, %v2927_v61  ;;  %v1696_v34 = vsel %vm9334_vm2, %v1346_v12, 0.0  ;;  %v1778_v21 = vmax.f32 %v1458_v36, 1e-16 }
 0x1ea   : > { %v2784_v41 = vsel %vm8163_vm7, %v4656_v22, %v2780_v5  ;;  %vm9335_vm10 = vcmask 851712   ;;  %1697 = vadd.xlane.f32.xlu0 %v1696_v34  ;;  %vm9336_vm12 = vcmask 720512   ;;  %v4753_v28 = vmov 32  }
 0x1eb   : > { %v8181_v24 = vsel %vm9335_vm10, %v3432_v15, %v7933_v55  ;;  %v3490_v7 = vperm.slane %v2784_v41, %v7058_v56  ;;  %v2929_v6 = vsub.f32 1.5, %v2928_v50  ;;  %4661 = vrsqrt.f32 %v1778_v21  ;;  %4454 = vset.pattern.permute.xlu0 %v4753_v28 }
 0x1ec   : > { %v433_v3 = vand.u32 2147483647, %v5382_v20  ;;  %vm2031_vm9 = vweird.f32 %v1762_v1  ;;  %v8196_v44 = vadd.s32 4294967176, %v5356_v19  ;;  %vm2191_vm0 = vweird.f32 %v1778_v21 }
 0x1ed   : > { %v8187_v45 = vsel %vm9336_vm12, %v3490_v7, %v3489_v32  ;;  %v2930_v8 = vmul.f32 %v4658_v33, %v2929_v6  ;;  %v4660_v22 = vpop.eup %4659  ;;  %vm9064_vm15 = vcmask 1048512   ;;  %vm3564_vm3 = vcmask 1041409   ;;  %v1683_v61 = vpop.xlane.xlu1 %1682 }
 0x1ee   : > { %v2026_v55 = vmul.f32 %v4660_v22, %v1762_v1  ;;  %v434_v18 = vsub.f32 0.0, %v433_v3  ;;  %vm2032_vm5 = vweird.f32 %v4660_v22  ;;  %v1728_v4 = vpop.xlane.xlu2 %1727  ;;  %v430_v41 = vmax.f32 %v5382_v20, 0.0 }
 0x1ef   : > { %v2934_v2 = vsel %vm2933_vm11, %v4658_v33, %v2930_v8  ;;  %vm2033_vm4 = vmor %vm2031_vm9, %vm2032_vm5  ;;  %vm431_vm1 = vcmp.ne.f32.partialorder %v5382_v20, %v5382_v20  ;;  %v8217_v3 = vmax.f32 %v1683_v61, 1e-16  ;;  %vm9338_vm12 = vcmask 786112  }
 0x1f0   : > { %v3519_v54 = vperm.slane %v2934_v2, %v6999_v40  ;;  %v2027_v58 = vmul.f32 %v4660_v22, %v2026_v55  ;;  %v435_v30 = vmul.f32 1.442695, %v434_v18  ;;  %v8214_v2 = vmax.f32 %v1548_v46, 1e-16 }
 0x1f1   : > { %v4662_v59 = vpop.eup %4661 }
 0x1f2   : > { %v8193_v16 = vsel %vm3321_vm14, %v3519_v54, %v7990_v57  ;;  %v2186_v13 = vmul.f32 %v4662_v59, %v1778_v21  ;;  %v2028_v52 = vmul.f32 0.5, %v2027_v58  ;;  %vm2192_vm8 = vweird.f32 %v4662_v59 }
 0x1f3   : > { %4663 = vpow2.f32 %v435_v30  ;;  %vm2193_vm7 = vmor %vm2191_vm0, %vm2192_vm8  ;;  %v8220_v58 = vmax.f32 %v1593_v42, 1e-16  ;;  %v8231_v42 = vmax.f32 %v6629_v31, 1e-16  ;;  %vm9339_vm0 = vcmask 589312  }
 0x1f4   : > { %v2187_v11 = vmul.f32 %v4662_v59, %v2186_v13  ;;  %v2029_v32 = vsub.f32 1.5, %v2028_v52  ;;  %vm2491_vm8 = vweird.f32 %v8214_v2 }
 0x1f5   : > { %v1551_v6 = vpop.xlane.xlu1 %1550 }
 0x1f6   : > { %v2188_v33 = vmul.f32 0.5, %v2187_v11  ;;  %v2030_v57 = vmul.f32 %v4660_v22, %v2029_v32  ;;  %v1596_v28 = vpop.xlane.xlu2 %1595  ;;  %v8223_v52 = vmax.f32 %v1551_v6, 1e-16 }
 0x1f7   : > { %v8247_v31 = vmax.f32 %v1596_v28, 1e-16 }
 0x1f8   : > { %v2189_v37 = vsub.f32 1.5, %v2188_v33  ;;  %v2034_v29 = vsel %vm2033_vm4, %v4660_v22, %v2030_v57 }
 0x1f9   : > { %v3344_v23 = vperm.slane %v2034_v29, %v8196_v44  ;;  %v4664_v19 = vpop.eup %4663 }
 0x1fa   : > { %v2190_v17 = vmul.f32 %v4662_v59, %v2189_v37  ;;  %v437_v51 = vadd.f32 1.0, %v4664_v19  ;;  %v440_v63 = vmul.f32 -0.5, %v4664_v19  ;;  %v1590_v26 = vpop.xlane.xlu0 %1589  ;;  %v443_v5 = vand.u32 2147483647, %v4664_v19 }
 0x1fb   : > { %v3346_v62 = vsel %vm9064_vm15, %v3344_v23, %v8156_v47  ;;  %v1822_v12 = vmax.f32 %v1590_v26, 1e-16  ;;  %v8234_v23 = vmax.f32 %v1728_v4, 1e-16 }
 0x1fc   : > { %v2194_v10 = vsel %vm2193_vm7, %v4662_v59, %v2190_v17  ;;  %4665 = vlog2.f32 %v437_v51  ;;  %v441_v36 = vadd.f32 1.0, %v440_v63  ;;  %vm444_vm13 = vcmp.lt.f32.partialorder %v443_v5, 0.0004427343 }
 0x1fd   : > { %v3376_v38 = vperm.slane %v2194_v10, %v8196_v44  ;;  %4667 = vrsqrt.f32 %v1822_v12  ;;  %v1686_v13 = vpop.xlane.xlu1 %1685  ;;  %vm2631_vm10 = vweird.f32 %v1822_v12 }
 0x1fe   : > { %v442_v50 = vmul.f32 %v4664_v19, %v441_v36  ;;  %v1731_v57 = vpop.xlane.xlu2 %1730  ;;  %v8241_v10 = vmax.f32 %v1686_v13, 1e-16 }
 0x1ff   : > { %v3377_v14 = vsel %vm9064_vm15, %v3376_v38, %v8119_v60 }
 0x200   : > { %v8206_v1 = vsel %vm3564_vm3, %v3377_v14, %v3346_v62  ;;  %vm2941_vm3 = vweird.f32 %v8217_v3 }
 0x202   : > { %v4666_v15 = vpop.eup %4665 }
 0x203   : > { %v439_v47 = vmul.f32 0.6931472, %v4666_v15  ;;  %v4668_v60 = vpop.eup %4667 }
 0x204   : > { %v2626_v54 = vmul.f32 %v4668_v60, %v1822_v12  ;;  %vm2632_vm2 = vweird.f32 %v4668_v60 }
 0x205   : > { %v445_v34 = vsel %vm444_vm13, %v442_v50, %v439_v47  ;;  %v1725_v21 = vpop.xlane.xlu0 %1724  ;;  %vm2633_vm11 = vmor %vm2631_vm10, %vm2632_vm2  ;;  %v1599_v36 = vpop.xlane.xlu1 %1598  ;;  %vm2641_vm2 = vweird.f32 %v8220_v58 }
 0x206   : > { %v446_v7 = vadd.f32 %v445_v34, %v430_v41  ;;  %v1867_v22 = vmax.f32 %v1725_v21, 1e-16  ;;  %v2627_v55 = vmul.f32 %v4668_v60, %v2626_v54  ;;  %v8267_v50 = vmax.f32 %v1599_v36, 1e-16  ;;  %v1644_v34 = vpop.xlane.xlu2 %1643 }
 0x208   : > { %v8212_v8 = vsel %vm431_vm1, %v5382_v20, %v446_v7  ;;  %4669 = vrsqrt.f32 %v1867_v22  ;;  %v2628_v59 = vmul.f32 0.5, %v2627_v55  ;;  %vm3081_vm5 = vweird.f32 %v1867_v22 }
 0x209   : > { %9337 = vst [vmem:[#allocation4_spill] sm:$0xff] %v8212_v8  ;;  %3582 = vperm.xlu0 %4454, %v8212_v8   ;;  %4671 = vrsqrt.f32 %v8214_v2 }
 0x20a   : > { %v2629_v18 = vsub.f32 1.5, %v2628_v59  ;;  %4673 = vrsqrt.f32 %v8217_v3 }
 0x20b   : > { %4675 = vrsqrt.f32 %v8220_v58 }
 0x20c   : > { %v2630_v30 = vmul.f32 %v4668_v60, %v2629_v18  ;;  %4677 = vrsqrt.f32 %v8223_v52 }
 0x20d   : > { %v8225_v11 = vpop.xlane.xlu0 %1502  ;;  %4679 = vrsqrt.f32 %v8231_v42  ;;  %v1734_v36 = vpop.xlane.xlu1 %1733 }
 0x20e   : > { %v4670_v32 = vpop.eup %4669  ;;  %v2634_v33 = vsel %vm2633_vm11, %v4668_v60, %v2630_v30  ;;  %4681 = vrsqrt.f32 %v8234_v23 }
 0x20f   : > { %v8227_v46 = vpop.eup %4671  ;;  %v3076_v37 = vmul.f32 %v4670_v32, %v1867_v22  ;;  %v3461_v29 = vperm.slane %v2634_v33, %v7295_v49  ;;  %vm3082_vm9 = vweird.f32 %v4670_v32  ;;  %4683 = vrsqrt.f32 %v8241_v10 }
 0x210   : > { %v8237_v19 = vpop.eup %4673  ;;  %v2486_v62 = vmul.f32 %v8227_v46, %v8214_v2  ;;  %4685 = vrsqrt.f32 %v8247_v31  ;;  %vm3083_vm4 = vmor %vm3081_vm5, %vm3082_vm9  ;;  %v8295_v33 = vmax.f32 %v1644_v34, 1e-16  ;;  %vm2492_vm7 = vweird.f32 %v8227_v46 }
 0x211   : > { %v3077_v17 = vmul.f32 %v4670_v32, %v3076_v37  ;;  %v8245_v38 = vsel %vm9338_vm12, %v3461_v29, %v8057_v53  ;;  %v8250_v63 = vpop.eup %4675  ;;  %v2936_v26 = vmul.f32 %v8237_v19, %v8217_v3  ;;  %v8257_v53 = vmax.f32 %v1731_v57, 1e-16  ;;  %vm8313_vm1 = vmor %vm2491_vm8, %vm2492_vm7 }
 0x212   : > { %v2487_v61 = vmul.f32 %v8227_v46, %v2486_v62  ;;  %v8259_v4 = vpop.eup %4677  ;;  %v2636_v15 = vmul.f32 %v8250_v63, %v8220_v58  ;;  %vm2942_vm13 = vweird.f32 %v8237_v19  ;;  %vm2642_vm10 = vweird.f32 %v8250_v63 }
 0x213   : > { %v3078_v51 = vmul.f32 0.5, %v3077_v17  ;;  %v2937_v47 = vmul.f32 %v8237_v19, %v2936_v26  ;;  %v8269_v21 = vpop.eup %4679  ;;  %v2496_v6 = vmul.f32 %v8259_v4, %v8223_v52  ;;  %4687 = vrsqrt.f32 %v8257_v53  ;;  %vm8336_vm11 = vmor %vm2941_vm3, %vm2942_vm13 }
 0x214   : > { %v2488_v7 = vmul.f32 0.5, %v2487_v61  ;;  %v8275_v22 = vpop.eup %4681  ;;  %v2637_v54 = vmul.f32 %v8250_v63, %v2636_v15  ;;  %4689 = vrsqrt.f32 %v8267_v50  ;;  %v8303_v17 = vmax.f32 %v8225_v11, 1e-16  ;;  %vm8353_vm12 = vmor %vm2641_vm2, %vm2642_vm10 }
 0x215   : > { %v3079_v14 = vsub.f32 1.5, %v3078_v51  ;;  %v8277_v28 = vpop.eup %4683  ;;  %v2938_v18 = vmul.f32 0.5, %v2937_v47  ;;  %v3086_v30 = vmul.f32 %v8275_v22, %v8234_v23  ;;  %4691 = vrsqrt.f32 %v8295_v33 }
 0x216   : > { %v8284_v59 = vpop.eup %4685  ;;  %v2489_v13 = vsub.f32 1.5, %v2488_v7  ;;  %v2638_v37 = vmul.f32 0.5, %v2637_v54  ;;  %4693 = vrsqrt.f32 %v8303_v17  ;;  %vm3091_vm9 = vweird.f32 %v8234_v23 }
 0x217   : > { %v3080_v5 = vmul.f32 %v4670_v32, %v3079_v14  ;;  %v2646_v29 = vmul.f32 %v8284_v59, %v8247_v31  ;;  %v2939_v62 = vsub.f32 1.5, %v2938_v18  ;;  %v3087_v14 = vmul.f32 %v8275_v22, %v3086_v30 }
 0x218   : > { %v2490_v26 = vmul.f32 %v8227_v46, %v2489_v13  ;;  %vm2501_vm5 = vweird.f32 %v8223_v52  ;;  %v8368_v15 = vmax.f32 %v1734_v36, 1e-16  ;;  %v1692_v36 = vpop.xlane.xlu1 %1691  ;;  %vm2951_vm7 = vweird.f32 %v8241_v10 }
 0x219   : > { %v3084_v41 = vsel %vm3083_vm4, %v4670_v32, %v3080_v5  ;;  %v1226_v32 = vmul.f32 %v8269_v21, %v8231_v42  ;;  %v8297_v57 = vpop.eup %4687  ;;  %v2940_v2 = vmul.f32 %v8237_v19, %v2939_v62  ;;  %v3088_v13 = vmul.f32 0.5, %v3087_v14 }
 0x21a   : > { %v3548_v60 = vperm.slane %v3084_v41, %v6310_v35  ;;  %v2497_v35 = vmul.f32 %v8259_v4, %v2496_v6  ;;  %v8309_v5 = vpop.eup %4689  ;;  %v3096_v47 = vmul.f32 %v8297_v57, %v8257_v53  ;;  %v1602_v41 = vpop.xlane.xlu2 %1601  ;;  %v2639_v6 = vsub.f32 1.5, %v2638_v37 }
 0x21b   : > { %v8262_v12 = vpop.xlane.xlu0 %1637  ;;  %v1227_v7 = vmul.f32 %v8269_v21, %v1226_v32  ;;  %v2494_v54 = vsel %vm8313_vm1, %v8227_v46, %v2490_v26  ;;  %v2656_v30 = vmul.f32 %v8309_v5, %v8267_v50  ;;  %v8347_v3 = vmax.f32 %v1602_v41, 1e-16  ;;  %v8349_v62 = vpop.eup %4691 }
 0x21c   : > { %v8282_v55 = vsel %vm9339_vm0, %v3548_v60, %v8138_v9  ;;  %v2946_v9 = vmul.f32 %v8277_v28, %v8241_v10  ;;  %v2498_v61 = vmul.f32 0.5, %v2497_v35  ;;  %v2647_v60 = vmul.f32 %v8284_v59, %v2646_v29  ;;  %v8363_v14 = vpop.eup %4693 }
 0x21d   : > { %v8344_v46 = vmul.f32 0.5, %v1227_v7  ;;  %v2640_v37 = vmul.f32 %v8250_v63, %v2639_v6  ;;  %v2944_v26 = vsel %vm8336_vm11, %v8237_v19, %v2940_v2  ;;  %vm2502_vm4 = vweird.f32 %v8259_v4 }
 0x21e   : > { %v2947_v11 = vmul.f32 %v8277_v28, %v2946_v9  ;;  %v2499_v35 = vsub.f32 1.5, %v2498_v61  ;;  %v3097_v9 = vmul.f32 %v8297_v57, %v3096_v47  ;;  %v2648_v29 = vmul.f32 0.5, %v2647_v60  ;;  %vm8375_vm8 = vmor %vm2501_vm5, %vm2502_vm4 }
 0x21f   : > { %v3434_v61 = vperm.slane %v2494_v54, %v7783_v27  ;;  %vm3092_vm0 = vweird.f32 %v8275_v22  ;;  %v2657_v58 = vmul.f32 %v8309_v5, %v2656_v30  ;;  %v2644_v52 = vsel %vm8353_vm12, %v8250_v63, %v2640_v37 }
 0x220   : > { %v2948_v32 = vmul.f32 0.5, %v2947_v11  ;;  %v3089_v11 = vsub.f32 1.5, %v3088_v13  ;;  %v2500_v47 = vmul.f32 %v8259_v4, %v2499_v35  ;;  %v3098_v41 = vmul.f32 0.5, %v3097_v9  ;;  %vm8398_vm2 = vmor %vm3091_vm9, %vm3092_vm0 }
 0x221   : > { %v3521_v7 = vperm.slane %v2944_v26, %v7058_v56  ;;  %v2649_v60 = vsub.f32 1.5, %v2648_v29  ;;  %vm2952_vm3 = vweird.f32 %v8277_v28  ;;  %v2806_v63 = vmul.f32 %v8349_v62, %v8295_v33 }
 0x222   : > { %v2949_v19 = vsub.f32 1.5, %v2948_v32  ;;  %v2336_v18 = vmul.f32 %v8363_v14, %v8303_v17  ;;  %v8388_v13 = vpop.xlane.xlu2 %1736  ;;  %vm2651_vm13 = vweird.f32 %v8247_v31  ;;  %vm2652_vm1 = vweird.f32 %v8284_v59  ;;  %vm8412_vm10 = vmor %vm2951_vm7, %vm2952_vm3 }
 0x223   : > { %v2658_v30 = vmul.f32 0.5, %v2657_v58  ;;  %v3090_v35 = vmul.f32 %v8275_v22, %v3089_v11  ;;  %v2504_v9 = vsel %vm8375_vm8, %v8259_v4, %v2500_v47  ;;  %v3099_v37 = vsub.f32 1.5, %v3098_v41  ;;  %vm8419_vm12 = vmor %vm2651_vm13, %vm2652_vm1 }
 0x224   : > { %v2950_v31 = vmul.f32 %v8277_v28, %v2949_v19  ;;  %vm3101_vm11 = vweird.f32 %v8257_v53  ;;  %vm3102_vm9 = vweird.f32 %v8297_v57  ;;  %v2807_v58 = vmul.f32 %v8349_v62, %v2806_v63 }
 0x225   : > { %v1506_v51 = vpop.xlane.xlu0 %1505  ;;  %v2337_v11 = vmul.f32 %v8363_v14, %v2336_v18  ;;  %v8427_v10 = vmax.f32 %v8262_v12, 1e-16  ;;  %vm9354_vm5 = vcmask 917312   ;;  %v3463_v41 = vperm.slane %v2644_v52, %v7663_v48  ;;  %vm8453_vm0 = vmor %vm3101_vm11, %vm3102_vm9 }
 0x226   : > { %v8321_v34 = vmax.f32 %v1506_v51, 1e-16  ;;  %v2650_v51 = vmul.f32 %v8284_v59, %v2649_v60  ;;  %v3435_v19 = vsel %vm9354_vm5, %v3434_v61, %v8181_v24  ;;  %v3436_v6 = vperm.slane %v2504_v9, %v7974_v25 }
 0x227   : > { %v2659_v60 = vsub.f32 1.5, %v2658_v30  ;;  %vm9355_vm4 = vcmask 720512   ;;  %v3094_v63 = vsel %vm8398_vm2, %v8275_v22, %v3090_v35  ;;  %v2954_v12 = vsel %vm8412_vm10, %v8277_v28, %v2950_v31  ;;  %v1695_v30 = vpop.xlane.xlu1 %1694 }
 0x228   : > { %4695 = vrsqrt.f32 %v8321_v34  ;;  %v3522_v29 = vsel %vm9355_vm4, %v3521_v7, %v8193_v16  ;;  %v3100_v18 = vmul.f32 %v8297_v57, %v3099_v37  ;;  %v2654_v24 = vsel %vm8419_vm12, %v8284_v59, %v2650_v51 }
 0x229   : > { %4697 = vrsqrt.f32 %v8347_v3  ;;  %vm2661_vm8 = vweird.f32 %v8267_v50  ;;  %vm2662_vm7 = vweird.f32 %v8309_v5  ;;  %v2808_v28 = vmul.f32 0.5, %v2807_v58 }
 0x22a   : > { %4699 = vrsqrt.f32 %v8368_v15  ;;  %v2338_v61 = vmul.f32 0.5, %v2337_v11  ;;  %v8464_v59 = vperm.slane %v3094_v63, %v6999_v40  ;;  %v8467_v53 = vsel %vm3341_vm6, %v3436_v6, %v3435_v19  ;;  %vm8474_vm3 = vmor %vm2661_vm8, %vm2662_vm7  ;;  %v1740_v31 = vpop.xlane.xlu2 %1739 }
 0x22b   : > { %4701 = vrsqrt.f32 %v8427_v10  ;;  %v3523_v7 = vperm.slane %v2954_v12, %v7295_v49  ;;  %v2660_v50 = vmul.f32 %v8309_v5, %v2659_v60  ;;  %v3104_v32 = vsel %vm8453_vm0, %v8297_v57, %v3100_v18 }
 0x22c   : > { %v3465_v23 = vperm.slane %v2654_v24, %v7783_v27  ;;  %vm2811_vm13 = vweird.f32 %v8295_v33  ;;  %v2809_v57 = vsub.f32 1.5, %v2808_v28  ;;  %v2339_v58 = vsub.f32 1.5, %v2338_v61 }
 0x22d   : > { %v1641_v2 = vpop.xlane.xlu0 %1640  ;;  %vm9360_vm1 = vcmask 786112   ;;  %v2664_v6 = vsel %vm8474_vm3, %v8309_v5, %v2660_v50  ;;  %vm2341_vm2 = vweird.f32 %v8303_v17  ;;  %vm9361_vm10 = vcmask 851712  }
 0x22e   : > { %v8380_v54 = vpop.eup %4695  ;;  %v8480_v37 = vmax.f32 %v1641_v2, 1e-16  ;;  %v8491_v19 = vsel %vm9360_vm1, %v3523_v7, %v3522_v29  ;;  %v8494_v2 = vperm.slane %v3104_v32, %v7058_v56  ;;  %v3464_v60 = vsel %vm9361_vm10, %v3463_v41, %v8245_v38 }
 0x22f   : > { %v2346_v4 = vmul.f32 %v8380_v54, %v8321_v34  ;;  %v8429_v47 = vpop.eup %4697  ;;  %vm2812_vm11 = vweird.f32 %v8349_v62  ;;  %vm2342_vm12 = vweird.f32 %v8363_v14  ;;  %v8510_v56 = vmax.f32 %v8388_v13, 1e-16 }
 0x230   : > { %v8444_v8 = vpop.eup %4699  ;;  %v2666_v52 = vmul.f32 %v8429_v47, %v8347_v3  ;;  %v2810_v29 = vmul.f32 %v8349_v62, %v2809_v57  ;;  %vm3111_vm9 = vweird.f32 %v8368_v15  ;;  %v2340_v38 = vmul.f32 %v8363_v14, %v2339_v58  ;;  %vm8521_vm4 = vmor %vm2811_vm13, %vm2812_vm11 }
 0x231   : > { %v2347_v22 = vmul.f32 %v8380_v54, %v2346_v4  ;;  %v3106_v40 = vmul.f32 %v8444_v8, %v8368_v15  ;;  %v8486_v4 = vmax.f32 %v1692_v36, 1e-16  ;;  %v8500_v36 = vpop.eup %4701  ;;  %v8515_v12 = vmax.f32 %v1695_v30, 1e-16  ;;  %vm8539_vm7 = vmor %vm2341_vm2, %vm2342_vm12  ;;  %v1743_v30 = vpop.xlane.xlu1 %1742 }
 0x232   : > { %v2667_v11 = vmul.f32 %v8429_v47, %v2666_v52  ;;  %v3466_v18 = vsel %vm9354_vm5, %v3465_v23, %v3464_v60  ;;  %v3467_v24 = vperm.slane %v2664_v6, %v7974_v25  ;;  %vm3112_vm0 = vweird.f32 %v8444_v8 }
 0x233   : > { %v2348_v26 = vmul.f32 0.5, %v2347_v22  ;;  %v3107_v63 = vmul.f32 %v8444_v8, %v3106_v40  ;;  %v2786_v13 = vmul.f32 %v8500_v36, %v8427_v10  ;;  %vm2671_vm8 = vweird.f32 %v8347_v3  ;;  %vm8614_vm12 = vmor %vm3111_vm9, %vm3112_vm0 }
 0x234   : > { %v2668_v41 = vmul.f32 0.5, %v2667_v11  ;;  %v8531_v52 = vmax.f32 %v1740_v31, 1e-16  ;;  %vm2352_vm3 = vweird.f32 %v8380_v54  ;;  %v2814_v17 = vsel %vm8521_vm4, %v8349_v62, %v2810_v29  ;;  %v1746_v31 = vpop.xlane.xlu2 %1745 }
 0x235   : > { %v2349_v5 = vsub.f32 1.5, %v2348_v26  ;;  %v3108_v61 = vmul.f32 0.5, %v3107_v63  ;;  %v2344_v9 = vsel %vm8539_vm7, %v8363_v14, %v2340_v38  ;;  %v2787_v26 = vmul.f32 %v8500_v36, %v2786_v13 }
 0x236   : > { %v2669_v40 = vsub.f32 1.5, %v2668_v41  ;;  %vm2351_vm13 = vweird.f32 %v8321_v34  ;;  %vm2672_vm1 = vweird.f32 %v8429_v47  ;;  %v8571_v14 = vmax.f32 %v1743_v30, 1e-16 }
 0x237   : > { %v2350_v50 = vmul.f32 %v8380_v54, %v2349_v5  ;;  %v3109_v58 = vsub.f32 1.5, %v3108_v61  ;;  %vm8566_vm2 = vmor %vm2351_vm13, %vm2352_vm3  ;;  %v8578_v6 = vmax.f32 %v1746_v31, 1e-16  ;;  %v8581_v63 = vsel %vm3341_vm6, %v3467_v24, %v3466_v18 }
 0x238   : > { %v8584_v5 = vperm.slane %v2814_v17, %v7783_v27  ;;  %v3405_v29 = vperm.slane %v2344_v9, %v7974_v25  ;;  %v2788_v16 = vmul.f32 0.5, %v2787_v26  ;;  %vm8600_vm11 = vmor %vm2671_vm8, %vm2672_vm1  ;;  %vm2791_vm9 = vweird.f32 %v8427_v10 }
 0x239   : > { %v2354_v34 = vsel %vm8566_vm2, %v8380_v54, %v2350_v50  ;;  %v2670_v54 = vmul.f32 %v8429_v47, %v2669_v40  ;;  %v3110_v18 = vmul.f32 %v8444_v8, %v3109_v58  ;;  %v3551_v40 = vsel %vm3321_vm14, %v8464_v59, %v8282_v55 }
 0x23a   : > { %v3407_v33 = vperm.slane %v2354_v34, %v8196_v44  ;;  %v3406_v15 = vsel %vm3341_vm6, %v3405_v29, %v8170_v39  ;;  %v2789_v26 = vsub.f32 1.5, %v2788_v16  ;;  %vm9372_vm14 = vcmask 720512  }
 0x23b   : > { %v3114_v39 = vsel %vm8614_vm12, %v8444_v8, %v3110_v18  ;;  %vm2792_vm0 = vweird.f32 %v8500_v36  ;;  %vm3566_vm8 = vcmask 1042434   ;;  %vm3568_vm7 = vcmask 1043459  }
 0x23c   : > { %v1554_v35 = vpop.xlane.xlu0 %1553  ;;  %vm3570_vm3 = vcmask 1044484   ;;  %vm8686_vm13 = vmor %vm2791_vm9, %vm2792_vm0  ;;  %vm3121_vm1 = vweird.f32 %v8510_v56  ;;  %vm2971_vm2 = vweird.f32 %v8486_v4  ;;  %vm2981_vm12 = vweird.f32 %v8515_v12 }
 0x23d   : > { %v8482_v51 = vmax.f32 %v1554_v35, 1e-16  ;;  %vm2801_vm9 = vweird.f32 %v8480_v37 }
 0x23f   : > { %4703 = vrsqrt.f32 %v8482_v51  ;;  %vm2511_vm5 = vweird.f32 %v8482_v51 }
 0x240   : > { %4705 = vrsqrt.f32 %v8480_v37 }
 0x241   : > { %4707 = vrsqrt.f32 %v8486_v4 }
 0x242   : > { %4709 = vrsqrt.f32 %v8510_v56 }
 0x243   : > { %4711 = vrsqrt.f32 %v8515_v12 }
 0x244   : > { %v1689_v22 = vpop.xlane.xlu0 %1688 }
 0x245   : > { %v8528_v28 = vpop.eup %4703  ;;  %v8533_v7 = vmax.f32 %v1689_v22, 1e-16 }
 0x246   : > { %v2506_v35 = vmul.f32 %v8528_v28, %v8482_v51  ;;  %v8548_v32 = vpop.eup %4705  ;;  %vm2512_vm10 = vweird.f32 %v8528_v28  ;;  %v2674_v51 = vsel %vm8600_vm11, %v8429_v47, %v2670_v54  ;;  %v8649_v47 = vsel %vm9372_vm14, %v8494_v2, %v3551_v40 }
 0x247   : > { %v8557_v23 = vpop.eup %4707  ;;  %4713 = vrsqrt.f32 %v8533_v7  ;;  %v2796_v11 = vmul.f32 %v8548_v32, %v8480_v37  ;;  %vm2513_vm4 = vmor %vm2511_vm5, %vm2512_vm10  ;;  %v3469_v8 = vperm.slane %v2674_v51, %v8196_v44  ;;  %v2790_v2 = vmul.f32 %v8500_v36, %v2789_v26 }
 0x248   : > { %v2507_v57 = vmul.f32 %v8528_v28, %v2506_v35  ;;  %4715 = vrsqrt.f32 %v8531_v52  ;;  %v2966_v38 = vmul.f32 %v8557_v23, %v8486_v4  ;;  %v8589_v41 = vpop.eup %4709  ;;  %vm2972_vm10 = vweird.f32 %v8557_v23 }
 0x249   : > { %v8593_v61 = vpop.eup %4711  ;;  %4717 = vrsqrt.f32 %v8571_v14  ;;  %v2797_v3 = vmul.f32 %v8548_v32, %v2796_v11  ;;  %v3116_v55 = vmul.f32 %v8589_v41, %v8510_v56  ;;  %vm2802_vm11 = vweird.f32 %v8548_v32 }
 0x24a   : > { %v2508_v60 = vmul.f32 0.5, %v2507_v57  ;;  %4719 = vrsqrt.f32 %v8578_v6  ;;  %v2967_v31 = vmul.f32 %v8557_v23, %v2966_v38  ;;  %v3408_v57 = vsel %vm9064_vm15, %v3407_v33, %v3406_v15  ;;  %vm8717_vm0 = vmor %vm2801_vm9, %vm2802_vm11 }
 0x24b   : > { %v2798_v34 = vmul.f32 0.5, %v2797_v3  ;;  %v3117_v54 = vmul.f32 %v8589_v41, %v3116_v55  ;;  %vm3131_vm5 = vweird.f32 %v8531_v52  ;;  %vm3141_vm14 = vweird.f32 %v8571_v14 }
 0x24c   : > { %v2509_v13 = vsub.f32 1.5, %v2508_v60  ;;  %v1647_v22 = vpop.xlane.xlu0 %1646  ;;  %v8657_v60 = vmul.f32 0.5, %v2967_v31  ;;  %vm2982_vm9 = vweird.f32 %v8593_v61 }
 0x24d   : > { %v8606_v50 = vmax.f32 %v1647_v22, 1e-16  ;;  %v8608_v30 = vpop.eup %4713  ;;  %v3567_v22 = vsel %vm3566_vm8, %v3408_v57, %v8206_v1  ;;  %v3470_v1 = vsel %vm9064_vm15, %v3469_v8, %v8581_v63  ;;  %v3118_v51 = vmul.f32 0.5, %v3117_v54 }
 0x24e   : > { %v2510_v17 = vmul.f32 %v8528_v28, %v2509_v13  ;;  %v8622_v9 = vpop.eup %4715  ;;  %v2956_v62 = vmul.f32 %v8608_v30, %v8533_v7  ;;  %v8696_v57 = vperm.slane %v3114_v39, %v7295_v49  ;;  %v2794_v63 = vsel %vm8686_vm13, %v8500_v36, %v2790_v2 }
 0x24f   : > { %4721 = vrsqrt.f32 %v8606_v50  ;;  %v8654_v11 = vpop.eup %4717  ;;  %v3126_v29 = vmul.f32 %v8622_v9, %v8531_v52  ;;  %v2969_v39 = vsub.f32 1.5, %v8657_v60  ;;  %v3119_v8 = vsub.f32 1.5, %v3118_v51 }
 0x250   : > { %v2514_v59 = vsel %vm2513_vm4, %v8528_v28, %v2510_v17  ;;  %v2976_v28 = vmul.f32 %v8593_v61, %v8515_v12  ;;  %v8661_v38 = vpop.eup %4719  ;;  %v2957_v24 = vmul.f32 %v8608_v30, %v2956_v62  ;;  %v3136_v3 = vmul.f32 %v8654_v11, %v8571_v14 }
 0x251   : > { %v3438_v58 = vperm.slane %v2514_v59, %v8196_v44  ;;  %v2799_v17 = vsub.f32 1.5, %v2798_v34  ;;  %v3127_v40 = vmul.f32 %v8622_v9, %v3126_v29  ;;  %v3146_v26 = vmul.f32 %v8661_v38, %v8578_v6 }
 0x252   : > { %v2977_v35 = vmul.f32 %v8593_v61, %v2976_v28  ;;  %v2958_v10 = vmul.f32 0.5, %v2957_v24  ;;  %vm3122_vm4 = vweird.f32 %v8589_v41  ;;  %vm3132_vm8 = vweird.f32 %v8622_v9 }
 0x253   : > { %v3439_v16 = vsel %vm9064_vm15, %v3438_v58, %v8467_v53  ;;  %v3137_v58 = vmul.f32 %v8654_v11, %v3136_v3  ;;  %v2800_v62 = vmul.f32 %v8548_v32, %v2799_v17  ;;  %v3128_v36 = vmul.f32 0.5, %v3127_v40 }
 0x254   : > { %v1650_v13 = vpop.xlane.xlu0 %1649  ;;  %v3569_v15 = vsel %vm3568_vm7, %v3439_v16, %v3567_v22  ;;  %v2978_v34 = vmul.f32 0.5, %v2977_v35  ;;  %v3147_v29 = vmul.f32 %v8661_v38, %v3146_v26  ;;  %v2959_v22 = vsub.f32 1.5, %v2958_v10 }
 0x255   : > { %v8668_v18 = vpop.eup %4721  ;;  %v8671_v33 = vmax.f32 %v1650_v13, 1e-16  ;;  %v8693_v59 = vsel %vm3570_vm3, %v3470_v1, %v3569_v15  ;;  %v3492_v13 = vperm.slane %v2794_v63, %v7295_v49  ;;  %v3138_v37 = vmul.f32 0.5, %v3137_v58  ;;  %vm8736_vm3 = vmor %vm3121_vm1, %vm3122_vm4 }
 0x256   : > { %v2816_v53 = vmul.f32 %v8668_v18, %v8606_v50  ;;  %v2804_v49 = vsel %vm8717_vm0, %v8548_v32, %v2800_v62  ;;  %v3129_v3 = vsub.f32 1.5, %v3128_v36  ;;  %vm2822_vm7 = vweird.f32 %v8668_v18  ;;  %vm8756_vm1 = vmor %vm3131_vm5, %vm3132_vm8 }
 0x257   : > { %4723 = vrsqrt.f32 %v8671_v33  ;;  %v2979_v40 = vsub.f32 1.5, %v2978_v34  ;;  %v3148_v1 = vmul.f32 0.5, %v3147_v29  ;;  %v3494_v31 = vperm.slane %v2804_v49, %v7663_v48  ;;  %vm8775_vm8 = vmor %vm2971_vm2, %vm2972_vm10 }
 0x258   : > { %v2817_v55 = vmul.f32 %v8668_v18, %v2816_v53  ;;  %v3120_v53 = vmul.f32 %v8589_v41, %v3119_v8  ;;  %v2960_v51 = vmul.f32 %v8608_v30, %v2959_v22  ;;  %vm2962_vm13 = vweird.f32 %v8608_v30 }
 0x259   : > { %vm2821_vm11 = vweird.f32 %v8606_v50  ;;  %v2970_v26 = vmul.f32 %v8557_v23, %v2969_v39  ;;  %vm3142_vm0 = vweird.f32 %v8654_v11  ;;  %v3130_v63 = vmul.f32 %v8622_v9, %v3129_v3 }
 0x25a   : > { %v2818_v28 = vmul.f32 0.5, %v2817_v55  ;;  %vm8747_vm15 = vmor %vm2821_vm11, %vm2822_vm7  ;;  %v3139_v50 = vsub.f32 1.5, %v3138_v37  ;;  %vm2961_vm4 = vweird.f32 %v8533_v7  ;;  %vm9383_vm7 = vcmask 786112  }
 0x25b   : > { %v3493_v62 = vsel %vm9383_vm7, %v3492_v13, %v8187_v45  ;;  %vm8767_vm11 = vmor %vm2961_vm4, %vm2962_vm13  ;;  %v3124_v45 = vsel %vm8736_vm3, %v8589_v41, %v3120_v53  ;;  %v3149_v36 = vsub.f32 1.5, %v3148_v1  ;;  %vm2831_vm2 = vweird.f32 %v8671_v33 }
 0x25c   : > { %v2819_v2 = vsub.f32 1.5, %v2818_v28  ;;  %v2980_v28 = vmul.f32 %v8593_v61, %v2979_v40  ;;  %v2964_v8 = vsel %vm8767_vm11, %v8608_v30, %v2960_v51  ;;  %vm8790_vm13 = vmor %vm2981_vm12, %vm2982_vm9  ;;  %v3140_v30 = vmul.f32 %v8654_v11, %v3139_v50 }
 0x25d   : > { %v1698_v54 = vpop.xlane.xlu0 %1697  ;;  %v4724_v16 = vpop.eup %4723  ;;  %vm3151_vm10 = vweird.f32 %v8578_v6  ;;  %vm3152_vm12 = vweird.f32 %v8661_v38  ;;  %vm8808_vm9 = vmor %vm3141_vm14, %vm3142_vm0  ;;  %v3150_v60 = vmul.f32 %v8661_v38, %v3149_v36  ;;  %vm3572_vm4 = vcmask 1045509  }
 0x25e   : > { %v8721_v24 = vmax.f32 %v1698_v54, 1e-16  ;;  %v2826_v35 = vmul.f32 %v4724_v16, %v8671_v33  ;;  %v2820_v17 = vmul.f32 %v8668_v18, %v2819_v2  ;;  %vm2832_vm5 = vweird.f32 %v4724_v16  ;;  %vm8825_vm14 = vmor %vm3151_vm10, %vm3152_vm12 }
 0x25f   : > { %v3134_v54 = vsel %vm8756_vm1, %v8622_v9, %v3130_v63  ;;  %vm2833_vm3 = vmor %vm2831_vm2, %vm2832_vm5  ;;  %v3525_v33 = vperm.slane %v2964_v8, %v7663_v48  ;;  %vm9393_vm1 = vcmask 917312   ;;  %v4754_v49 = vmov 33  }
 0x260   : > { %4725 = vrsqrt.f32 %v8721_v24  ;;  %v2827_v15 = vmul.f32 %v4724_v16, %v2826_v35  ;;  %v2824_v58 = vsel %vm8747_vm15, %v8668_v18, %v2820_v17  ;;  %vm9388_vm15 = vcmask 851712   ;;  %4455 = vset.pattern.permute.xlu1 %v4754_v49  ;;  %4456 = vset.pattern.permute.xlu2 %v4754_v49  ;;  %vm9400_vm2 = vmmov %vm9393_vm1 }
 0x261   : > { %v3495_v18 = vsel %vm9388_vm15, %v3494_v31, %v3493_v62  ;;  %v3498_v29 = vperm.slane %v2824_v58, %v7974_v25  ;;  %v2974_v14 = vsel %vm8775_vm8, %v8557_v23, %v2970_v26  ;;  %v3556_v35 = vperm.slane %v3124_v45, %v7663_v48  ;;  %vm9397_vm7 = vmmov %vm9388_vm15 }
 0x262   : > { %v2828_v55 = vmul.f32 0.5, %v2827_v15  ;;  %v3497_v37 = vsel %vm9393_vm1, %v8584_v5, %v3495_v18  ;;  %v2984_v17 = vsel %vm8790_vm13, %v8593_v61, %v2980_v28  ;;  %v3558_v53 = vperm.slane %v3134_v54, %v7783_v27  ;;  %vm9401_vm10 = vmmov %vm9397_vm7 }
 0x263   : > { %v3499_v5 = vsel %vm3341_vm6, %v3498_v29, %v3497_v37  ;;  %v3144_v48 = vsel %vm8808_vm9, %v8654_v11, %v3140_v30  ;;  %vm9396_vm0 = vcmask 1048512   ;;  %v3526_v6 = vsel %vm9397_vm7, %v3525_v33, %v8491_v19  ;;  %vm9402_vm12 = vmmov %vm9393_vm1 }
 0x264   : > { %v2829_v52 = vsub.f32 1.5, %v2828_v55  ;;  %vm1232_vm5 = vweird.f32 %v8269_v21  ;;  %v3527_v61 = vperm.slane %v2974_v14, %v7783_v27  ;;  %v3154_v15 = vsel %vm8825_vm14, %v8661_v38, %v3150_v60  ;;  %vm9403_vm14 = vmmov %vm9396_vm0 }
 0x265   : > { %vm9398_vm8 = vcmask 786112   ;;  %v3529_v32 = vperm.slane %v2984_v17, %v7974_v25  ;;  %vm2991_vm15 = vweird.f32 %v8721_v24  ;;  %v3560_v31 = vperm.slane %v3144_v48, %v7974_v25 }
 0x266   : > { %v4726_v34 = vpop.eup %4725  ;;  %v2830_v2 = vmul.f32 %v4724_v16, %v2829_v52  ;;  %v3555_v11 = vsel %vm9398_vm8, %v8696_v57, %v8649_v47  ;;  %v3528_v51 = vsel %vm9400_vm2, %v3527_v61, %v3526_v6  ;;  %v3562_v26 = vperm.slane %v3154_v15, %v8196_v44 }
 0x267   : > { %v2986_v41 = vmul.f32 %v4726_v34, %v8721_v24  ;;  %vm2992_vm11 = vweird.f32 %v4726_v34  ;;  %v3557_v38 = vsel %vm9401_vm10, %v3556_v35, %v3555_v11  ;;  %v1219_v24 = vld [vmem:[#allocation3] sm:$0xff]  ;;  %vm3574_vm9 = vcmask 1046534  }
 0x268   : > { %v2834_v13 = vsel %vm2833_vm3, %v4724_v16, %v2830_v2  ;;  %vm2993_vm13 = vmor %vm2991_vm15, %vm2992_vm11  ;;  %v3559_v47 = vsel %vm9402_vm12, %v3558_v53, %v3557_v38  ;;  %vm1231_vm3 = vweird.f32 %v8231_v42  ;;  %v3530_v25 = vsel %vm3341_vm6, %v3529_v32, %v3528_v51 }
 0x269   : > { %v2987_v9 = vmul.f32 %v4726_v34, %v2986_v41  ;;  %v3500_v22 = vperm.slane %v2834_v13, %v8196_v44  ;;  %vm1233_vm1 = vmor %vm1231_vm3, %vm1232_vm5  ;;  %v3561_v63 = vsel %vm3341_vm6, %v3560_v31, %v3559_v47  ;;  %v4072_v10 = vmul.f32 -1.442695, %v5382_v20 }
 0x26a   : > { %v3563_v42 = vsel %vm9396_vm0, %v3562_v26, %v3561_v63  ;;  %vm478_vm7 = vcmask 23552   ;;  %v4755_v54 = vmov 35   ;;  %v4756_v30 = vmov 34  }
 0x26b   : > { %v2988_v3 = vmul.f32 0.5, %v2987_v9  ;;  %v3501_v23 = vsel %vm9396_vm0, %v3500_v22, %v3499_v5  ;;  %4727 = vpow2.f32 %v4072_v10  ;;  %4458 = vset.pattern.permute.xlu0 %v4755_v54  ;;  %v3691_v10 = vld [vmem:[%s4819_s9 + $0x78] sm:$0xff] }
 0x26c   : > { %v3573_v1 = vsel %vm3572_vm4, %v3501_v23, %v8693_v59  ;;  %v9399_v59 = vsub.f32 1.5, %v8344_v46  ;;  %vm3576_vm4 = vcmask 1047559   ;;  %v4757_v23 = vmov 36   ;;  %3692 = vmatpush.msra.mxu1 %v3691_v10  ;;  %v4340_v10 = vld [vmem:[%s4819_s9 + $0x118] sm:$0xff] }
 0x26d   : > { %v2989_v40 = vsub.f32 1.5, %v2988_v3 }
 0x26e   : > { %v1230_v27 = vmul.f32 %v8269_v21, %v9399_v59 }
 0x26f   : > { %v2990_v19 = vmul.f32 %v4726_v34, %v2989_v40  ;;  %v4758_v40 = vmov 37  }
 0x270   : > { %v1234_v46 = vsel %vm1233_vm1, %v8269_v21, %v1230_v27  ;;  %v479_v21 = vsel %vm478_vm7, %v8198_v0, 0.0  ;;  %v265_v27 = vld [vmem:[%s251_s27] sm:$0xff] }
 0x271   : > { %v2994_v56 = vsel %vm2993_vm13, %v4726_v34, %v2990_v19  ;;  %v3155_v50 = vmul.f32 %v1234_v46, %v1219_v24  ;;  %v4728_v28 = vpop.eup %4727 }
 0x272   : > { %v3531_v57 = vperm.slane %v2994_v56, %v8196_v44  ;;  %v451_v34 = vadd.f32 1.0, %v4728_v28 }
 0x274   : > { %v3532_v55 = vsel %vm9403_vm14, %v3531_v57, %v3530_v25  ;;  %4729 = vrcp.f32 %v451_v34  ;;  %v463_v8 = vand.u32 2147483648, %v451_v34  ;;  %vm457_vm11 = vweird.f32 %v451_v34  ;;  %v9404_v25 = vld [vmem:[#allocation4_spill] sm:$0xff] }
 0x275   : > { %v3575_v44 = vsel %vm3574_vm9, %v3532_v55, %v3573_v1  ;;  %v461_v4 = vand.u32 2147483647, %v451_v34  ;;  %v497_v46 = vadd.f32 1.0, %v9404_v25  ;;  %v4357_v25 = vld [vmem:[%s4819_s9 + $0x1a0] sm:$0xff] }
 0x276   : > { %v3577_v58 = vsel %vm3576_vm4, %v3563_v42, %v3575_v44  ;;  %v464_v2 = vor.u32 1.1754944e-38, %v463_v8  ;;  %v4352_v42 = vld [vmem:[%s4819_s9 + $0x178] sm:$0xff]  ;;  %v4333_v8 = vld [vmem:[%s4819_s9 + $0xe0] sm:$0xff] }
 0x277   : > { %v3579_v62 = vmul.f32 %v3577_v58, %v3155_v50  ;;  %vm462_vm8 = vcmp.eq.f32.partialorder %v461_v4, 8.507059e+37  ;;  %v4336_v50 = vld [vmem:[%s4819_s9 + $0xf8] sm:$0xff]  ;;  %v3690_v58 = vld [vmem:[%s4819_s9 + $0x70] sm:$0xff]  ;;  %3769 = vmatpush.msra.mxu3 %v4352_v42 }
 0x278   : > { %3731 = vmatpush.msra.mxu2 %v4336_v50  ;;  %v4368_v44 = vld [vmem:[%s4819_s9 + $0x1f8] sm:$0xff]  ;;  %3693 = vmatpush.msra.mxu1 %v3690_v58  ;;  %v4323_v58 = vld [vmem:[%s4819_s9 + $0x90] sm:$0xff] }
 0x279   : > { %3807 = vmatpush.msrb.mxu0 %v4368_v44  ;;  %v4356_v50 = vld [vmem:[%s4819_s9 + $0x198] sm:$0xff]  ;;  %v3678_v44 = vld [vmem:[%s4819_s9 + $0x10] sm:$0xff] }
 0x27a   : > { %v4730_v7 = vpop.eup %4729 }
 0x27b   : > { %v3583_v39 = vpop.permute.xlu0 %3582  ;;  %v453_v45 = vmul.f32 %v4730_v7, %v451_v34  ;;  %vm458_vm6 = vweird.f32 %v4730_v7  ;;  %v3689_v34 = vld [vmem:[%s4819_s9 + $0x68] sm:$0xff] }
 0x27c   : > { %v3585_v52 = vmul.f32 %v3583_v39, %v3579_v62  ;;  %vm459_vm5 = vmor %vm457_vm11, %vm458_vm6  ;;  %v4335_v62 = vld [vmem:[%s4819_s9 + $0xf0] sm:$0xff]  ;;  %3694 = vmatpush.msra.mxu1 %v3689_v34  ;;  %v4338_v34 = vld [vmem:[%s4819_s9 + $0x108] sm:$0xff]  ;;  %vm3712_vm6 = vcmask 253952  }
 0x27d   : > { %v454_v20 = vsub.f32 1.0, %v453_v45  ;;  %v4351_v39 = vld [vmem:[%s4819_s9 + $0x170] sm:$0xff]  ;;  %3732 = vmatpush.msra.mxu2 %v4335_v62  ;;  %v4350_v45 = vld [vmem:[%s4819_s9 + $0x168] sm:$0xff] }
 0x27e   : > { %3586 = vmax.xlane.f32.xlu1 %v3585_v52  ;;  %3770 = vmatpush.msra.mxu3 %v4351_v39  ;;  %v4339_v62 = vld [vmem:[%s4819_s9 + $0x110] sm:$0xff]  ;;  %v3677_v39 = vld [vmem:[%s4819_s9 + $0x8] sm:$0xff] }
 0x27f   : > { %v455_v18 = vmul.f32 %v4730_v7, %v454_v20  ;;  %v4366_v20 = vld [vmem:[%s4819_s9 + $0x1e8] sm:$0xff] }
 0x280   : > { %3771 = vmatpush.msra.mxu3 %v4350_v45  ;;  %v4321_v45 = vld [vmem:[%s4819_s9 + $0x80] sm:$0xff] }
 0x281   : > { %v456_v36 = vadd.f32 %v4730_v7, %v455_v18 }
 0x283   : > { %v460_v29 = vsel %vm459_vm5, %v4730_v7, %v456_v36  ;;  %v4334_v7 = vld [vmem:[%s4819_s9 + $0xe8] sm:$0xff]  ;;  %v3688_v36 = vld [vmem:[%s4819_s9 + $0x60] sm:$0xff] }
 0x284   : > { %v465_v41 = vsel %vm462_vm8, %v464_v2, %v460_v29  ;;  %3733 = vmatpush.msra.mxu2 %v4334_v7  ;;  %v4349_v2 = vld [vmem:[%s4819_s9 + $0x160] sm:$0xff]  ;;  %3695 = vmatpush.msra.mxu1 %v3688_v36  ;;  %v4384_v36 = vld [vmem:[%s4819_s9 + $0x278] sm:$0xff] }
 0x285   : > { %v3614_v48 = vsub.f32 1.0, %v465_v41  ;;  %3772 = vmatpush.msra.mxu3 %v4349_v2  ;;  %v3676_v7 = vld [vmem:[%s4819_s9] sm:$0xff]  ;;  %v4383_v2 = vld [vmem:[%s4819_s9 + $0x270] sm:$0xff] }
 0x286   : > { %480 = vadd.xlane.f32.xlu1 %v479_v21  ;;  %3734 = vmatpush.msra.mxu2 %v4333_v8  ;;  %v4400_v8 = vld [vmem:[%s4819_s9 + $0x2f8] sm:$0xff] }
 0x29f   : > { %3610 = vperm.xlu1 %4455, %v465_v41   ;;  %v4365_v41 = vld [vmem:[%s4819_s9 + $0x1e0] sm:$0xff] }
 0x2a7   : > { %4457 = vset.pattern.permute.xlu1 %v4756_v30 }
 0x2f1   : > { %v3587_v0 = vpop.xlane.xlu1 %3586 }
 0x2f2   : > { %v3588_v12 = vsub.f32 %v3585_v52, %v3587_v0  ;;  %v4367_v52 = vld [vmem:[%s4819_s9 + $0x1f0] sm:$0xff]  ;;  %v3687_v0 = vld [vmem:[%s4819_s9 + $0x58] sm:$0xff] }
 0x2f3   : > { %3808 = vmatpush.msrb.mxu0 %v4367_v52  ;;  %3696 = vmatpush.msra.mxu1 %v3687_v0  ;;  %v4322_v52 = vld [vmem:[%s4819_s9 + $0x88] sm:$0xff] }
 0x2f4   : > { %v3589_v33 = vmul.f32 1.442695, %v3588_v12  ;;  %v4332_v12 = vld [vmem:[%s4819_s9 + $0xd8] sm:$0xff]  ;;  %v4382_v0 = vld [vmem:[%s4819_s9 + $0x268] sm:$0xff] }
 0x2f5   : > { %3809 = vmatpush.msrb.mxu0 %v4366_v20  ;;  %3735 = vmatpush.msra.mxu2 %v4332_v12  ;;  %v4337_v20 = vld [vmem:[%s4819_s9 + $0x100] sm:$0xff]  ;;  %v4398_v12 = vld [vmem:[%s4819_s9 + $0x2e8] sm:$0xff] }
 0x2f6   : > { %4731 = vpow2.f32 %v3589_v33  ;;  %v4348_v33 = vld [vmem:[%s4819_s9 + $0x158] sm:$0xff] }
 0x2f7   : > { %3810 = vmatpush.msrb.mxu0 %v4365_v41  ;;  %3773 = vmatpush.msra.mxu3 %v4348_v33  ;;  %v4399_v41 = vld [vmem:[%s4819_s9 + $0x2f0] sm:$0xff] }
 0x2f9   : > { %v481_v13 = vpop.xlane.xlu1 %480 }
 0x2fa   : > { %4733 = vrcp.f32 %v481_v13  ;;  %v493_v49 = vand.u32 2147483648, %v481_v13  ;;  %v491_v35 = vand.u32 2147483647, %v481_v13  ;;  %vm487_vm13 = vweird.f32 %v481_v13 }
 0x2fc   : > { %v4732_v9 = vpop.eup %4731  ;;  %v494_v3 = vor.u32 1.1754944e-38, %v493_v49  ;;  %vm492_vm10 = vcmp.eq.f32.partialorder %v491_v35, 8.507059e+37  ;;  %v4363_v49 = vld [vmem:[%s4819_s9 + $0x1d0] sm:$0xff]  ;;  %v3685_v35 = vld [vmem:[%s4819_s9 + $0x48] sm:$0xff] }
 0x2fd   : > { %3591 = vadd.xlane.f32.xlu2 %v4732_v9 }
 0x300   : > { %v4734_v60 = vpop.eup %4733 }
 0x301   : > { %v483_v22 = vmul.f32 %v4734_v60, %v481_v13  ;;  %vm488_vm15 = vweird.f32 %v4734_v60  ;;  %v4364_v13 = vld [vmem:[%s4819_s9 + $0x1d8] sm:$0xff] }
 0x302   : > { %vm489_vm2 = vmor %vm487_vm13, %vm488_vm15  ;;  %3811 = vmatpush.msrb.mxu0 %v4364_v13  ;;  %v4414_v13 = vld [vmem:[%s4819_s9 + $0x368] sm:$0xff] }
 0x303   : > { %v484_v37 = vsub.f32 1.0, %v483_v22  ;;  %v4331_v22 = vld [vmem:[%s4819_s9 + $0xd0] sm:$0xff] }
 0x304   : > { %3736 = vmatpush.msra.mxu2 %v4331_v22  ;;  %3812 = vmatpush.msrb.mxu0 %v4363_v49  ;;  %v4381_v22 = vld [vmem:[%s4819_s9 + $0x260] sm:$0xff] }
 0x305   : > { %v485_v14 = vmul.f32 %v4734_v60, %v484_v37  ;;  %v4347_v37 = vld [vmem:[%s4819_s9 + $0x150] sm:$0xff]  ;;  %v4413_v49 = vld [vmem:[%s4819_s9 + $0x360] sm:$0xff] }
 0x306   : > { %3774 = vmatpush.msra.mxu3 %v4347_v37  ;;  %v4397_v37 = vld [vmem:[%s4819_s9 + $0x2e0] sm:$0xff] }
 0x307   : > { %v486_v16 = vadd.f32 %v4734_v60, %v485_v14 }
 0x309   : > { %v490_v5 = vsel %vm489_vm2, %v4734_v60, %v486_v16  ;;  %v3686_v60 = vld [vmem:[%s4819_s9 + $0x50] sm:$0xff]  ;;  %v4330_v16 = vld [vmem:[%s4819_s9 + $0xc8] sm:$0xff] }
 0x30a   : > { %v495_v17 = vsel %vm492_vm10, %v494_v3, %v490_v5  ;;  %3697 = vmatpush.msra.mxu1 %v3686_v60  ;;  %v4346_v3 = vld [vmem:[%s4819_s9 + $0x148] sm:$0xff]  ;;  %3737 = vmatpush.msra.mxu2 %v4330_v16  ;;  %v4396_v16 = vld [vmem:[%s4819_s9 + $0x2d8] sm:$0xff] }
 0x30b   : > { %v496_v53 = vmul.f32 %v6882_v43, %v495_v17  ;;  %v4362_v5 = vld [vmem:[%s4819_s9 + $0x1c8] sm:$0xff]  ;;  %v3684_v17 = vld [vmem:[%s4819_s9 + $0x40] sm:$0xff]  ;;  %3775 = vmatpush.msra.mxu3 %v4346_v3  ;;  %v4412_v3 = vld [vmem:[%s4819_s9 + $0x358] sm:$0xff] }
 0x30c   : > { %3698 = vmatpush.msra.mxu1 %v3685_v35  ;;  %3813 = vmatpush.msrb.mxu0 %v4362_v5  ;;  %v4380_v35 = vld [vmem:[%s4819_s9 + $0x258] sm:$0xff] }
 0x30d   : > { %3633 = vperm.xlu0 %4458, %v496_v53   ;;  %3628 = vperm.xlu1 %4457, %v496_v53   ;;  %v4428_v5 = vld [vmem:[%s4819_s9 + $0x3d8] sm:$0xff] }
 0x30e   : > { %3699 = vmatpush.msra.mxu1 %v3684_v17  ;;  %v4379_v17 = vld [vmem:[%s4819_s9 + $0x250] sm:$0xff] }
 0x311   : > { %v3611_v56 = vpop.permute.xlu1 %3610 }
 0x315   : > { %3617 = vperm.xlu2 %4456, %v3614_v48   ;;  %4459 = vset.pattern.permute.xlu1 %v4757_v23  ;;  %v4345_v48 = vld [vmem:[%s4819_s9 + $0x140] sm:$0xff] }
 0x316   : > { %3639 = vperm.xlu1 %4459, %v496_v53   ;;  %4461 = vset.pattern.permute.xlu0 %v4758_v40  ;;  %v4329_v53 = vld [vmem:[%s4819_s9 + $0xc0] sm:$0xff] }
 0x317   : > { %v4361_v23 = vld [vmem:[%s4819_s9 + $0x1c0] sm:$0xff]  ;;  %3738 = vmatpush.msra.mxu2 %v4329_v53  ;;  %3776 = vmatpush.msra.mxu3 %v4345_v48  ;;  %v4395_v53 = vld [vmem:[%s4819_s9 + $0x2d0] sm:$0xff] }
 0x318   : > { %3814 = vmatpush.msrb.mxu0 %v4361_v23  ;;  %v4411_v48 = vld [vmem:[%s4819_s9 + $0x350] sm:$0xff] }
 0x319   : > { %v4427_v23 = vld [vmem:[%s4819_s9 + $0x3d0] sm:$0xff] }
 0x31d   : > { %4460 = vset.pattern.permute.xlu2 %v4758_v40  ;;  %v4328_v40 = vld [vmem:[%s4819_s9 + $0xb8] sm:$0xff] }
 0x31e   : > { %3739 = vmatpush.msra.mxu2 %v4328_v40  ;;  %v4394_v40 = vld [vmem:[%s4819_s9 + $0x2c8] sm:$0xff] }
 0x370   : > { %v3592_v6 = vpop.xlane.xlu2 %3591 }
 0x371   : > { %4735 = vrcp.f32 %v3592_v6  ;;  %v3604_v11 = vand.u32 2147483648, %v3592_v6  ;;  %v3602_v43 = vand.u32 2147483647, %v3592_v6  ;;  %vm3598_vm3 = vweird.f32 %v3592_v6 }
 0x373   : > { %v3605_v31 = vor.u32 1.1754944e-38, %v3604_v11  ;;  %vm3603_vm1 = vcmp.eq.f32.partialorder %v3602_v43, 8.507059e+37  ;;  %v4327_v11 = vld [vmem:[%s4819_s9 + $0xb0] sm:$0xff] }
 0x374   : > { %v4359_v43 = vld [vmem:[%s4819_s9 + $0x1b0] sm:$0xff]  ;;  %3740 = vmatpush.msra.mxu2 %v4327_v11  ;;  %v4377_v11 = vld [vmem:[%s4819_s9 + $0x240] sm:$0xff] }
 0x377   : > { %v4736_v1 = vpop.eup %4735 }
 0x378   : > { %v3594_v61 = vmul.f32 %v4736_v1, %v3592_v6  ;;  %vm3599_vm12 = vweird.f32 %v4736_v1  ;;  %v3618_v38 = vpop.permute.xlu2 %3617  ;;  %v3683_v6 = vld [vmem:[%s4819_s9 + $0x38] sm:$0xff] }
 0x379   : > { %vm3600_vm9 = vmor %vm3598_vm3, %vm3599_vm12  ;;  %v3620_v57 = vmul.f32 %v3618_v38, %v265_v27  ;;  %3700 = vmatpush.msra.mxu1 %v3683_v6  ;;  %v4358_v38 = vld [vmem:[%s4819_s9 + $0x1a8] sm:$0xff] }
 0x37a   : > { %v3595_v15 = vsub.f32 1.0, %v3594_v61  ;;  %v4360_v61 = vld [vmem:[%s4819_s9 + $0x1b8] sm:$0xff]  ;;  %v4378_v6 = vld [vmem:[%s4819_s9 + $0x248] sm:$0xff] }
 0x37b   : > { %3815 = vmatpush.msrb.mxu0 %v4360_v61  ;;  %v4426_v61 = vld [vmem:[%s4819_s9 + $0x3c8] sm:$0xff] }
 0x37c   : > { %v3596_v32 = vmul.f32 %v4736_v1, %v3595_v15  ;;  %v3682_v15 = vld [vmem:[%s4819_s9 + $0x30] sm:$0xff] }
 0x37d   : > { %3701 = vmatpush.msra.mxu1 %v3682_v15  ;;  %3816 = vmatpush.msrb.mxu0 %v4359_v43 }
 0x37e   : > { %v3597_v19 = vadd.f32 %v4736_v1, %v3596_v32  ;;  %v4343_v32 = vld [vmem:[%s4819_s9 + $0x130] sm:$0xff] }
 0x37f   : > { %v3629_v55 = vpop.permute.xlu1 %3628  ;;  %v3634_v21 = vpop.permute.xlu0 %3633  ;;  %3817 = vmatpush.msrb.mxu0 %v4358_v38  ;;  %v4408_v38 = vld [vmem:[%s4819_s9 + $0x338] sm:$0xff] }
 0x380   : > { %v3601_v59 = vsel %vm3600_vm9, %v4736_v1, %v3597_v19  ;;  %v4344_v1 = vld [vmem:[%s4819_s9 + $0x138] sm:$0xff] }
 0x381   : > { %v3606_v51 = vsel %vm3603_vm1, %v3605_v31, %v3601_v59  ;;  %3777 = vmatpush.msra.mxu3 %v4344_v1  ;;  %v3681_v31 = vld [vmem:[%s4819_s9 + $0x28] sm:$0xff]  ;;  %3818 = vmatpush.msrb.mxu0 %v4357_v25 }
 0x382   : > { %v3607_v26 = vmul.f32 %v4732_v9, %v3606_v51  ;;  %v4326_v59 = vld [vmem:[%s4819_s9 + $0xa8] sm:$0xff]  ;;  %3702 = vmatpush.msra.mxu1 %v3681_v31  ;;  %v4425_v31 = vld [vmem:[%s4819_s9 + $0x3c0] sm:$0xff] }
 0x383   : > { %v4342_v51 = vld [vmem:[%s4819_s9 + $0x128] sm:$0xff]  ;;  %3778 = vmatpush.msra.mxu3 %v4343_v32  ;;  %3741 = vmatpush.msra.mxu2 %v4326_v59  ;;  %v4393_v32 = vld [vmem:[%s4819_s9 + $0x2c0] sm:$0xff]  ;;  %v4376_v59 = vld [vmem:[%s4819_s9 + $0x238] sm:$0xff] }
 0x384   : > { %v3613_v47 = vmul.f32 %v3611_v56, %v3607_v26  ;;  %v3680_v56 = vld [vmem:[%s4819_s9 + $0x20] sm:$0xff]  ;;  %3819 = vmatpush.msrb.mxu0 %v4356_v50  ;;  %v4410_v1 = vld [vmem:[%s4819_s9 + $0x348] sm:$0xff] }
 0x385   : > { %3779 = vmatpush.msra.mxu3 %v4342_v51  ;;  %3703 = vmatpush.msra.mxu1 %v3680_v56 }
 0x386   : > { %v3621_v24 = vadd.f32 %v3620_v57, %v3613_v47  ;;  %v4325_v47 = vld [vmem:[%s4819_s9 + $0xa0] sm:$0xff] }
 0x387   : > { %3742 = vmatpush.msra.mxu2 %v4325_v47  ;;  %v4375_v47 = vld [vmem:[%s4819_s9 + $0x230] sm:$0xff] }
 0x388   : > { %3622 = vrot.lane.b32.xlu2 %v3621_v24, %s4759_s28  ;;  %v3636_v18 = vmul.f32 %v3634_v21, %v3621_v24  ;;  %v3640_v4 = vpop.permute.xlu1 %3639  ;;  %v4354_v21 = vld [vmem:[%s4819_s9 + $0x188] sm:$0xff] }
 0x390   : > { %3624 = vrot.lane.b32.xlu2 %v3621_v24, %s4760_s29  ;;  %v4341_v24 = vld [vmem:[%s4819_s9 + $0x120] sm:$0xff] }
 0x391   : > { %3780 = vmatpush.msra.mxu3 %v4341_v24 }
 0x393   : > { %3781 = vmatpush.msra.mxu3 %v4340_v10  ;;  %v4390_v10 = vld [vmem:[%s4819_s9 + $0x2a8] sm:$0xff] }
 0x395   : > { %3782 = vmatpush.msra.mxu3 %v4339_v62 }
 0x397   : > { %3783 = vmatpush.msra.mxu3 %v4338_v34  ;;  %v4405_v34 = vld [vmem:[%s4819_s9 + $0x320] sm:$0xff] }
 0x398   : > { %3649 = vperm.xlu2 %4460, %v497_v46   ;;  %v3679_v46 = vld [vmem:[%s4819_s9 + $0x18] sm:$0xff] }
 0x399   : > { %3704 = vmatpush.msra.mxu1 %v3679_v46  ;;  %3784 = vmatpush.msra.mxu3 %v4337_v20  ;;  %v4407_v46 = vld [vmem:[%s4819_s9 + $0x330] sm:$0xff]  ;;  %v4388_v20 = vld [vmem:[%s4819_s9 + $0x298] sm:$0xff] }
 0x39b   : > { %3705 = vmatpush.msra.mxu1 %v3678_v44  ;;  %v4406_v44 = vld [vmem:[%s4819_s9 + $0x328] sm:$0xff] }
 0x39d   : > { %3706 = vmatpush.msra.mxu1 %v3677_v39  ;;  %v4389_v39 = vld [vmem:[%s4819_s9 + $0x2a0] sm:$0xff] }
 0x39f   : > { %3707 = vmatpush.msra.mxu1 %v3676_v7 }
 0x3a1   : > { %3845 = vmatpush.msrb.mxu1 %v4384_v36  ;;  %v4404_v36 = vld [vmem:[%s4819_s9 + $0x318] sm:$0xff] }
 0x3a3   : > { %3846 = vmatpush.msrb.mxu1 %v4383_v2  ;;  %v4403_v2 = vld [vmem:[%s4819_s9 + $0x310] sm:$0xff] }
 0x3a5   : > { %3847 = vmatpush.msrb.mxu1 %v4382_v0  ;;  %v4418_v0 = vld [vmem:[%s4819_s9 + $0x388] sm:$0xff] }
 0x3a7   : > { %3848 = vmatpush.msrb.mxu1 %v4381_v22 }
 0x3a9   : > { %3849 = vmatpush.msrb.mxu1 %v4380_v35 }
 0x3ab   : > { %3850 = vmatpush.msrb.mxu1 %v4379_v17 }
 0x3ad   : > { %3851 = vmatpush.msrb.mxu1 %v4378_v6 }
 0x3af   : > { %3852 = vmatpush.msrb.mxu1 %v4377_v11 }
 0x3b1   : > { %3853 = vmatpush.msrb.mxu1 %v4376_v59 }
 0x3b3   : > { %3854 = vmatpush.msrb.mxu1 %v4375_v47 }
 0x3e2   : > { %v3623_v63 = vpop.permute.xlu2 %3622 }
 0x3e3   : > { %v3631_v28 = vmul.f32 %v3629_v55, %v3623_v63  ;;  %v4324_v55 = vld [vmem:[%s4819_s9 + $0x98] sm:$0xff] }
 0x3e4   : > { %3743 = vmatpush.msra.mxu2 %v4324_v55  ;;  %v4423_v55 = vld [vmem:[%s4819_s9 + $0x3b0] sm:$0xff] }
 0x3e5   : > { %v3637_v54 = vadd.f32 %v3636_v18, %v3631_v28  ;;  %v4355_v28 = vld [vmem:[%s4819_s9 + $0x190] sm:$0xff]  ;;  %v4353_v18 = vld [vmem:[%s4819_s9 + $0x180] sm:$0xff] }
 0x3e6   : > { %3744 = vmatpush.msra.mxu2 %v4323_v58  ;;  %3820 = vmatpush.msrb.mxu0 %v4355_v28  ;;  %v4422_v58 = vld [vmem:[%s4819_s9 + $0x3a8] sm:$0xff]  ;;  %v4373_v28 = vld [vmem:[%s4819_s9 + $0x220] sm:$0xff] }
 0x3e8   : > { %3745 = vmatpush.msra.mxu2 %v4322_v52  ;;  %3821 = vmatpush.msrb.mxu0 %v4354_v21  ;;  %v4421_v21 = vld [vmem:[%s4819_s9 + $0x3a0] sm:$0xff] }
 0x3ea   : > { %v3625_v29 = vpop.permute.xlu2 %3624  ;;  %3746 = vmatpush.msra.mxu2 %v4321_v45  ;;  %3822 = vmatpush.msrb.mxu0 %v4353_v18  ;;  %v4372_v45 = vld [vmem:[%s4819_s9 + $0x218] sm:$0xff] }
 0x3eb   : > { %v3642_v30 = vmul.f32 %v3640_v4, %v3625_v29  ;;  %v4416_v4 = vld [vmem:[%s4819_s9 + $0x378] sm:$0xff] }
 0x3ec   : > { %v4432_v29 = vld [vmem:[%s4819_s9 + $0x3f8] sm:$0xff]  ;;  %3883 = vmatpush.msrb.mxu2 %v4400_v8  ;;  %3921 = vmatpush.msrb.mxu3 %v4416_v4  ;;  %v4371_v4 = vld [vmem:[%s4819_s9 + $0x210] sm:$0xff] }
 0x3ed   : > { %v3643_v9 = vadd.f32 %v3642_v30, %v3637_v54  ;;  %v4415_v54 = vld [vmem:[%s4819_s9 + $0x370] sm:$0xff]  ;;  %3959 = vmatpush.msra.mxu0 %v4432_v29  ;;  %v4420_v8 = vld [vmem:[%s4819_s9 + $0x398] sm:$0xff] }
 0x3ee   : > { %v4431_v30 = vld [vmem:[%s4819_s9 + $0x3f0] sm:$0xff]  ;;  %3884 = vmatpush.msrb.mxu2 %v4399_v41  ;;  %3922 = vmatpush.msrb.mxu3 %v4415_v54  ;;  %v4386_v54 = vld [vmem:[%s4819_s9 + $0x288] sm:$0xff] }
 0x3ef   : > { %v3644_v14 = vmax.f32 %v3643_v9, 1e-30  ;;  %v4430_v9 = vld [vmem:[%s4819_s9 + $0x3e8] sm:$0xff]  ;;  %3960 = vmatpush.msra.mxu0 %v4431_v30  ;;  %v4387_v29 = vld [vmem:[%s4819_s9 + $0x290] sm:$0xff] }
 0x3f0   : > { %3885 = vmatpush.msrb.mxu2 %v4398_v12  ;;  %3923 = vmatpush.msrb.mxu3 %v4414_v13  ;;  %v4419_v41 = vld [vmem:[%s4819_s9 + $0x390] sm:$0xff]  ;;  %v4402_v30 = vld [vmem:[%s4819_s9 + $0x308] sm:$0xff]  ;;  %v4369_v12 = vld [vmem:[%s4819_s9 + $0x200] sm:$0xff] }
 0x3f1   : > { %4737 = vlog2.f32 %v3644_v14  ;;  %v4429_v14 = vld [vmem:[%s4819_s9 + $0x3e0] sm:$0xff]  ;;  %3961 = vmatpush.msra.mxu0 %v4430_v9 }
 0x3f2   : > { %v3650_v26 = vpop.permute.xlu2 %3649  ;;  %3886 = vmatpush.msrb.mxu2 %v4397_v37  ;;  %3924 = vmatpush.msrb.mxu3 %v4413_v49  ;;  %v4401_v13 = vld [vmem:[%s4819_s9 + $0x300] sm:$0xff] }
 0x3f3   : > { %3962 = vmatpush.msra.mxu0 %v4429_v14  ;;  %v4417_v9 = vld [vmem:[%s4819_s9 + $0x380] sm:$0xff] }
 0x3f4   : > { %3887 = vmatpush.msrb.mxu2 %v4396_v16  ;;  %3925 = vmatpush.msrb.mxu3 %v4412_v3 }
 0x3f5   : > { %3963 = vmatpush.msra.mxu0 %v4428_v5 }
 0x3f6   : > { %3888 = vmatpush.msrb.mxu2 %v4395_v53  ;;  %3926 = vmatpush.msrb.mxu3 %v4411_v48 }
 0x3f7   : > { %v4738_v19 = vpop.eup %4737  ;;  %3964 = vmatpush.msra.mxu0 %v4427_v23 }
 0x3f8   : > { %v3646_v27 = vmul.f32 0.6931472, %v4738_v19  ;;  %3889 = vmatpush.msrb.mxu2 %v4394_v40  ;;  %v4409_v19 = vld [vmem:[%s4819_s9 + $0x340] sm:$0xff]  ;;  %3927 = vmatpush.msrb.mxu3 %v4410_v1 }
 0x3f9   : > { %3965 = vmatpush.msra.mxu0 %v4426_v61 }
 0x3fa   : > { %v3652_v57 = vmul.f32 %v3650_v26, %v3646_v27  ;;  %v4392_v27 = vld [vmem:[%s4819_s9 + $0x2b8] sm:$0xff]  ;;  %3890 = vmatpush.msrb.mxu2 %v4393_v32  ;;  %3928 = vmatpush.msrb.mxu3 %v4409_v19 }
 0x3fb   : > { %v4424_v26 = vld [vmem:[%s4819_s9 + $0x3b8] sm:$0xff]  ;;  %3966 = vmatpush.msra.mxu0 %v4425_v31 }
 0x3fc   : > { %v3653_v63 = vmul.f32 1.442695, %v3652_v57  ;;  %v4391_v57 = vld [vmem:[%s4819_s9 + $0x2b0] sm:$0xff]  ;;  %3891 = vmatpush.msrb.mxu2 %v4392_v27  ;;  %3929 = vmatpush.msrb.mxu3 %v4408_v38 }
 0x3fd   : > { %3967 = vmatpush.msra.mxu0 %v4424_v26 }
 0x3fe   : > { %4739 = vpow2.f32 %v3653_v63  ;;  %v4374_v63 = vld [vmem:[%s4819_s9 + $0x228] sm:$0xff]  ;;  %3892 = vmatpush.msrb.mxu2 %v4391_v57  ;;  %3930 = vmatpush.msrb.mxu3 %v4407_v46 }
 0x3ff   : > { %3968 = vmatpush.msra.mxu0 %v4423_v55  ;;  %3855 = vmatpush.msrb.mxu1 %v4374_v63 }
 0x400   : > { %3893 = vmatpush.msrb.mxu2 %v4390_v10  ;;  %3931 = vmatpush.msrb.mxu3 %v4406_v44 }
 0x401   : > { %3969 = vmatpush.msra.mxu0 %v4422_v58  ;;  %3856 = vmatpush.msrb.mxu1 %v4373_v28 }
 0x402   : > { %3894 = vmatpush.msrb.mxu2 %v4389_v39  ;;  %3932 = vmatpush.msrb.mxu3 %v4405_v34 }
 0x403   : > { %3970 = vmatpush.msra.mxu0 %v4421_v21  ;;  %3857 = vmatpush.msrb.mxu1 %v4372_v45 }
 0x404   : > { %v8930_v42 = vpop.eup %4739  ;;  %3895 = vmatpush.msrb.mxu2 %v4388_v20  ;;  %3933 = vmatpush.msrb.mxu3 %v4404_v36 }
 0x405   : > { %3655 = vadd.xlane.f32.xlu1 %v8930_v42  ;;  %3971 = vmatpush.msra.mxu0 %v4420_v8 }
 0x406   : > { %3858 = vmatpush.msrb.mxu1 %v4371_v4  ;;  %3896 = vmatpush.msrb.mxu2 %v4387_v29 }
 0x407   : > { %3934 = vmatpush.msrb.mxu3 %v4403_v2  ;;  %3972 = vmatpush.msra.mxu0 %v4419_v41 }
 0x408   : > { %3897 = vmatpush.msrb.mxu2 %v4386_v54 }
 0x409   : > { %3935 = vmatpush.msrb.mxu3 %v4402_v30  ;;  %3973 = vmatpush.msra.mxu0 %v4418_v0 }
 0x40b   : > { %3936 = vmatpush.msrb.mxu3 %v4401_v13  ;;  %3974 = vmatpush.msra.mxu0 %v4417_v9 }
 0x478   : > { %v3656_v33 = vpop.xlane.xlu1 %3655 }
 0x479   : > { %v8957_v60 = vadd.f32 1e-16, %v3656_v33  ;;  %v4385_v33 = vld [vmem:[%s4819_s9 + $0x280] sm:$0xff] }
 0x47a   : > { %3898 = vmatpush.msrb.mxu2 %v4385_v33 }
 0x47b   : > { %4741 = vrcp.f32 %v8957_v60  ;;  %v3669_v56 = vand.u32 2147483648, %v8957_v60  ;;  %v3667_v25 = vand.u32 2147483647, %v8957_v60  ;;  %vm3663_vm14 = vweird.f32 %v8957_v60 }
 0x47d   : > { %v3670_v62 = vor.u32 1.1754944e-38, %v3669_v56  ;;  %vm3668_vm7 = vcmp.eq.f32.partialorder %v3667_v25, 8.507059e+37 }
 0x481   : > { %v4742_v15 = vpop.eup %4741 }
 0x482   : > { %v3659_v43 = vmul.f32 %v4742_v15, %v8957_v60  ;;  %vm3664_vm4 = vweird.f32 %v4742_v15 }
 0x483   : > { %vm3665_vm0 = vmor %vm3663_vm14, %vm3664_vm4 }
 0x484   : > { %v3660_v51 = vsub.f32 1.0, %v3659_v43 }
 0x486   : > { %v3661_v24 = vmul.f32 %v4742_v15, %v3660_v51 }
 0x488   : > { %v3662_v50 = vadd.f32 %v4742_v15, %v3661_v24 }
 0x48a   : > { %v3666_v52 = vsel %vm3665_vm0, %v4742_v15, %v3662_v50 }
 0x48b   : > { %v3671_v7 = vsel %vm3668_vm7, %v3670_v62, %v3666_v52 }
 0x48c   : > { %v3672_v18 = vmul.f32 %v8930_v42, %v3671_v7  ;;  %v4370_v42 = vld [vmem:[%s4819_s9 + $0x208] sm:$0xff] }
 0x48d   : > { %3859 = vmatpush.msrb.mxu1 %v4370_v42 }
 0x48e   : > { %3673 = vst [vmem:[%s9005_s7] sm:$0xff] %v3672_v18 }
 0x48f   : > { %3674 = vst [vmem:[#allocation3] sm:$0xff] %v3672_v18  ;;  %3860 = vmatpush.msrb.mxu1 %v4369_v12 }
 0x496   : > { %v3675_v60 = vld [vmem:[#allocation3] sm:$0x1]  ;;  %v3714_v22 = vld [vmem:[#allocation3 + $0x1] sm:$0x1]  ;;  %v3752_v37 = vld [vmem:[#allocation3 + $0x2] sm:$0x1] }
 0x497   : > { %3708 = vmatmul.f32.vlgmr.msra.gmra.mxu1 %v3675_v60  ;;  %3747 = vmatmul.f32.vlgmr.msra.gmra.mxu2 %v3714_v22  ;;  %v3790_v49 = vld [vmem:[#allocation3 + $0x3] sm:$0x1]  ;;  %v3828_v14 = vld [vmem:[#allocation3 + $0x4] sm:$0x1]  ;;  %v3866_v35 = vld [vmem:[#allocation3 + $0x5] sm:$0x1] }
 0x498   : > { %3785 = vmatmul.f32.vlgmr.msra.gmra.mxu3 %v3752_v37  ;;  %3823 = vmatmul.f32.vlgmr.msrb.gmra.mxu0 %v3790_v49  ;;  %v3904_v16 = vld [vmem:[#allocation3 + $0x6] sm:$0x1]  ;;  %v3942_v3 = vld [vmem:[#allocation3 + $0x7] sm:$0x1] }
 0x49f   : > { %3861 = vmatmul.f32.vlgmr.msrb.gmra.mxu1 %v3828_v14  ;;  %3899 = vmatmul.f32.vlgmr.msrb.gmra.mxu2 %v3866_v35 }
 0x4a0   : > { %3937 = vmatmul.f32.vlgmr.msrb.gmra.mxu3 %v3904_v16  ;;  %3975 = vmatmul.f32.vlgmr.msra.gmra.mxu0 %v3942_v3 }
 0x514   : > { %v3709_v5 = vpop.f32.mrf.mxu1 }
 0x515   : > { %3713 = vst.msk [vmem:[%s9005_s7 + $0x8] sm:$0x1] %vm3712_vm6, %v3709_v5  ;;  %v3824_v17 = vpop.f32.mrf.mxu0 }
 0x516   : > { %3827 = vst.msk [vmem:[%s9005_s7 + $0xb] sm:$0x1] %vm3712_vm6, %v3824_v17 }
 0x51a   : > { %v3748_v53 = vpop.f32.mrf.mxu2 }
 0x51b   : > { %3751 = vst.msk [vmem:[%s9005_s7 + $0x9] sm:$0x1] %vm3712_vm6, %v3748_v53  ;;  %v3786_v48 = vpop.f32.mrf.mxu3 }
 0x51c   : > { %3789 = vst.msk [vmem:[%s9005_s7 + $0xa] sm:$0x1] %vm3712_vm6, %v3786_v48  ;;  %v3862_v23 = vpop.f32.mrf.mxu1 }
 0x51d   : > { %3865 = vst.msk [vmem:[%s9005_s7 + $0xc] sm:$0x1] %vm3712_vm6, %v3862_v23  ;;  %v3976_v6 = vpop.f32.mrf.mxu0 }
 0x51e   : > { %3979 = vst.msk [vmem:[%s9005_s7 + $0xf] sm:$0x1] %vm3712_vm6, %v3976_v6 }
 0x522   : > { %v3900_v40 = vpop.f32.mrf.mxu2 }
 0x523   : > { %3903 = vst.msk [vmem:[%s9005_s7 + $0xd] sm:$0x1] %vm3712_vm6, %v3900_v40  ;;  %v3938_v1 = vpop.f32.mrf.mxu3 }
 0x524   : > { %3941 = vst.msk [vmem:[%s9005_s7 + $0xe] sm:$0x1] %vm3712_vm6, %v3938_v1 }
 0x525 PF: > { %s15_s18 = sadd.s32 1, %s4750_s18  }
 0x526   : > { %p12_p5 = scmp.ge.s32.totalorder %s15_s18, 4  }
 0x528   :  { %14 = sbr.rel (!%p12_p5) target bundleno = 1 (0x1), region = 83 }

</bundles_post_ra>
